<compile_context>
chip_gen: v7x
topology: tpu7x:2x2x1
jax: 0.10.0
libtpu: 0.0.40
codegen_flags: <defaults>
</compile_context>

<pallas_src>
import functools
import math

import numpy as np
import jax
import jax.numpy as jnp
from jax.experimental import pallas as pl
from jax.experimental.pallas import tpu as pltpu

# ----------------------------- configuration --------------------------------
BATCH = 2
RES = 16              # DiscriminatorBlock.resolution
IMG_CH = 3            # img_channels
TMP_CH = 32           # tmp_channels
OUT_CH = 32           # out_channels
CONV_CLAMP = None     # module default (conv_clamp=None)

CPAD = 128            # channel (lane) width for all matmuls
IMG_PAD = 8           # per-batch img-channel padding inside the packed input
LANE_OFF = 32         # lane offset of batch element 1 in the packed channel dim
P_IN = RES * RES      # 256 spatial positions at full resolution
P_OUT = (RES // 2) ** 2   # 64 positions after down=2

LRELU_SLOPE = 0.2
LRELU_GAIN = math.sqrt(2.0)          # bias_act def_gain for 'lrelu'

_F1 = np.array([1.0, 3.0, 3.0, 1.0], np.float64)   # resample_filter taps


# ------------------- host-side constant spatial operators -------------------
def _upfirdn_matrix(H, W, f1, pad, down):
    """(Ho*Wo, H*W) matrix M with flat(upfirdn2d(x, outer(f1,f1)/sum, pad, down)) = M @ flat(x).

    (The filter is symmetric, so the flip inside upfirdn2d is a no-op.)"""
    f1 = np.asarray(f1, np.float64)
    fn = f1 / f1.sum()
    f2 = np.outer(fn, fn)
    ft = f1.size
    hc = H + 2 * pad - ft + 1
    wc = W + 2 * pad - ft + 1
    ho = -(-hc // down)
    wo = -(-wc // down)
    m = np.zeros((ho * wo, H * W), np.float64)
    for i in range(ho):
        for j in range(wo):
            u, v = i * down, j * down
            for a in range(ft):
                for b in range(ft):
                    y, x = u + a - pad, v + b - pad
                    if 0 <= y < H and 0 <= x < W:
                        m[i * wo + j, y * W + x] += f2[a, b]
    return m.astype(np.float32), ho, wo


def _build_spatial_operators():
    # skip path: upfirdn2d(pad=1, down=2) applied to the full-res activation.
    askip, ho, wo = _upfirdn_matrix(RES, RES, _F1, pad=1, down=2)
    assert (ho, wo) == (RES // 2, RES // 2)
    # conv1 path: upfirdn2d(pad=2, down=1) -> (RES+1)x(RES+1), then the stride-2
    # 3x3 tap selection is folded in: one (P_OUT, P_IN) matrix per conv tap.
    firm, ht, wt = _upfirdn_matrix(RES, RES, _F1, pad=2, down=1)
    assert (ht, wt) == (RES + 1, RES + 1)
    a1 = np.zeros((9, P_OUT, P_IN), np.float32)
    for ky in range(3):
        for kx in range(3):
            rows = np.asarray([(2 * i + ky) * wt + (2 * j + kx)
                               for i in range(RES // 2) for j in range(RES // 2)])
            a1[ky * 3 + kx] = firm[rows]
    return askip, a1


def _build_conv0_masks():
    """(P_IN, 16) 0/1 multipliers: column t masks out-of-bounds reads of tap t
    (ky, kx) = divmod(t, 3) for the same-resolution 3x3 conv (padding=1)."""
    m = np.zeros((P_IN, 16), np.float32)
    for t in range(9):
        ky, kx = divmod(t, 3)
        for p in range(P_IN):
            i, j = divmod(p, RES)
            ok = (0 <= i + ky - 1 < RES) and (0 <= j + kx - 1 < RES)
            m[p, t] = 1.0 if ok else 0.0
    return m


# ------------------------------- Pallas kernel -------------------------------
def disc_block_kernel(img_ref, wrgb_ref, brgb_ref, w0_ref, b0_ref, mask_ref,
                      askip_ref, wskip_ref, a1_ref, w1_ref, b1_ref, out_ref,
                      *, H, W):
    f32 = jnp.float32
    bf16 = jnp.bfloat16
    P = H * W

    def lrelu_bias(v, b_ref):
        # all gains are pre-folded into the weights/biases on the host
        v = v + b_ref[...]
        return jnp.maximum(v, LRELU_SLOPE * v)

    # --- fromrgb: 1x1 conv (lane-packed matmul) + bias + lrelu -----------------
    x0 = jnp.dot(img_ref[...], wrgb_ref[...], preferred_element_type=f32)   # (P, 128)
    x0 = lrelu_bias(x0, brgb_ref)
    x0b = x0.astype(bf16)

    # --- conv0 center tap first (no mask / no roll): initializes the accumulator
    acc0 = jnp.dot(x0b, w0_ref[4], preferred_element_type=f32)              # (P, 128) f32

    # --- skip: (pad1 + 4x4 FIR + down2) as one constant spatial matmul,
    #           then 1x1 conv (linear, no bias, sqrt(0.5) folded into weight).
    #           Result is parked in out_ref (VMEM) until the residual add. -----
    xd = jnp.dot(askip_ref[...], x0b, preferred_element_type=f32)           # (P/4, 128)
    out_ref[...] = jnp.dot(xd.astype(bf16), wskip_ref[...],
                           preferred_element_type=f32)

    # --- conv0 remaining 8 taps: flat XLU rolls of x0 + boundary masks --------
    for t in range(9):
        if t == 4:
            continue
        ky, kx = divmod(t, 3)
        d = (ky - 1) * W + (kx - 1)                       # flat source offset
        # rolled[p] = x0[(p + d) mod P]; wrapped/out-of-bounds rows are masked.
        rolled = pltpu.roll(x0, (-d) % P, axis=0)
        patch = (rolled * mask_ref[:, t:t + 1]).astype(bf16)
        acc0 = acc0 + jnp.dot(patch, w0_ref[t], preferred_element_type=f32)
    x1 = lrelu_bias(acc0, b0_ref).astype(bf16)                              # (P, 128)

    # --- conv1: (pad2 + 4x4 FIR) fused with the 3x3 stride-2 conv, per tap ----
    g = jnp.dot(a1_ref[0], x1, preferred_element_type=f32)                  # (P/4, 128)
    acc1 = jnp.dot(g.astype(bf16), w1_ref[0], preferred_element_type=f32)
    for t in range(1, 9):
        g = jnp.dot(a1_ref[t], x1, preferred_element_type=f32)
        acc1 = acc1 + jnp.dot(g.astype(bf16), w1_ref[t],
                              preferred_element_type=f32)
    x2 = lrelu_bias(acc1, b1_ref)

    # --- residual add (resnet architecture) -----------------------------------
    out_ref[...] = out_ref[...] + x2


# ------------------------------- host-side prep -------------------------------
def prepare_operands(raw):
    """Fold weight_gain and activation gains into the weights/biases, lane-pack
    the two batch elements block-diagonally into the 128-lane channel dim,
    cast matmul operands to bf16, and build the constant FIR/down operators."""
    ag = LRELU_GAIN
    g_rgb = ag / math.sqrt(IMG_CH * 1 * 1)
    g_c0 = ag / math.sqrt(TMP_CH * 3 * 3)
    g_c1 = (ag * math.sqrt(0.5)) / math.sqrt(TMP_CH * 3 * 3)
    g_sk = math.sqrt(0.5) / math.sqrt(TMP_CH * 1 * 1)

    def taps(w, gain):
        cout, cin, kh, kw = w.shape
        return jnp.transpose(w, (2, 3, 1, 0)).reshape(kh * kw, cin, cout) * gain

    def pack_w(wt):
        # (T, 32, 32) -> (T, 128, 128) block-diagonal (batch0 lanes 0..31,
        # batch1 lanes 32..63); lanes 64..127 stay zero.
        T, cin, cout = wt.shape
        out = jnp.zeros((T, CPAD, CPAD), jnp.float32)
        out = out.at[:, :cin, :cout].set(wt)
        out = out.at[:, LANE_OFF:LANE_OFF + cin, LANE_OFF:LANE_OFF + cout].set(wt)
        return out.astype(jnp.bfloat16)

    def pack_b(b, gain):
        bb = jnp.zeros((1, CPAD), jnp.float32)
        bb = bb.at[0, :b.shape[0]].set(b * gain)
        bb = bb.at[0, LANE_OFF:LANE_OFF + b.shape[0]].set(b * gain)
        return bb

    # fromrgb weight: (2*IMG_PAD, 128); batch1 image channels start at lane IMG_PAD
    wr = taps(raw["wrgb"], g_rgb)[0]                         # (IMG_CH, TMP_CH)
    wrgb = jnp.zeros((2 * IMG_PAD, CPAD), jnp.float32)
    wrgb = wrgb.at[:IMG_CH, :TMP_CH].set(wr)
    wrgb = wrgb.at[IMG_PAD:IMG_PAD + IMG_CH, LANE_OFF:LANE_OFF + TMP_CH].set(wr)

    askip, a1 = _build_spatial_operators()
    return {
        "wrgb": wrgb.astype(jnp.bfloat16),                   # (16, 128)
        "brgb": pack_b(raw["brgb"], ag),                     # (1, 128) f32
        "w0": pack_w(taps(raw["w0"], g_c0)),                 # (9, 128, 128) bf16
        "b0": pack_b(raw["b0"], ag),
        "w1": pack_w(taps(raw["w1"], g_c1)),                 # (9, 128, 128) bf16
        "b1": pack_b(raw["b1"], ag * math.sqrt(0.5)),
        "wskip": pack_w(taps(raw["wskip"], g_sk))[0],        # (128, 128) bf16
        "askip": jnp.asarray(askip, jnp.bfloat16),           # (P_OUT, P_IN)
        "a1": jnp.asarray(a1, jnp.bfloat16),                 # (9, P_OUT, P_IN)
        "mask": jnp.asarray(_build_conv0_masks(), jnp.float32),  # (P_IN, 16)
    }


def discriminator_block_forward(img_nchw, ops):
    """DiscriminatorBlock.forward for in_channels==0, architecture=='resnet'.
    Returns (x, img) with img None, matching the PyTorch module."""
    B = img_nchw.shape[0]
    # lane-pack the two batch elements into one (P, 2*IMG_PAD) bf16 input
    imgf = jnp.transpose(img_nchw, (0, 2, 3, 1)).reshape(B, P_IN, IMG_CH)
    imgf = jnp.pad(imgf, ((0, 0), (0, 0), (0, IMG_PAD - IMG_CH)))
    img_packed = jnp.concatenate([imgf[0], imgf[1]], axis=-1).astype(jnp.bfloat16)

    kern = functools.partial(disc_block_kernel, H=RES, W=RES)

    out = pl.pallas_call(
        kern,
        out_shape=jax.ShapeDtypeStruct((P_OUT, CPAD), jnp.float32),
        grid=(1,),
        in_specs=[
            pl.BlockSpec((P_IN, 2 * IMG_PAD), lambda i: (0, 0)),   # packed img
            pl.BlockSpec((2 * IMG_PAD, CPAD), lambda i: (0, 0)),   # fromrgb weight
            pl.BlockSpec((1, CPAD), lambda i: (0, 0)),             # fromrgb bias
            pl.BlockSpec((9, CPAD, CPAD), lambda i: (0, 0, 0)),    # conv0 weight taps
            pl.BlockSpec((1, CPAD), lambda i: (0, 0)),             # conv0 bias
            pl.BlockSpec((P_IN, 16), lambda i: (0, 0)),            # conv0 boundary masks
            pl.BlockSpec((P_OUT, P_IN), lambda i: (0, 0)),         # skip FIR+down matrix
            pl.BlockSpec((CPAD, CPAD), lambda i: (0, 0)),          # skip 1x1 weight
            pl.BlockSpec((9, P_OUT, P_IN), lambda i: (0, 0, 0)),   # conv1 FIR+stride taps
            pl.BlockSpec((9, CPAD, CPAD), lambda i: (0, 0, 0)),    # conv1 weight taps
            pl.BlockSpec((1, CPAD), lambda i: (0, 0)),             # conv1 bias
        ],
        out_specs=pl.BlockSpec((P_OUT, CPAD), lambda i: (0, 0)),
        compiler_params=pltpu.CompilerParams(dimension_semantics=("arbitrary",)),
    )(img_packed, ops["wrgb"], ops["brgb"], ops["w0"], ops["b0"], ops["mask"],
      ops["askip"], ops["wskip"], ops["a1"], ops["w1"], ops["b1"])

    # un-pack batch elements from the channel lanes
    x = jnp.stack([out[:, :OUT_CH], out[:, LANE_OFF:LANE_OFF + OUT_CH]], axis=0)
    x = x.reshape(B, RES // 2, RES // 2, OUT_CH)
    x = jnp.transpose(x, (0, 3, 1, 2))          # NCHW, as in the PyTorch module
    return x, None                               # img is None for 'resnet'


# ------------------------- pure-JAX/XLA reference -----------------------------
def _depthwise_fir(x, pad, stride):
    B, C, H, W = x.shape
    f2 = np.outer(_F1, _F1)
    f2 = (f2 / f2.sum()).astype(np.float32)
    k = jnp.tile(jnp.asarray(f2).reshape(1, 1, 4, 4), (C, 1, 1, 1))
    xp = jnp.pad(x, ((0, 0), (0, 0), (pad, pad), (pad, pad)))
    return jax.lax.conv_general_dilated(
        xp, k, (stride, stride), 'VALID',
        dimension_numbers=('NCHW', 'OIHW', 'NCHW'),
        feature_group_count=C, precision=jax.lax.Precision.HIGHEST)


def _conv2d(x, w, stride=1, pad=0):
    return jax.lax.conv_general_dilated(
        x, w, (stride, stride), [(pad, pad), (pad, pad)],
        dimension_numbers=('NCHW', 'OIHW', 'NCHW'),
        precision=jax.lax.Precision.HIGHEST)


def _bias_act(x, b, act, gain, clamp):
    if b is not None:
        x = x + b.reshape(1, -1, 1, 1)
    if act == "lrelu":
        x = jnp.where(x >= 0, x, LRELU_SLOPE * x)
    x = x * gain
    if clamp is not None:
        x = jnp.clip(x, -clamp, clamp)
    return x


def reference_forward(img, rp):
    g_rgb = 1.0 / math.sqrt(IMG_CH)
    g_conv = 1.0 / math.sqrt(TMP_CH * 9)
    g_skip = 1.0 / math.sqrt(TMP_CH)
    # fromrgb
    x = _conv2d(img, rp["wrgb"] * g_rgb)
    x = _bias_act(x, rp["brgb"], "lrelu", LRELU_GAIN, CONV_CLAMP)
    # skip (1x1, down=2, no bias, linear, gain sqrt(0.5))
    y = _depthwise_fir(x, pad=1, stride=2)
    y = _conv2d(y, rp["wskip"] * g_skip) * math.sqrt(0.5)
    # conv0 (3x3, lrelu)
    x = _conv2d(x, rp["w0"] * g_conv, pad=1)
    x = _bias_act(x, rp["b0"], "lrelu", LRELU_GAIN, CONV_CLAMP)
    # conv1 (3x3, down=2, lrelu, gain sqrt(0.5))
    x = _depthwise_fir(x, pad=2, stride=1)
    x = _conv2d(x, rp["w1"] * g_conv, stride=2)
    clamp1 = CONV_CLAMP * math.sqrt(0.5) if CONV_CLAMP is not None else None
    x = _bias_act(x, rp["b1"], "lrelu", LRELU_GAIN * math.sqrt(0.5), clamp1)
    return y + x


# ---------------------------- deterministic init ------------------------------
def init_raw_params(key):
    ks = jax.random.split(key, 7)
    rn = lambda k, s: jax.random.normal(k, s, jnp.float32)
    return {
        "wrgb": rn(ks[0], (TMP_CH, IMG_CH, 1, 1)),
        "brgb": 0.1 * rn(ks[1], (TMP_CH,)),
        "w0": rn(ks[2], (TMP_CH, TMP_CH, 3, 3)),
        "b0": 0.1 * rn(ks[3], (TMP_CH,)),
        "w1": rn(ks[4], (OUT_CH, TMP_CH, 3, 3)),
        "b1": 0.1 * rn(ks[5], (OUT_CH,)),
        "wskip": rn(ks[6], (OUT_CH, TMP_CH, 1, 1)),
    }


if __name__ == "__main__":
    key = jax.random.PRNGKey(0)
    k_par, k_img = jax.random.split(key)
    raw = init_raw_params(k_par)
    img = jax.random.normal(k_img, (BATCH, IMG_CH, RES, RES), jnp.float32)

    ops = prepare_operands(raw)
    fwd = jax.jit(discriminator_block_forward)
    x, img_out = fwd(img, ops)
    x = jax.block_until_ready(x)

    assert x.shape == (BATCH, OUT_CH, RES // 2, RES // 2), x.shape
    assert x.dtype == jnp.float32
    assert img_out is None
    assert bool(jnp.all(jnp.isfinite(x)))

    # Check against a pure-JAX/XLA (f32, HIGHEST precision) implementation.
    ref = reference_forward(img, raw)
    np.testing.assert_allclose(np.asarray(x), np.asarray(ref), rtol=5e-2, atol=5e-2)

    print("KERNEL_OK")
</pallas_src>

<mosaic_0001>
module attributes {stable_mosaic.version = 11 : i64} {
  func.func @disc_block_kernel(%arg0: i32, %arg1: memref<256x16xbf16, #tpu.memory_space<vmem>>, %arg2: memref<16x128xbf16, #tpu.memory_space<vmem>>, %arg3: memref<1x128xf32, #tpu.memory_space<vmem>>, %arg4: memref<9x128x128xbf16, #tpu.memory_space<vmem>>, %arg5: memref<1x128xf32, #tpu.memory_space<vmem>>, %arg6: memref<256x16xf32, #tpu.memory_space<vmem>>, %arg7: memref<64x256xbf16, #tpu.memory_space<vmem>>, %arg8: memref<128x128xbf16, #tpu.memory_space<vmem>>, %arg9: memref<9x64x256xbf16, #tpu.memory_space<vmem>>, %arg10: memref<9x128x128xbf16, #tpu.memory_space<vmem>>, %arg11: memref<1x128xf32, #tpu.memory_space<vmem>>, %arg12: memref<64x128xf32, #tpu.memory_space<vmem>>) attributes {dimension_semantics = [#tpu.dimension_semantics<arbitrary>], iteration_bounds = array<i64: 1>, scalar_prefetch = 0 : i64, scratch_operands = 0 : i64, tpu.core_type = #tpu.core_type<tc>, window_params = [{pipeline_mode = #tpu.pipeline_mode<synchronous>, transform_indices = @transform_0, window_bounds = array<i64: 256, 16>}, {pipeline_mode = #tpu.pipeline_mode<synchronous>, transform_indices = @transform_1, window_bounds = array<i64: 16, 128>}, {pipeline_mode = #tpu.pipeline_mode<synchronous>, transform_indices = @transform_2, window_bounds = array<i64: 1, 128>}, {pipeline_mode = #tpu.pipeline_mode<synchronous>, transform_indices = @transform_3, window_bounds = array<i64: 9, 128, 128>}, {pipeline_mode = #tpu.pipeline_mode<synchronous>, transform_indices = @transform_4, window_bounds = array<i64: 1, 128>}, {pipeline_mode = #tpu.pipeline_mode<synchronous>, transform_indices = @transform_5, window_bounds = array<i64: 256, 16>}, {pipeline_mode = #tpu.pipeline_mode<synchronous>, transform_indices = @transform_6, window_bounds = array<i64: 64, 256>}, {pipeline_mode = #tpu.pipeline_mode<synchronous>, transform_indices = @transform_7, window_bounds = array<i64: 128, 128>}, {pipeline_mode = #tpu.pipeline_mode<synchronous>, transform_indices = @transform_8, window_bounds = array<i64: 9, 64, 256>}, {pipeline_mode = #tpu.pipeline_mode<synchronous>, transform_indices = @transform_9, window_bounds = array<i64: 9, 128, 128>}, {pipeline_mode = #tpu.pipeline_mode<synchronous>, transform_indices = @transform_10, window_bounds = array<i64: 1, 128>}, {pipeline_mode = #tpu.pipeline_mode<synchronous>, transform_indices = @transform_11, window_bounds = array<i64: 64, 128>}]} {
    %c0 = arith.constant 0 : index
    %c0_0 = arith.constant 0 : index
    %0 = vector.load %arg1[%c0, %c0_0] : memref<256x16xbf16, #tpu.memory_space<vmem>>, vector<256x16xbf16>
    %c0_1 = arith.constant 0 : index
    %c0_2 = arith.constant 0 : index
    %1 = vector.load %arg2[%c0_1, %c0_2] : memref<16x128xbf16, #tpu.memory_space<vmem>>, vector<16x128xbf16>
    %cst = arith.constant dense<0.000000e+00> : vector<256x128xf32>
    %2 = tpu.matmul %0, %1, %cst {dimension_numbers = #tpu.dot_dimension_numbers<[1], [0], [0], [1], [0, 0, 1, 1], [], []>} : vector<256x16xbf16>, vector<16x128xbf16>, vector<256x128xf32> -> vector<256x128xf32>
    %c0_3 = arith.constant 0 : index
    %c0_4 = arith.constant 0 : index
    %3 = vector.load %arg3[%c0_3, %c0_4] : memref<1x128xf32, #tpu.memory_space<vmem>>, vector<1x128xf32>
    %4 = vector.broadcast %3 : vector<1x128xf32> to vector<256x128xf32>
    %5 = arith.addf %2, %4 : vector<256x128xf32>
    %cst_5 = arith.constant 2.000000e-01 : f32
    %6 = vector.broadcast %cst_5 : f32 to vector<256x128xf32>
    %7 = arith.mulf %6, %5 : vector<256x128xf32>
    %8 = arith.maximumf %5, %7 : vector<256x128xf32>
    %9 = arith.truncf %8 : vector<256x128xf32> to vector<256x128xbf16>
    %c4 = arith.constant 4 : index
    %c0_6 = arith.constant 0 : index
    %c0_7 = arith.constant 0 : index
    %10 = vector.load %arg4[%c4, %c0_6, %c0_7] : memref<9x128x128xbf16, #tpu.memory_space<vmem>>, vector<1x128x128xbf16>
    %11 = vector.shape_cast %10 : vector<1x128x128xbf16> to vector<128x128xbf16>
    %cst_8 = arith.constant dense<0.000000e+00> : vector<256x128xf32>
    %12 = tpu.matmul %9, %11, %cst_8 {dimension_numbers = #tpu.dot_dimension_numbers<[1], [0], [0], [1], [0, 0, 1, 1], [], []>} : vector<256x128xbf16>, vector<128x128xbf16>, vector<256x128xf32> -> vector<256x128xf32>
    %c0_9 = arith.constant 0 : index
    %c0_10 = arith.constant 0 : index
    %13 = vector.load %arg7[%c0_9, %c0_10] : memref<64x256xbf16, #tpu.memory_space<vmem>>, vector<64x256xbf16>
    %cst_11 = arith.constant dense<0.000000e+00> : vector<64x128xf32>
    %14 = tpu.matmul %13, %9, %cst_11 {dimension_numbers = #tpu.dot_dimension_numbers<[1], [0], [0], [1], [0, 0, 1, 1], [], []>} : vector<64x256xbf16>, vector<256x128xbf16>, vector<64x128xf32> -> vector<64x128xf32>
    %15 = arith.truncf %14 : vector<64x128xf32> to vector<64x128xbf16>
    %c0_12 = arith.constant 0 : index
    %c0_13 = arith.constant 0 : index
    %16 = vector.load %arg8[%c0_12, %c0_13] : memref<128x128xbf16, #tpu.memory_space<vmem>>, vector<128x128xbf16>
    %cst_14 = arith.constant dense<0.000000e+00> : vector<64x128xf32>
    %17 = tpu.matmul %15, %16, %cst_14 {dimension_numbers = #tpu.dot_dimension_numbers<[1], [0], [0], [1], [0, 0, 1, 1], [], []>} : vector<64x128xbf16>, vector<128x128xbf16>, vector<64x128xf32> -> vector<64x128xf32>
    %c0_15 = arith.constant 0 : index
    %c0_16 = arith.constant 0 : index
    %18 = vector.load %arg12[%c0_15, %c0_16] : memref<64x128xf32, #tpu.memory_space<vmem>>, vector<64x128xf32>
    tpu.vector_store %arg12[%c0_15, %c0_16], %17 {strides = array<i32>} : memref<64x128xf32, #tpu.memory_space<vmem>>, vector<64x128xf32>,
    %c17_i32 = arith.constant 17 : i32
    %19 = tpu.dynamic_rotate %8 by %c17_i32 dim 0 : vector<256x128xf32>, i32 -> vector<256x128xf32>
    %c0_17 = arith.constant 0 : index
    %c0_18 = arith.constant 0 : index
    %20 = vector.load %arg6[%c0_17, %c0_18] : memref<256x16xf32, #tpu.memory_space<vmem>>, vector<256x1xf32>
    %21 = vector.broadcast %20 : vector<256x1xf32> to vector<256x128xf32>
    %22 = arith.mulf %19, %21 : vector<256x128xf32>
    %23 = arith.truncf %22 : vector<256x128xf32> to vector<256x128xbf16>
    %c0_19 = arith.constant 0 : index
    %c0_20 = arith.constant 0 : index
    %c0_21 = arith.constant 0 : index
    %24 = vector.load %arg4[%c0_19, %c0_20, %c0_21] : memref<9x128x128xbf16, #tpu.memory_space<vmem>>, vector<1x128x128xbf16>
    %25 = vector.shape_cast %24 : vector<1x128x128xbf16> to vector<128x128xbf16>
    %cst_22 = arith.constant dense<0.000000e+00> : vector<256x128xf32>
    %26 = tpu.matmul %23, %25, %cst_22 {dimension_numbers = #tpu.dot_dimension_numbers<[1], [0], [0], [1], [0, 0, 1, 1], [], []>} : vector<256x128xbf16>, vector<128x128xbf16>, vector<256x128xf32> -> vector<256x128xf32>
    %27 = arith.addf %12, %26 : vector<256x128xf32>
    %c16_i32 = arith.constant 16 : i32
    %28 = tpu.dynamic_rotate %8 by %c16_i32 dim 0 : vector<256x128xf32>, i32 -> vector<256x128xf32>
    %c0_23 = arith.constant 0 : index
    %c1 = arith.constant 1 : index
    %29 = vector.load %arg6[%c0_23, %c1] : memref<256x16xf32, #tpu.memory_space<vmem>>, vector<256x1xf32>
    %30 = vector.broadcast %29 : vector<256x1xf32> to vector<256x128xf32>
    %31 = arith.mulf %28, %30 : vector<256x128xf32>
    %32 = arith.truncf %31 : vector<256x128xf32> to vector<256x128xbf16>
    %c1_24 = arith.constant 1 : index
    %c0_25 = arith.constant 0 : index
    %c0_26 = arith.constant 0 : index
    %33 = vector.load %arg4[%c1_24, %c0_25, %c0_26] : memref<9x128x128xbf16, #tpu.memory_space<vmem>>, vector<1x128x128xbf16>
    %34 = vector.shape_cast %33 : vector<1x128x128xbf16> to vector<128x128xbf16>
    %cst_27 = arith.constant dense<0.000000e+00> : vector<256x128xf32>
    %35 = tpu.matmul %32, %34, %cst_27 {dimension_numbers = #tpu.dot_dimension_numbers<[1], [0], [0], [1], [0, 0, 1, 1], [], []>} : vector<256x128xbf16>, vector<128x128xbf16>, vector<256x128xf32> -> vector<256x128xf32>
    %36 = arith.addf %27, %35 : vector<256x128xf32>
    %c15_i32 = arith.constant 15 : i32
    %37 = tpu.dynamic_rotate %8 by %c15_i32 dim 0 : vector<256x128xf32>, i32 -> vector<256x128xf32>
    %c0_28 = arith.constant 0 : index
    %c2 = arith.constant 2 : index
    %38 = vector.load %arg6[%c0_28, %c2] : memref<256x16xf32, #tpu.memory_space<vmem>>, vector<256x1xf32>
    %39 = vector.broadcast %38 : vector<256x1xf32> to vector<256x128xf32>
    %40 = arith.mulf %37, %39 : vector<256x128xf32>
    %41 = arith.truncf %40 : vector<256x128xf32> to vector<256x128xbf16>
    %c2_29 = arith.constant 2 : index
    %c0_30 = arith.constant 0 : index
    %c0_31 = arith.constant 0 : index
    %42 = vector.load %arg4[%c2_29, %c0_30, %c0_31] : memref<9x128x128xbf16, #tpu.memory_space<vmem>>, vector<1x128x128xbf16>
    %43 = vector.shape_cast %42 : vector<1x128x128xbf16> to vector<128x128xbf16>
    %cst_32 = arith.constant dense<0.000000e+00> : vector<256x128xf32>
    %44 = tpu.matmul %41, %43, %cst_32 {dimension_numbers = #tpu.dot_dimension_numbers<[1], [0], [0], [1], [0, 0, 1, 1], [], []>} : vector<256x128xbf16>, vector<128x128xbf16>, vector<256x128xf32> -> vector<256x128xf32>
    %45 = arith.addf %36, %44 : vector<256x128xf32>
    %c1_i32 = arith.constant 1 : i32
    %46 = tpu.dynamic_rotate %8 by %c1_i32 dim 0 : vector<256x128xf32>, i32 -> vector<256x128xf32>
    %c0_33 = arith.constant 0 : index
    %c3 = arith.constant 3 : index
    %47 = vector.load %arg6[%c0_33, %c3] : memref<256x16xf32, #tpu.memory_space<vmem>>, vector<256x1xf32>
    %48 = vector.broadcast %47 : vector<256x1xf32> to vector<256x128xf32>
    %49 = arith.mulf %46, %48 : vector<256x128xf32>
    %50 = arith.truncf %49 : vector<256x128xf32> to vector<256x128xbf16>
    %c3_34 = arith.constant 3 : index
    %c0_35 = arith.constant 0 : index
    %c0_36 = arith.constant 0 : index
    %51 = vector.load %arg4[%c3_34, %c0_35, %c0_36] : memref<9x128x128xbf16, #tpu.memory_space<vmem>>, vector<1x128x128xbf16>
    %52 = vector.shape_cast %51 : vector<1x128x128xbf16> to vector<128x128xbf16>
    %cst_37 = arith.constant dense<0.000000e+00> : vector<256x128xf32>
    %53 = tpu.matmul %50, %52, %cst_37 {dimension_numbers = #tpu.dot_dimension_numbers<[1], [0], [0], [1], [0, 0, 1, 1], [], []>} : vector<256x128xbf16>, vector<128x128xbf16>, vector<256x128xf32> -> vector<256x128xf32>
    %54 = arith.addf %45, %53 : vector<256x128xf32>
    %c255_i32 = arith.constant 255 : i32
    %55 = tpu.dynamic_rotate %8 by %c255_i32 dim 0 : vector<256x128xf32>, i32 -> vector<256x128xf32>
    %c0_38 = arith.constant 0 : index
    %c5 = arith.constant 5 : index
    %56 = vector.load %arg6[%c0_38, %c5] : memref<256x16xf32, #tpu.memory_space<vmem>>, vector<256x1xf32>
    %57 = vector.broadcast %56 : vector<256x1xf32> to vector<256x128xf32>
    %58 = arith.mulf %55, %57 : vector<256x128xf32>
    %59 = arith.truncf %58 : vector<256x128xf32> to vector<256x128xbf16>
    %c5_39 = arith.constant 5 : index
    %c0_40 = arith.constant 0 : index
    %c0_41 = arith.constant 0 : index
    %60 = vector.load %arg4[%c5_39, %c0_40, %c0_41] : memref<9x128x128xbf16, #tpu.memory_space<vmem>>, vector<1x128x128xbf16>
    %61 = vector.shape_cast %60 : vector<1x128x128xbf16> to vector<128x128xbf16>
    %cst_42 = arith.constant dense<0.000000e+00> : vector<256x128xf32>
    %62 = tpu.matmul %59, %61, %cst_42 {dimension_numbers = #tpu.dot_dimension_numbers<[1], [0], [0], [1], [0, 0, 1, 1], [], []>} : vector<256x128xbf16>, vector<128x128xbf16>, vector<256x128xf32> -> vector<256x128xf32>
    %63 = arith.addf %54, %62 : vector<256x128xf32>
    %c241_i32 = arith.constant 241 : i32
    %64 = tpu.dynamic_rotate %8 by %c241_i32 dim 0 : vector<256x128xf32>, i32 -> vector<256x128xf32>
    %c0_43 = arith.constant 0 : index
    %c6 = arith.constant 6 : index
    %65 = vector.load %arg6[%c0_43, %c6] : memref<256x16xf32, #tpu.memory_space<vmem>>, vector<256x1xf32>
    %66 = vector.broadcast %65 : vector<256x1xf32> to vector<256x128xf32>
    %67 = arith.mulf %64, %66 : vector<256x128xf32>
    %68 = arith.truncf %67 : vector<256x128xf32> to vector<256x128xbf16>
    %c6_44 = arith.constant 6 : index
    %c0_45 = arith.constant 0 : index
    %c0_46 = arith.constant 0 : index
    %69 = vector.load %arg4[%c6_44, %c0_45, %c0_46] : memref<9x128x128xbf16, #tpu.memory_space<vmem>>, vector<1x128x128xbf16>
    %70 = vector.shape_cast %69 : vector<1x128x128xbf16> to vector<128x128xbf16>
    %cst_47 = arith.constant dense<0.000000e+00> : vector<256x128xf32>
    %71 = tpu.matmul %68, %70, %cst_47 {dimension_numbers = #tpu.dot_dimension_numbers<[1], [0], [0], [1], [0, 0, 1, 1], [], []>} : vector<256x128xbf16>, vector<128x128xbf16>, vector<256x128xf32> -> vector<256x128xf32>
    %72 = arith.addf %63, %71 : vector<256x128xf32>
    %c240_i32 = arith.constant 240 : i32
    %73 = tpu.dynamic_rotate %8 by %c240_i32 dim 0 : vector<256x128xf32>, i32 -> vector<256x128xf32>
    %c0_48 = arith.constant 0 : index
    %c7 = arith.constant 7 : index
    %74 = vector.load %arg6[%c0_48, %c7] : memref<256x16xf32, #tpu.memory_space<vmem>>, vector<256x1xf32>
    %75 = vector.broadcast %74 : vector<256x1xf32> to vector<256x128xf32>
    %76 = arith.mulf %73, %75 : vector<256x128xf32>
    %77 = arith.truncf %76 : vector<256x128xf32> to vector<256x128xbf16>
    %c7_49 = arith.constant 7 : index
    %c0_50 = arith.constant 0 : index
    %c0_51 = arith.constant 0 : index
    %78 = vector.load %arg4[%c7_49, %c0_50, %c0_51] : memref<9x128x128xbf16, #tpu.memory_space<vmem>>, vector<1x128x128xbf16>
    %79 = vector.shape_cast %78 : vector<1x128x128xbf16> to vector<128x128xbf16>
    %cst_52 = arith.constant dense<0.000000e+00> : vector<256x128xf32>
    %80 = tpu.matmul %77, %79, %cst_52 {dimension_numbers = #tpu.dot_dimension_numbers<[1], [0], [0], [1], [0, 0, 1, 1], [], []>} : vector<256x128xbf16>, vector<128x128xbf16>, vector<256x128xf32> -> vector<256x128xf32>
    %81 = arith.addf %72, %80 : vector<256x128xf32>
    %c239_i32 = arith.constant 239 : i32
    %82 = tpu.dynamic_rotate %8 by %c239_i32 dim 0 : vector<256x128xf32>, i32 -> vector<256x128xf32>
    %c0_53 = arith.constant 0 : index
    %c8 = arith.constant 8 : index
    %83 = vector.load %arg6[%c0_53, %c8] : memref<256x16xf32, #tpu.memory_space<vmem>>, vector<256x1xf32>
    %84 = vector.broadcast %83 : vector<256x1xf32> to vector<256x128xf32>
    %85 = arith.mulf %82, %84 : vector<256x128xf32>
    %86 = arith.truncf %85 : vector<256x128xf32> to vector<256x128xbf16>
    %c8_54 = arith.constant 8 : index
    %c0_55 = arith.constant 0 : index
    %c0_56 = arith.constant 0 : index
    %87 = vector.load %arg4[%c8_54, %c0_55, %c0_56] : memref<9x128x128xbf16, #tpu.memory_space<vmem>>, vector<1x128x128xbf16>
    %88 = vector.shape_cast %87 : vector<1x128x128xbf16> to vector<128x128xbf16>
    %cst_57 = arith.constant dense<0.000000e+00> : vector<256x128xf32>
    %89 = tpu.matmul %86, %88, %cst_57 {dimension_numbers = #tpu.dot_dimension_numbers<[1], [0], [0], [1], [0, 0, 1, 1], [], []>} : vector<256x128xbf16>, vector<128x128xbf16>, vector<256x128xf32> -> vector<256x128xf32>
    %90 = arith.addf %81, %89 : vector<256x128xf32>
    %c0_58 = arith.constant 0 : index
    %c0_59 = arith.constant 0 : index
    %91 = vector.load %arg5[%c0_58, %c0_59] : memref<1x128xf32, #tpu.memory_space<vmem>>, vector<1x128xf32>
    %92 = vector.broadcast %91 : vector<1x128xf32> to vector<256x128xf32>
    %93 = arith.addf %90, %92 : vector<256x128xf32>
    %cst_60 = arith.constant 2.000000e-01 : f32
    %94 = vector.broadcast %cst_60 : f32 to vector<256x128xf32>
    %95 = arith.mulf %94, %93 : vector<256x128xf32>
    %96 = arith.maximumf %93, %95 : vector<256x128xf32>
    %97 = arith.truncf %96 : vector<256x128xf32> to vector<256x128xbf16>
    %c0_61 = arith.constant 0 : index
    %c0_62 = arith.constant 0 : index
    %c0_63 = arith.constant 0 : index
    %98 = vector.load %arg9[%c0_61, %c0_62, %c0_63] : memref<9x64x256xbf16, #tpu.memory_space<vmem>>, vector<1x64x256xbf16>
    %99 = vector.shape_cast %98 : vector<1x64x256xbf16> to vector<64x256xbf16>
    %cst_64 = arith.constant dense<0.000000e+00> : vector<64x128xf32>
    %100 = tpu.matmul %99, %97, %cst_64 {dimension_numbers = #tpu.dot_dimension_numbers<[1], [0], [0], [1], [0, 0, 1, 1], [], []>} : vector<64x256xbf16>, vector<256x128xbf16>, vector<64x128xf32> -> vector<64x128xf32>
    %101 = arith.truncf %100 : vector<64x128xf32> to vector<64x128xbf16>
    %c0_65 = arith.constant 0 : index
    %c0_66 = arith.constant 0 : index
    %c0_67 = arith.constant 0 : index
    %102 = vector.load %arg10[%c0_65, %c0_66, %c0_67] : memref<9x128x128xbf16, #tpu.memory_space<vmem>>, vector<1x128x128xbf16>
    %103 = vector.shape_cast %102 : vector<1x128x128xbf16> to vector<128x128xbf16>
    %cst_68 = arith.constant dense<0.000000e+00> : vector<64x128xf32>
    %104 = tpu.matmul %101, %103, %cst_68 {dimension_numbers = #tpu.dot_dimension_numbers<[1], [0], [0], [1], [0, 0, 1, 1], [], []>} : vector<64x128xbf16>, vector<128x128xbf16>, vector<64x128xf32> -> vector<64x128xf32>
    %c1_69 = arith.constant 1 : index
    %c0_70 = arith.constant 0 : index
    %c0_71 = arith.constant 0 : index
    %105 = vector.load %arg9[%c1_69, %c0_70, %c0_71] : memref<9x64x256xbf16, #tpu.memory_space<vmem>>, vector<1x64x256xbf16>
    %106 = vector.shape_cast %105 : vector<1x64x256xbf16> to vector<64x256xbf16>
    %cst_72 = arith.constant dense<0.000000e+00> : vector<64x128xf32>
    %107 = tpu.matmul %106, %97, %cst_72 {dimension_numbers = #tpu.dot_dimension_numbers<[1], [0], [0], [1], [0, 0, 1, 1], [], []>} : vector<64x256xbf16>, vector<256x128xbf16>, vector<64x128xf32> -> vector<64x128xf32>
    %108 = arith.truncf %107 : vector<64x128xf32> to vector<64x128xbf16>
    %c1_73 = arith.constant 1 : index
    %c0_74 = arith.constant 0 : index
    %c0_75 = arith.constant 0 : index
    %109 = vector.load %arg10[%c1_73, %c0_74, %c0_75] : memref<9x128x128xbf16, #tpu.memory_space<vmem>>, vector<1x128x128xbf16>
    %110 = vector.shape_cast %109 : vector<1x128x128xbf16> to vector<128x128xbf16>
    %cst_76 = arith.constant dense<0.000000e+00> : vector<64x128xf32>
    %111 = tpu.matmul %108, %110, %cst_76 {dimension_numbers = #tpu.dot_dimension_numbers<[1], [0], [0], [1], [0, 0, 1, 1], [], []>} : vector<64x128xbf16>, vector<128x128xbf16>, vector<64x128xf32> -> vector<64x128xf32>
    %112 = arith.addf %104, %111 : vector<64x128xf32>
    %c2_77 = arith.constant 2 : index
    %c0_78 = arith.constant 0 : index
    %c0_79 = arith.constant 0 : index
    %113 = vector.load %arg9[%c2_77, %c0_78, %c0_79] : memref<9x64x256xbf16, #tpu.memory_space<vmem>>, vector<1x64x256xbf16>
    %114 = vector.shape_cast %113 : vector<1x64x256xbf16> to vector<64x256xbf16>
    %cst_80 = arith.constant dense<0.000000e+00> : vector<64x128xf32>
    %115 = tpu.matmul %114, %97, %cst_80 {dimension_numbers = #tpu.dot_dimension_numbers<[1], [0], [0], [1], [0, 0, 1, 1], [], []>} : vector<64x256xbf16>, vector<256x128xbf16>, vector<64x128xf32> -> vector<64x128xf32>
    %116 = arith.truncf %115 : vector<64x128xf32> to vector<64x128xbf16>
    %c2_81 = arith.constant 2 : index
    %c0_82 = arith.constant 0 : index
    %c0_83 = arith.constant 0 : index
    %117 = vector.load %arg10[%c2_81, %c0_82, %c0_83] : memref<9x128x128xbf16, #tpu.memory_space<vmem>>, vector<1x128x128xbf16>
    %118 = vector.shape_cast %117 : vector<1x128x128xbf16> to vector<128x128xbf16>
    %cst_84 = arith.constant dense<0.000000e+00> : vector<64x128xf32>
    %119 = tpu.matmul %116, %118, %cst_84 {dimension_numbers = #tpu.dot_dimension_numbers<[1], [0], [0], [1], [0, 0, 1, 1], [], []>} : vector<64x128xbf16>, vector<128x128xbf16>, vector<64x128xf32> -> vector<64x128xf32>
    %120 = arith.addf %112, %119 : vector<64x128xf32>
    %c3_85 = arith.constant 3 : index
    %c0_86 = arith.constant 0 : index
    %c0_87 = arith.constant 0 : index
    %121 = vector.load %arg9[%c3_85, %c0_86, %c0_87] : memref<9x64x256xbf16, #tpu.memory_space<vmem>>, vector<1x64x256xbf16>
    %122 = vector.shape_cast %121 : vector<1x64x256xbf16> to vector<64x256xbf16>
    %cst_88 = arith.constant dense<0.000000e+00> : vector<64x128xf32>
    %123 = tpu.matmul %122, %97, %cst_88 {dimension_numbers = #tpu.dot_dimension_numbers<[1], [0], [0], [1], [0, 0, 1, 1], [], []>} : vector<64x256xbf16>, vector<256x128xbf16>, vector<64x128xf32> -> vector<64x128xf32>
    %124 = arith.truncf %123 : vector<64x128xf32> to vector<64x128xbf16>
    %c3_89 = arith.constant 3 : index
    %c0_90 = arith.constant 0 : index
    %c0_91 = arith.constant 0 : index
    %125 = vector.load %arg10[%c3_89, %c0_90, %c0_91] : memref<9x128x128xbf16, #tpu.memory_space<vmem>>, vector<1x128x128xbf16>
    %126 = vector.shape_cast %125 : vector<1x128x128xbf16> to vector<128x128xbf16>
    %cst_92 = arith.constant dense<0.000000e+00> : vector<64x128xf32>
    %127 = tpu.matmul %124, %126, %cst_92 {dimension_numbers = #tpu.dot_dimension_numbers<[1], [0], [0], [1], [0, 0, 1, 1], [], []>} : vector<64x128xbf16>, vector<128x128xbf16>, vector<64x128xf32> -> vector<64x128xf32>
    %128 = arith.addf %120, %127 : vector<64x128xf32>
    %c4_93 = arith.constant 4 : index
    %c0_94 = arith.constant 0 : index
    %c0_95 = arith.constant 0 : index
    %129 = vector.load %arg9[%c4_93, %c0_94, %c0_95] : memref<9x64x256xbf16, #tpu.memory_space<vmem>>, vector<1x64x256xbf16>
    %130 = vector.shape_cast %129 : vector<1x64x256xbf16> to vector<64x256xbf16>
    %cst_96 = arith.constant dense<0.000000e+00> : vector<64x128xf32>
    %131 = tpu.matmul %130, %97, %cst_96 {dimension_numbers = #tpu.dot_dimension_numbers<[1], [0], [0], [1], [0, 0, 1, 1], [], []>} : vector<64x256xbf16>, vector<256x128xbf16>, vector<64x128xf32> -> vector<64x128xf32>
    %132 = arith.truncf %131 : vector<64x128xf32> to vector<64x128xbf16>
    %c4_97 = arith.constant 4 : index
    %c0_98 = arith.constant 0 : index
    %c0_99 = arith.constant 0 : index
    %133 = vector.load %arg10[%c4_97, %c0_98, %c0_99] : memref<9x128x128xbf16, #tpu.memory_space<vmem>>, vector<1x128x128xbf16>
    %134 = vector.shape_cast %133 : vector<1x128x128xbf16> to vector<128x128xbf16>
    %cst_100 = arith.constant dense<0.000000e+00> : vector<64x128xf32>
    %135 = tpu.matmul %132, %134, %cst_100 {dimension_numbers = #tpu.dot_dimension_numbers<[1], [0], [0], [1], [0, 0, 1, 1], [], []>} : vector<64x128xbf16>, vector<128x128xbf16>, vector<64x128xf32> -> vector<64x128xf32>
    %136 = arith.addf %128, %135 : vector<64x128xf32>
    %c5_101 = arith.constant 5 : index
    %c0_102 = arith.constant 0 : index
    %c0_103 = arith.constant 0 : index
    %137 = vector.load %arg9[%c5_101, %c0_102, %c0_103] : memref<9x64x256xbf16, #tpu.memory_space<vmem>>, vector<1x64x256xbf16>
    %138 = vector.shape_cast %137 : vector<1x64x256xbf16> to vector<64x256xbf16>
    %cst_104 = arith.constant dense<0.000000e+00> : vector<64x128xf32>
    %139 = tpu.matmul %138, %97, %cst_104 {dimension_numbers = #tpu.dot_dimension_numbers<[1], [0], [0], [1], [0, 0, 1, 1], [], []>} : vector<64x256xbf16>, vector<256x128xbf16>, vector<64x128xf32> -> vector<64x128xf32>
    %140 = arith.truncf %139 : vector<64x128xf32> to vector<64x128xbf16>
    %c5_105 = arith.constant 5 : index
    %c0_106 = arith.constant 0 : index
    %c0_107 = arith.constant 0 : index
    %141 = vector.load %arg10[%c5_105, %c0_106, %c0_107] : memref<9x128x128xbf16, #tpu.memory_space<vmem>>, vector<1x128x128xbf16>
    %142 = vector.shape_cast %141 : vector<1x128x128xbf16> to vector<128x128xbf16>
    %cst_108 = arith.constant dense<0.000000e+00> : vector<64x128xf32>
    %143 = tpu.matmul %140, %142, %cst_108 {dimension_numbers = #tpu.dot_dimension_numbers<[1], [0], [0], [1], [0, 0, 1, 1], [], []>} : vector<64x128xbf16>, vector<128x128xbf16>, vector<64x128xf32> -> vector<64x128xf32>
    %144 = arith.addf %136, %143 : vector<64x128xf32>
    %c6_109 = arith.constant 6 : index
    %c0_110 = arith.constant 0 : index
    %c0_111 = arith.constant 0 : index
    %145 = vector.load %arg9[%c6_109, %c0_110, %c0_111] : memref<9x64x256xbf16, #tpu.memory_space<vmem>>, vector<1x64x256xbf16>
    %146 = vector.shape_cast %145 : vector<1x64x256xbf16> to vector<64x256xbf16>
    %cst_112 = arith.constant dense<0.000000e+00> : vector<64x128xf32>
    %147 = tpu.matmul %146, %97, %cst_112 {dimension_numbers = #tpu.dot_dimension_numbers<[1], [0], [0], [1], [0, 0, 1, 1], [], []>} : vector<64x256xbf16>, vector<256x128xbf16>, vector<64x128xf32> -> vector<64x128xf32>
    %148 = arith.truncf %147 : vector<64x128xf32> to vector<64x128xbf16>
    %c6_113 = arith.constant 6 : index
    %c0_114 = arith.constant 0 : index
    %c0_115 = arith.constant 0 : index
    %149 = vector.load %arg10[%c6_113, %c0_114, %c0_115] : memref<9x128x128xbf16, #tpu.memory_space<vmem>>, vector<1x128x128xbf16>
    %150 = vector.shape_cast %149 : vector<1x128x128xbf16> to vector<128x128xbf16>
    %cst_116 = arith.constant dense<0.000000e+00> : vector<64x128xf32>
    %151 = tpu.matmul %148, %150, %cst_116 {dimension_numbers = #tpu.dot_dimension_numbers<[1], [0], [0], [1], [0, 0, 1, 1], [], []>} : vector<64x128xbf16>, vector<128x128xbf16>, vector<64x128xf32> -> vector<64x128xf32>
    %152 = arith.addf %144, %151 : vector<64x128xf32>
    %c7_117 = arith.constant 7 : index
    %c0_118 = arith.constant 0 : index
    %c0_119 = arith.constant 0 : index
    %153 = vector.load %arg9[%c7_117, %c0_118, %c0_119] : memref<9x64x256xbf16, #tpu.memory_space<vmem>>, vector<1x64x256xbf16>
    %154 = vector.shape_cast %153 : vector<1x64x256xbf16> to vector<64x256xbf16>
    %cst_120 = arith.constant dense<0.000000e+00> : vector<64x128xf32>
    %155 = tpu.matmul %154, %97, %cst_120 {dimension_numbers = #tpu.dot_dimension_numbers<[1], [0], [0], [1], [0, 0, 1, 1], [], []>} : vector<64x256xbf16>, vector<256x128xbf16>, vector<64x128xf32> -> vector<64x128xf32>
    %156 = arith.truncf %155 : vector<64x128xf32> to vector<64x128xbf16>
    %c7_121 = arith.constant 7 : index
    %c0_122 = arith.constant 0 : index
    %c0_123 = arith.constant 0 : index
    %157 = vector.load %arg10[%c7_121, %c0_122, %c0_123] : memref<9x128x128xbf16, #tpu.memory_space<vmem>>, vector<1x128x128xbf16>
    %158 = vector.shape_cast %157 : vector<1x128x128xbf16> to vector<128x128xbf16>
    %cst_124 = arith.constant dense<0.000000e+00> : vector<64x128xf32>
    %159 = tpu.matmul %156, %158, %cst_124 {dimension_numbers = #tpu.dot_dimension_numbers<[1], [0], [0], [1], [0, 0, 1, 1], [], []>} : vector<64x128xbf16>, vector<128x128xbf16>, vector<64x128xf32> -> vector<64x128xf32>
    %160 = arith.addf %152, %159 : vector<64x128xf32>
    %c8_125 = arith.constant 8 : index
    %c0_126 = arith.constant 0 : index
    %c0_127 = arith.constant 0 : index
    %161 = vector.load %arg9[%c8_125, %c0_126, %c0_127] : memref<9x64x256xbf16, #tpu.memory_space<vmem>>, vector<1x64x256xbf16>
    %162 = vector.shape_cast %161 : vector<1x64x256xbf16> to vector<64x256xbf16>
    %cst_128 = arith.constant dense<0.000000e+00> : vector<64x128xf32>
    %163 = tpu.matmul %162, %97, %cst_128 {dimension_numbers = #tpu.dot_dimension_numbers<[1], [0], [0], [1], [0, 0, 1, 1], [], []>} : vector<64x256xbf16>, vector<256x128xbf16>, vector<64x128xf32> -> vector<64x128xf32>
    %164 = arith.truncf %163 : vector<64x128xf32> to vector<64x128xbf16>
    %c8_129 = arith.constant 8 : index
    %c0_130 = arith.constant 0 : index
    %c0_131 = arith.constant 0 : index
    %165 = vector.load %arg10[%c8_129, %c0_130, %c0_131] : memref<9x128x128xbf16, #tpu.memory_space<vmem>>, vector<1x128x128xbf16>
    %166 = vector.shape_cast %165 : vector<1x128x128xbf16> to vector<128x128xbf16>
    %cst_132 = arith.constant dense<0.000000e+00> : vector<64x128xf32>
    %167 = tpu.matmul %164, %166, %cst_132 {dimension_numbers = #tpu.dot_dimension_numbers<[1], [0], [0], [1], [0, 0, 1, 1], [], []>} : vector<64x128xbf16>, vector<128x128xbf16>, vector<64x128xf32> -> vector<64x128xf32>
    %168 = arith.addf %160, %167 : vector<64x128xf32>
    %c0_133 = arith.constant 0 : index
    %c0_134 = arith.constant 0 : index
    %169 = vector.load %arg11[%c0_133, %c0_134] : memref<1x128xf32, #tpu.memory_space<vmem>>, vector<1x128xf32>
    %170 = vector.broadcast %169 : vector<1x128xf32> to vector<64x128xf32>
    %171 = arith.addf %168, %170 : vector<64x128xf32>
    %cst_135 = arith.constant 2.000000e-01 : f32
    %172 = vector.broadcast %cst_135 : f32 to vector<64x128xf32>
    %173 = arith.mulf %172, %171 : vector<64x128xf32>
    %174 = arith.maximumf %171, %173 : vector<64x128xf32>
    %c0_136 = arith.constant 0 : index
    %c0_137 = arith.constant 0 : index
    %175 = vector.load %arg12[%c0_136, %c0_137] : memref<64x128xf32, #tpu.memory_space<vmem>>, vector<64x128xf32>
    %176 = arith.addf %175, %174 : vector<64x128xf32>
    %c0_138 = arith.constant 0 : index
    %c0_139 = arith.constant 0 : index
    %177 = vector.load %arg12[%c0_138, %c0_139] : memref<64x128xf32, #tpu.memory_space<vmem>>, vector<64x128xf32>
    tpu.vector_store %arg12[%c0_138, %c0_139], %176 {strides = array<i32>} : memref<64x128xf32, #tpu.memory_space<vmem>>, vector<64x128xf32>,
    return
  }
  func.func @transform_0(%arg0: i32) -> (i32, i32) {
    %c0_i32 = arith.constant 0 : i32
    %c0_i32_0 = arith.constant 0 : i32
    %c0_i32_1 = arith.constant 0 : i32
    return %c0_i32, %c0_i32_0 : i32, i32
  }
  func.func @transform_1(%arg0: i32) -> (i32, i32) {
    %c0_i32 = arith.constant 0 : i32
    %c0_i32_0 = arith.constant 0 : i32
    %c0_i32_1 = arith.constant 0 : i32
    return %c0_i32, %c0_i32_0 : i32, i32
  }
  func.func @transform_2(%arg0: i32) -> (i32, i32) {
    %c0_i32 = arith.constant 0 : i32
    %c0_i32_0 = arith.constant 0 : i32
    %c0_i32_1 = arith.constant 0 : i32
    return %c0_i32, %c0_i32_0 : i32, i32
  }
  func.func @transform_3(%arg0: i32) -> (i32, i32, i32) {
    %c0_i32 = arith.constant 0 : i32
    %c0_i32_0 = arith.constant 0 : i32
    %c0_i32_1 = arith.constant 0 : i32
    %c0_i32_2 = arith.constant 0 : i32
    return %c0_i32, %c0_i32_0, %c0_i32_1 : i32, i32, i32
  }
  func.func @transform_4(%arg0: i32) -> (i32, i32) {
    %c0_i32 = arith.constant 0 : i32
    %c0_i32_0 = arith.constant 0 : i32
    %c0_i32_1 = arith.constant 0 : i32
    return %c0_i32, %c0_i32_0 : i32, i32
  }
  func.func @transform_5(%arg0: i32) -> (i32, i32) {
    %c0_i32 = arith.constant 0 : i32
    %c0_i32_0 = arith.constant 0 : i32
    %c0_i32_1 = arith.constant 0 : i32
    return %c0_i32, %c0_i32_0 : i32, i32
  }
  func.func @transform_6(%arg0: i32) -> (i32, i32) {
    %c0_i32 = arith.constant 0 : i32
    %c0_i32_0 = arith.constant 0 : i32
    %c0_i32_1 = arith.constant 0 : i32
    return %c0_i32, %c0_i32_0 : i32, i32
  }
  func.func @transform_7(%arg0: i32) -> (i32, i32) {
    %c0_i32 = arith.constant 0 : i32
    %c0_i32_0 = arith.constant 0 : i32
    %c0_i32_1 = arith.constant 0 : i32
    return %c0_i32, %c0_i32_0 : i32, i32
  }
  func.func @transform_8(%arg0: i32) -> (i32, i32, i32) {
    %c0_i32 = arith.constant 0 : i32
    %c0_i32_0 = arith.constant 0 : i32
    %c0_i32_1 = arith.constant 0 : i32
    %c0_i32_2 = arith.constant 0 : i32
    return %c0_i32, %c0_i32_0, %c0_i32_1 : i32, i32, i32
  }
  func.func @transform_9(%arg0: i32) -> (i32, i32, i32) {
    %c0_i32 = arith.constant 0 : i32
    %c0_i32_0 = arith.constant 0 : i32
    %c0_i32_1 = arith.constant 0 : i32
    %c0_i32_2 = arith.constant 0 : i32
    return %c0_i32, %c0_i32_0, %c0_i32_1 : i32, i32, i32
  }
  func.func @transform_10(%arg0: i32) -> (i32, i32) {
    %c0_i32 = arith.constant 0 : i32
    %c0_i32_0 = arith.constant 0 : i32
    %c0_i32_1 = arith.constant 0 : i32
    return %c0_i32, %c0_i32_0 : i32, i32
  }
  func.func @transform_11(%arg0: i32) -> (i32, i32) {
    %c0_i32 = arith.constant 0 : i32
    %c0_i32_0 = arith.constant 0 : i32
    %c0_i32_1 = arith.constant 0 : i32
    return %c0_i32, %c0_i32_0 : i32, i32
  }
}

</mosaic_0001>

<bundles_post_ra>
// kernel: discriminator_block_forward.1
= control target key start
LH: loop header
LB: loop body
LE: loop exit
PB: predicated region body
PF: predicated region fallthrough
CT: control target
= control target key end

     0   :  { %16 = vsyncpa [#allocation3], 0  ;;  %s12701_s0 = inlined_call_operand.vmem [shape: bf16[256,16], index: 0, kind: input, shape index: {}]   ;;  %s12702_s1 = inlined_call_operand.vmem [shape: bf16[16,128], index: 1, kind: input, shape index: {}]   ;;  %s12703_s2 = inlined_call_operand.vmem [shape: f32[1,128], index: 2, kind: input, shape index: {}]   ;;  %s12704_s3 = inlined_call_operand.vmem [shape: bf16[9,128,128], index: 3, kind: input, shape index: {}]   ;;  %s12705_s4 = inlined_call_operand.vmem [shape: f32[1,128], index: 4, kind: input, shape index: {}]   ;;  %s12706_s5 = inlined_call_operand.vmem [shape: f32[256,16], index: 5, kind: input, shape index: {}]   ;;  %s12707_s6 = inlined_call_operand.vmem [shape: bf16[64,256], index: 6, kind: input, shape index: {}]   ;;  %s12708_s7 = inlined_call_operand.vmem [shape: bf16[128,128], index: 7, kind: input, shape index: {}]   ;;  %s12709_s8 = inlined_call_operand.hbm [shape: bf16[9,64,256], index: 8, kind: input, shape index: {}]   ;;  %s12710_s9 = inlined_call_operand.hbm [shape: bf16[9,128,128], index: 9, kind: input, shape index: {}]   ;;  %s12711_s10 = inlined_call_operand.vmem [shape: f32[1,128], index: 10, kind: input, shape index: {}]   ;;  %s12712_s11 = inlined_call_operand.vmem [shape: f32[64,128], index: 11, kind: output, shape index: {}]  }
   0x1   :  { %17 = vsyncpa [#allocation5], 0  ;;  %s9687_s17 = smov [#allocation2]   ;;  %s9639_s21 = scalar_lea.hbm %s12709_s8, 9216 }
   0x2   :  { %s39_s18 = sshll.u32 %s9687_s17, 4  ;;  %p9640_p0 = scmp.ne.s32.totalorder %s12709_s8, %s9639_s21  ;;  %s40_s18 = int_to_ptr.vmem [resolvable:$true] %s39_s18 }
   0x3   :  { %p9643_p1 = scmp.lt.u32.totalorder %s9639_s21, %s12709_s8 }
   0x5   :  { %p9645_p2 = pnand %p9643_p1, %p9640_p0 }
   0x7   :  { %9648 = shalt.err (!%p9645_p2)
}
   0x8   :  { %s9649_s26 = scalar_lea.vmem %s40_s18, 9216  ;;  %p9654_p4 = scmp.lt.s32.totalorder %s40_s18, %s40_s18 }
   0x9   :  { %p9650_p3 = scmp.ne.s32.totalorder %s40_s18, %s9649_s26  ;;  %p9655_p5 = scmp.lt.s32.totalorder %s9649_s26, %s9649_s26 }
   0xb   :  { %p9656_p6 = por %p9655_p5, %p9654_p4 }
   0xd   :  { %p9657_p7 = pnand %p9656_p6, %p9650_p3 }
   0xf   :  { %9660 = shalt.err (!%p9657_p7)
}
  0x10   :  { %s9688_s27 = smov 128   ;;  %s9689_s28 = smov 8  }
  0x11   :  { %45 = dma.hbm_to_vmem [thread:$0]  %s12709_s8, 9216, %s40_s18, [#allocation3], %s9688_s27, %s9688_s27, %s9689_s28  }
  0x12   :  { %s9690_s12 = smov [#allocation4]   ;;  %s9661_s16 = scalar_lea.hbm %s12710_s9, 9216 }
  0x13   :  { %s51_s13 = sshll.u32 %s9690_s12, 4  ;;  %p9662_p8 = scmp.ne.s32.totalorder %s12710_s9, %s9661_s16  ;;  %s52_s13 = int_to_ptr.vmem [resolvable:$true] %s51_s13 }
  0x14   :  { %p9665_p9 = scmp.lt.u32.totalorder %s9661_s16, %s12710_s9 }
  0x16   :  { %p9667_p10 = pnand %p9665_p9, %p9662_p8 }
  0x18   :  { %9670 = shalt.err (!%p9667_p10)
}
  0x19   :  { %s9671_s22 = scalar_lea.vmem %s52_s13, 9216  ;;  %p9676_p12 = scmp.lt.s32.totalorder %s52_s13, %s52_s13 }
  0x1a   :  { %p9672_p11 = scmp.ne.s32.totalorder %s52_s13, %s9671_s22  ;;  %p9677_p13 = scmp.lt.s32.totalorder %s9671_s22, %s9671_s22 }
  0x1c   :  { %p9678_p0 = por %p9677_p13, %p9676_p12 }
  0x1e   :  { %p9679_p1 = pnand %p9678_p0, %p9672_p11 }
  0x20   :  { %9682 = shalt.err (!%p9679_p1)
}
  0x21   :  { %s9691_s8 = smov 64   ;;  %s9692_s18 = smov 4  }
  0x22   :  { %57 = dma.hbm_to_vmem [thread:$0]  %s12710_s9, 9216, %s52_s13, [#allocation5], %s9691_s8, %s9691_s8, %s9692_s18  }
  0x23   :  { %9683 = dma.done.wait [#allocation3], 9216  }
  0x24   :  { %9684 = vsyncadd [#allocation3], 4294958080 }
  0x25   :  { %9685 = dma.done.wait [#allocation5], 9216  }
  0x26   :  { %9686 = vsyncadd [#allocation5], 4294958080  ;;  %v9693_v0 = vmov 0   ;;  %v9788_v1 = vld [vmem:[%s12706_s5 + $0x10] sm:$0xff]  ;;  %v9793_v2 = vld [vmem:[%s12706_s5] sm:$0xff]  ;;  %vm194_vm0 = vcmask 130048  }
  0x27   :  { %9271 = vset.pattern.permute.xlu1 %v9693_v0  ;;  %9270 = vset.pattern.permute.xlu0 %v9693_v0  ;;  %v9286_v3 = vld [vmem:[%s12702_s1] sm:$0xff]   ;;  %v9803_v4 = vld [vmem:[%s12706_s5 + $0x18] sm:$0xff]  ;;  %v9808_v5 = vld [vmem:[%s12706_s5 + $0x8] sm:$0xff]  ;;  %v9694_v50 = vmov 1   ;;  %v9695_v57 = vmov 2  }
  0x28   :  { %866 = vperm.xlu1 %9271, %v9788_v1   ;;  %856 = vperm.xlu0 %9270, %v9793_v2   ;;  %v9287_v6 = vld [vmem:[%s12701_s0] sm:$0xff]   ;;  %v9288_v7 = vld [vmem:[%s12701_s0 + $0x8] sm:$0xff]   ;;  %v9289_v10 = vld [vmem:[%s12701_s0 + $0x10] sm:$0xff]  }
  0x29   :  { %8214 = vmatprep.subr.bf16.mxu0 %v9286_v3  ;;  %v9821_v8 = vld [vmem:[%s12706_s5 + $0x28] sm:$0xff]  ;;  %v9826_v9 = vld [vmem:[%s12706_s5 + $0x20] sm:$0xff]  ;;  %8216 = vmatprep.mubr.msk.bf16.mxu0 %vm194_vm0, %v9287_v6  ;;  %v9839_v11 = vld [vmem:[%s12706_s5 + $0x38] sm:$0xff] }
  0x2a   :  { %8215 = vmatpush3.bf16.msra.mxu0 %v9286_v3  ;;  %v9844_v12 = vld [vmem:[%s12706_s5 + $0x30] sm:$0xff]  ;;  %v9290_v13 = vld [vmem:[%s12701_s0 + $0x18] sm:$0xff]   ;;  %v9291_v14 = vld [vmem:[%s12701_s0 + $0x20] sm:$0xff]  }
  0x2b   :  { %v9857_v15 = vld [vmem:[%s12706_s5 + $0x48] sm:$0xff]  ;;  %v9862_v16 = vld [vmem:[%s12706_s5 + $0x40] sm:$0xff]  ;;  %v9871_v17 = vld [vmem:[%s12706_s5 + $0x58] sm:$0xff] }
  0x2c   :  { %871 = vperm.xlu1 %9271, %v9803_v4   ;;  %861 = vperm.xlu0 %9270, %v9808_v5   ;;  %v9876_v18 = vld [vmem:[%s12706_s5 + $0x50] sm:$0xff]  ;;  %v9292_v19 = vld [vmem:[%s12701_s0 + $0x28] sm:$0xff]   ;;  %v9894_v22 = vld [vmem:[%s12706_s5 + $0x60] sm:$0xff] }
  0x2d   :  { %8217 = vmatmul.mubr.msk.bf16.vlgmr.msra.gmra.mrb[0].mxu0 %vm194_vm0, %v9288_v7  ;;  %v9293_v20 = vld [vmem:[%s12701_s0 + $0x30] sm:$0xff]   ;;  %v9889_v21 = vld [vmem:[%s12706_s5 + $0x68] sm:$0xff]  ;;  %v9903_v23 = vld [vmem:[%s12706_s5 + $0x78] sm:$0xff] }
  0x2e   :  { %8220 = vmatprep.mubr.msk.bf16.mxu0 %vm194_vm0, %v9289_v10  ;;  %v9908_v24 = vld [vmem:[%s12706_s5 + $0x70] sm:$0xff]  ;;  %v9294_v25 = vld [vmem:[%s12701_s0 + $0x38] sm:$0xff]   ;;  %v9295_v26 = vld [vmem:[%s12701_s0 + $0x40] sm:$0xff]  }
  0x2f   :  { %v9919_v27 = vld [vmem:[%s12706_s5 + $0x88] sm:$0xff]  ;;  %v9924_v28 = vld [vmem:[%s12706_s5 + $0x80] sm:$0xff]  ;;  %v9932_v29 = vld [vmem:[%s12706_s5 + $0x98] sm:$0xff] }
  0x30   :  { %881 = vperm.xlu1 %9271, %v9821_v8   ;;  %876 = vperm.xlu0 %9270, %v9826_v9   ;;  %v9937_v30 = vld [vmem:[%s12706_s5 + $0x90] sm:$0xff]  ;;  %v9296_v31 = vld [vmem:[%s12701_s0 + $0x48] sm:$0xff]   ;;  %v9956_v34 = vld [vmem:[%s12706_s5 + $0xa0] sm:$0xff] }
  0x31   :  { %v9297_v32 = vld [vmem:[%s12701_s0 + $0x50] sm:$0xff]   ;;  %v9951_v33 = vld [vmem:[%s12706_s5 + $0xa8] sm:$0xff]  ;;  %v9964_v35 = vld [vmem:[%s12706_s5 + $0xb8] sm:$0xff] }
  0x32   :  { %v9969_v36 = vld [vmem:[%s12706_s5 + $0xb0] sm:$0xff]  ;;  %v9298_v37 = vld [vmem:[%s12701_s0 + $0x58] sm:$0xff]   ;;  %v9299_v38 = vld [vmem:[%s12701_s0 + $0x60] sm:$0xff]  }
  0x33   :  { %v9983_v39 = vld [vmem:[%s12706_s5 + $0xc8] sm:$0xff]  ;;  %v9988_v40 = vld [vmem:[%s12706_s5 + $0xc0] sm:$0xff]  ;;  %v9996_v41 = vld [vmem:[%s12706_s5 + $0xd8] sm:$0xff] }
  0x34   :  { %891 = vperm.xlu1 %9271, %v9839_v11   ;;  %886 = vperm.xlu0 %9270, %v9844_v12   ;;  %v10001_v42 = vld [vmem:[%s12706_s5 + $0xd0] sm:$0xff]  ;;  %v9300_v43 = vld [vmem:[%s12701_s0 + $0x68] sm:$0xff]   ;;  %v10020_v46 = vld [vmem:[%s12706_s5 + $0xe0] sm:$0xff] }
  0x35   :  { %8221 = vmatmul.mubr.msk.bf16.gmra.mrb[4].mxu0 %vm194_vm0, %v9290_v13  ;;  %v9301_v44 = vld [vmem:[%s12701_s0 + $0x70] sm:$0xff]   ;;  %v10015_v45 = vld [vmem:[%s12706_s5 + $0xe8] sm:$0xff]  ;;  %v10028_v47 = vld [vmem:[%s12706_s5 + $0xf8] sm:$0xff] }
  0x36   :  { %8224 = vmatprep.mubr.msk.bf16.mxu0 %vm194_vm0, %v9291_v14  ;;  %v10033_v48 = vld [vmem:[%s12706_s5 + $0xf0] sm:$0xff]  ;;  %v9302_v49 = vld [vmem:[%s12701_s0 + $0x78] sm:$0xff]   ;;  %v9303_v51 = vld [vmem:[%s12704_s3] sm:$0xff]  }
  0x37   :  { %8272 = vmatprep.subr.bf16.mxu0 %v9303_v51  ;;  %v9304_v52 = vld [vmem:[%s12704_s3 + $0x8] sm:$0xff]   ;;  %v9305_v53 = vld [vmem:[%s12704_s3 + $0x10] sm:$0xff]   ;;  %v9306_v56 = vld [vmem:[%s12704_s3 + $0x18] sm:$0xff]  }
  0x38   :  { %901 = vperm.xlu1 %9271, %v9857_v15   ;;  %896 = vperm.xlu0 %9270, %v9862_v16   ;;  %v9307_v62 = vld [vmem:[%s12704_s3 + $0x20] sm:$0xff]   ;;  %v10110_v63 = vld [vmem:[%s12706_s5 + $0x18] sm:$0xff]  ;;  %v10166_v14 = vld [vmem:[%s12706_s5 + $0x70] sm:$0xff] }
  0x39   :  { %8273 = vmatpush3.bf16.msra.mxu0 %v9303_v51  ;;  %v10135_v6 = vld [vmem:[%s12706_s5 + $0x38] sm:$0xff] }
  0x3a   :  { %8274 = vmatprep.subr.bf16.mxu0 %v9304_v52  ;;  %v10160_v13 = vld [vmem:[%s12706_s5 + $0x58] sm:$0xff] }
  0x3c   :  { %911 = vperm.xlu1 %9271, %v9871_v17   ;;  %906 = vperm.xlu0 %9270, %v9876_v18  }
  0x3d   :  { %8225 = vmatmul.mubr.msk.bf16.gmra.mrb[8].mxu0 %vm194_vm0, %v9292_v19  ;;  %v10185_v19 = vld [vmem:[%s12706_s5 + $0x80] sm:$0xff] }
  0x3e   :  { %8228 = vmatprep.mubr.msk.bf16.mxu0 %vm194_vm0, %v9293_v20  ;;  %8275 = vmatpush3.bf16.msra.mxu0 %v9304_v52  ;;  %v10297_v52 = vld [vmem:[%s12706_s5 + $0x20] sm:$0xff] }
  0x3f   :  { %8276 = vmatprep.subr.bf16.mxu0 %v9305_v53  ;;  %12951 = vst [vmem:[#allocation49_spill] sm:$0xff] %v10297_v52 }
  0x40   :  { %921 = vperm.xlu1 %9271, %v9889_v21   ;;  %916 = vperm.xlu0 %9270, %v9894_v22  }
  0x42   :  { %8277 = vmatpush3.bf16.msra.mxu0 %v9305_v53 }
  0x43   :  { %8278 = vmatprep.subr.bf16.mxu0 %v9306_v56 }
  0x44   :  { %931 = vperm.xlu1 %9271, %v9903_v23   ;;  %926 = vperm.xlu0 %9270, %v9908_v24  }
  0x45   :  { %8229 = vmatmul.mubr.msk.bf16.gmra.mrb[12].mxu0 %vm194_vm0, %v9294_v25  ;;  %v10206_v25 = vld [vmem:[%s12704_s3 + $0x100] sm:$0xff]  }
  0x46   :  { %8232 = vmatprep.mubr.msk.bf16.mxu0 %vm194_vm0, %v9295_v26  ;;  %8279 = vmatpush3.bf16.msra.mxu0 %v9306_v56  ;;  %12925 = vst [vmem:[#allocation23_spill] sm:$0xff] %v10206_v25  ;;  %v10211_v26 = vld [vmem:[%s12706_s5 + $0x88] sm:$0xff] }
  0x47   :  { %8280 = vmatprep.subr.bf16.mxu0 %v9307_v62  ;;  %12926 = vst [vmem:[#allocation24_spill] sm:$0xff] %v10211_v26 }
  0x48   :  { %941 = vperm.xlu1 %9271, %v9919_v27   ;;  %936 = vperm.xlu0 %9270, %v9924_v28  }
  0x4a   :  { %8281 = vmatpush3.bf16.msra.mxu0 %v9307_v62 }
  0x4c   :  { %951 = vperm.xlu1 %9271, %v9932_v29   ;;  %946 = vperm.xlu0 %9270, %v9937_v30  }
  0x4d   :  { %8233 = vmatmul.mubr.msk.bf16.gmra.mrb[16].mxu0 %vm194_vm0, %v9296_v31 }
  0x4e   :  { %8236 = vmatprep.mubr.msk.bf16.mxu0 %vm194_vm0, %v9297_v32 }
  0x50   :  { %961 = vperm.xlu1 %9271, %v9951_v33   ;;  %956 = vperm.xlu0 %9270, %v9956_v34  }
  0x54   :  { %971 = vperm.xlu1 %9271, %v9964_v35   ;;  %966 = vperm.xlu0 %9270, %v9969_v36  }
  0x55   :  { %8237 = vmatmul.mubr.msk.bf16.gmra.mrb[20].mxu0 %vm194_vm0, %v9298_v37 }
  0x56   :  { %8240 = vmatprep.mubr.msk.bf16.mxu0 %vm194_vm0, %v9299_v38 }
  0x58   :  { %981 = vperm.xlu1 %9271, %v9983_v39   ;;  %976 = vperm.xlu0 %9270, %v9988_v40  }
  0x5c   :  { %991 = vperm.xlu1 %9271, %v9996_v41   ;;  %986 = vperm.xlu0 %9270, %v10001_v42  }
  0x5d   :  { %8241 = vmatmul.mubr.msk.bf16.gmra.mrb[24].mxu0 %vm194_vm0, %v9300_v43 }
  0x5e   :  { %8244 = vmatprep.mubr.msk.bf16.mxu0 %vm194_vm0, %v9301_v44 }
  0x60   :  { %1001 = vperm.xlu1 %9271, %v10015_v45   ;;  %996 = vperm.xlu0 %9270, %v10020_v46  }
  0x64   :  { %1011 = vperm.xlu1 %9271, %v10028_v47   ;;  %1006 = vperm.xlu0 %9270, %v10033_v48  }
  0x65   :  { %8245 = vmatmul.mubr.msk.bf16.gmra.mrb[28].mxu0 %vm194_vm0, %v9302_v49 }
  0x68   :  { %9273 = vset.pattern.permute.xlu1 %v9694_v50  ;;  %9272 = vset.pattern.permute.xlu0 %v9694_v50 }
  0x69   :  { %1501 = vperm.xlu1 %9273, %v9808_v5   ;;  %1497 = vperm.xlu0 %9272, %v9793_v2  }
  0x6d   :  { %1505 = vperm.xlu1 %9273, %v9788_v1   ;;  %1509 = vperm.xlu0 %9272, %v9803_v4  }
  0x71   :  { %1513 = vperm.xlu1 %9273, %v9826_v9   ;;  %1517 = vperm.xlu0 %9272, %v9821_v8  }
  0x75   :  { %1521 = vperm.xlu1 %9273, %v9844_v12   ;;  %1525 = vperm.xlu0 %9272, %v9839_v11  }
  0x79   :  { %1529 = vperm.xlu1 %9273, %v9862_v16   ;;  %1533 = vperm.xlu0 %9272, %v9857_v15  }
  0x7d   :  { %1537 = vperm.xlu1 %9273, %v9876_v18   ;;  %1541 = vperm.xlu0 %9272, %v9871_v17   ;;  %v9310_v17 = vld [vmem:[%s12704_s3 + $0x38] sm:$0xff]  }
  0x81   :  { %1545 = vperm.xlu1 %9273, %v9894_v22   ;;  %1549 = vperm.xlu0 %9272, %v9889_v21  }
  0x85   :  { %1553 = vperm.xlu1 %9273, %v9908_v24   ;;  %1557 = vperm.xlu0 %9272, %v9903_v23  }
  0x89   :  { %1561 = vperm.xlu1 %9273, %v9924_v28   ;;  %1565 = vperm.xlu0 %9272, %v9919_v27  }
  0x8d   :  { %1569 = vperm.xlu1 %9273, %v9937_v30   ;;  %1573 = vperm.xlu0 %9272, %v9932_v29   ;;  %v10223_v29 = vld [vmem:[%s12706_s5 + $0x98] sm:$0xff] }
  0x8e   :  { %12929 = vst [vmem:[#allocation27_spill] sm:$0xff] %v10223_v29 }
  0x91   :  { %1577 = vperm.xlu1 %9273, %v9956_v34   ;;  %1581 = vperm.xlu0 %9272, %v9951_v33  }
  0x95   :  { %1585 = vperm.xlu1 %9273, %v9969_v36   ;;  %1589 = vperm.xlu0 %9272, %v9964_v35  }
  0x99   :  { %1593 = vperm.xlu1 %9273, %v9988_v40   ;;  %1597 = vperm.xlu0 %9272, %v9983_v39  }
  0x9d   :  { %1601 = vperm.xlu1 %9273, %v10001_v42   ;;  %1605 = vperm.xlu0 %9272, %v9996_v41  }
  0xa1   :  { %1609 = vperm.xlu1 %9273, %v10020_v46   ;;  %1613 = vperm.xlu0 %9272, %v10015_v45  }
  0xa5   :  { %1617 = vperm.xlu1 %9273, %v10033_v48   ;;  %1621 = vperm.xlu0 %9272, %v10028_v47  }
  0xa7   :  { %v10085_v54 = vpop.permute.xlu1 %866  ;;  %v10087_v55 = vpop.permute.xlu0 %856 }
  0xa9   :  { %9274 = vset.pattern.permute.xlu1 %v9695_v57  ;;  %9275 = vset.pattern.permute.xlu0 %v9695_v57  ;;  %v10308_v57 = vld [vmem:[%s12706_s5 + $0x30] sm:$0xff] }
  0xaa   :  { %1996 = vperm.xlu1 %9274, %v9793_v2   ;;  %2000 = vperm.xlu0 %9275, %v9808_v5   ;;  %v10121_v2 = vld [vmem:[%s12706_s5 + $0x28] sm:$0xff]  ;;  %12954 = vst [vmem:[#allocation52_spill] sm:$0xff] %v10308_v57 }
  0xab   :  { %v10094_v58 = vpop.permute.xlu1 %871  ;;  %v10096_v59 = vpop.permute.xlu0 %861  ;;  %v9308_v5 = vld [vmem:[%s12704_s3 + $0x28] sm:$0xff]  }
  0xac   :  { %8282 = vmatprep.subr.bf16.mxu0 %v9308_v5 }
  0xad   :  { %8283 = vmatpush3.bf16.msra.mxu0 %v9308_v5 }
  0xae   :  { %2004 = vperm.xlu1 %9274, %v9788_v1   ;;  %2012 = vperm.xlu0 %9275, %v9826_v9   ;;  %v10146_v9 = vld [vmem:[%s12706_s5 + $0x48] sm:$0xff] }
  0xaf   :  { %v10100_v60 = vpop.permute.xlu1 %881  ;;  %v10102_v61 = vpop.permute.xlu0 %876 }
  0xb2   :  { %2008 = vperm.xlu1 %9274, %v10110_v63   ;;  %2020 = vperm.xlu0 %9275, %v9844_v12   ;;  %v9309_v12 = vld [vmem:[%s12704_s3 + $0x30] sm:$0xff]  }
  0xb3   :  { %v10114_v0 = vpop.permute.xlu1 %891  ;;  %v10116_v1 = vpop.permute.xlu0 %886  ;;  %8284 = vmatprep.subr.bf16.mxu0 %v9309_v12 }
  0xb4   :  { %12910 = vst [vmem:[#allocation8_spill] sm:$0xff] %v10114_v0  ;;  %12911 = vst [vmem:[#allocation9_spill] sm:$0xff] %v10116_v1  ;;  %8285 = vmatpush3.bf16.msra.mxu0 %v9309_v12  ;;  %v10319_v12 = vld [vmem:[%s12706_s5 + $0x40] sm:$0xff] }
  0xb5   :  { %8286 = vmatprep.subr.bf16.mxu0 %v9310_v17  ;;  %12957 = vst [vmem:[#allocation55_spill] sm:$0xff] %v10319_v12 }
  0xb6   :  { %2016 = vperm.xlu1 %9274, %v10121_v2   ;;  %2028 = vperm.xlu0 %9275, %v9862_v16  }
  0xb7   :  { %v10125_v3 = vpop.permute.xlu1 %901  ;;  %v10127_v4 = vpop.permute.xlu0 %896 }
  0xb8   :  { %12912 = vst [vmem:[#allocation10_spill] sm:$0xff] %v10125_v3  ;;  %12913 = vst [vmem:[#allocation11_spill] sm:$0xff] %v10127_v4  ;;  %8287 = vmatpush3.bf16.msra.mxu0 %v9310_v17 }
  0xb9   :  { %8320 = vmatprep.subr.bf16.mxu0 %v10206_v25 }
  0xba   :  { %2024 = vperm.xlu1 %9274, %v10135_v6   ;;  %2036 = vperm.xlu0 %9275, %v9876_v18   ;;  %v10179_v18 = vld [vmem:[%s12706_s5 + $0x68] sm:$0xff] }
  0xbb   :  { %v10139_v7 = vpop.permute.xlu1 %911  ;;  %v10141_v8 = vpop.permute.xlu0 %906 }
  0xbc   :  { %12914 = vst [vmem:[#allocation12_spill] sm:$0xff] %v10139_v7  ;;  %12915 = vst [vmem:[#allocation13_spill] sm:$0xff] %v10141_v8 }
  0xbe   :  { %2032 = vperm.xlu1 %9274, %v10146_v9   ;;  %2044 = vperm.xlu0 %9275, %v9894_v22   ;;  %v10195_v22 = vld [vmem:[%s12706_s5 + $0x78] sm:$0xff] }
  0xbf   :  { %v10150_v10 = vpop.permute.xlu1 %921  ;;  %v10152_v11 = vpop.permute.xlu0 %916  ;;  %12922 = vst [vmem:[#allocation20_spill] sm:$0xff] %v10195_v22 }
  0xc0   :  { %12916 = vst [vmem:[#allocation14_spill] sm:$0xff] %v10150_v10  ;;  %12917 = vst [vmem:[#allocation15_spill] sm:$0xff] %v10152_v11 }
  0xc2   :  { %2040 = vperm.xlu1 %9274, %v10160_v13   ;;  %2052 = vperm.xlu0 %9275, %v10166_v14  }
  0xc3   :  { %v10169_v15 = vpop.permute.xlu1 %931  ;;  %v10171_v16 = vpop.permute.xlu0 %926 }
  0xc4   :  { %12918 = vst [vmem:[#allocation16_spill] sm:$0xff] %v10169_v15  ;;  %12919 = vst [vmem:[#allocation17_spill] sm:$0xff] %v10171_v16 }
  0xc6   :  { %2048 = vperm.xlu1 %9274, %v10179_v18   ;;  %2060 = vperm.xlu0 %9275, %v10185_v19  }
  0xc7   :  { %v10188_v20 = vpop.permute.xlu1 %941  ;;  %v10190_v21 = vpop.permute.xlu0 %936 }
  0xc8   :  { %12920 = vst [vmem:[#allocation18_spill] sm:$0xff] %v10188_v20  ;;  %12921 = vst [vmem:[#allocation19_spill] sm:$0xff] %v10190_v21 }
  0xca   :  { %2056 = vperm.xlu1 %9274, %v10195_v22   ;;  %2068 = vperm.xlu0 %9275, %v9937_v30  }
  0xcb   :  { %v10199_v23 = vpop.permute.xlu1 %951  ;;  %v10201_v24 = vpop.permute.xlu0 %946 }
  0xcc   :  { %12923 = vst [vmem:[#allocation21_spill] sm:$0xff] %v10199_v23  ;;  %12924 = vst [vmem:[#allocation22_spill] sm:$0xff] %v10201_v24  ;;  %v10427_v24 = vld [vmem:[%s12706_s5 + $0xd8] sm:$0xff]  ;;  %v10441_v23 = vld [vmem:[%s12703_s2] ss:$0 sm:$0xff] }
  0xcd   :  { %12976 = vst [vmem:[#allocation74_spill] sm:$0xff] %v10427_v24 }
  0xce   :  { %2064 = vperm.xlu1 %9274, %v10211_v26   ;;  %2076 = vperm.xlu0 %9275, %v9956_v34  }
  0xcf   :  { %v10215_v27 = vpop.permute.xlu1 %961  ;;  %v10217_v28 = vpop.permute.xlu0 %956 }
  0xd0   :  { %12927 = vst [vmem:[#allocation25_spill] sm:$0xff] %v10215_v27  ;;  %12928 = vst [vmem:[#allocation26_spill] sm:$0xff] %v10217_v28 }
  0xd2   :  { %2072 = vperm.xlu1 %9274, %v10223_v29   ;;  %2084 = vperm.xlu0 %9275, %v9969_v36  }
  0xd3   :  { %v10227_v30 = vpop.permute.xlu1 %971  ;;  %v10229_v31 = vpop.permute.xlu0 %966 }
  0xd4   :  { %12930 = vst [vmem:[#allocation28_spill] sm:$0xff] %v10227_v30  ;;  %12931 = vst [vmem:[#allocation29_spill] sm:$0xff] %v10229_v31  ;;  %v10407_v31 = vld [vmem:[%s12706_s5 + $0xc8] sm:$0xff]  ;;  %v10421_v30 = vld [vmem:[%s12706_s5 + $0xb0] sm:$0xff] }
  0xd5   :  { %12972 = vst [vmem:[#allocation70_spill] sm:$0xff] %v10407_v31  ;;  %12975 = vst [vmem:[#allocation73_spill] sm:$0xff] %v10421_v30 }
  0xd6   :  { %2080 = vperm.xlu1 %9274, %v9951_v33   ;;  %2092 = vperm.xlu0 %9275, %v9988_v40  }
  0xd7   :  { %v10233_v32 = vpop.permute.xlu1 %981  ;;  %v10235_v34 = vpop.permute.xlu0 %976 }
  0xd8   :  { %12932 = vst [vmem:[#allocation30_spill] sm:$0xff] %v10233_v32  ;;  %12933 = vst [vmem:[#allocation31_spill] sm:$0xff] %v10235_v34 }
  0xda   :  { %2088 = vperm.xlu1 %9274, %v9964_v35   ;;  %2100 = vperm.xlu0 %9275, %v10001_v42   ;;  %v9696_v42 = vmov 3  }
  0xdb   :  { %v10239_v37 = vpop.permute.xlu1 %991  ;;  %v10241_v38 = vpop.permute.xlu0 %986 }
  0xdc   :  { %12934 = vst [vmem:[#allocation32_spill] sm:$0xff] %v10239_v37  ;;  %12935 = vst [vmem:[#allocation33_spill] sm:$0xff] %v10241_v38  ;;  %v10401_v37 = vld [vmem:[%s12706_s5 + $0xa0] sm:$0xff] }
  0xde   :  { %2096 = vperm.xlu1 %9274, %v9983_v39   ;;  %2108 = vperm.xlu0 %9275, %v10020_v46   ;;  %v10259_v39 = vld [vmem:[%s12706_s5] sm:$0xff]  ;;  %v10275_v46 = vld [vmem:[%s12706_s5 + $0x8] sm:$0xff] }
  0xdf   :  { %v10245_v36 = vpop.permute.xlu1 %1001  ;;  %v10247_v33 = vpop.permute.xlu0 %996  ;;  %12940 = vst [vmem:[#allocation38_spill] sm:$0xff] %v10259_v39  ;;  %12945 = vst [vmem:[#allocation43_spill] sm:$0xff] %v10275_v46 }
  0xe0   :  { %12936 = vst [vmem:[#allocation34_spill] sm:$0xff] %v10245_v36  ;;  %12937 = vst [vmem:[#allocation35_spill] sm:$0xff] %v10247_v33 }
  0xe2   :  { %2104 = vperm.xlu1 %9274, %v9996_v41   ;;  %2116 = vperm.xlu0 %9275, %v10033_v48  }
  0xe3   :  { %v10251_v40 = vpop.permute.xlu1 %1011  ;;  %v10253_v35 = vpop.permute.xlu0 %1006 }
  0xe4   :  { %12938 = vst [vmem:[#allocation36_spill] sm:$0xff] %v10251_v40  ;;  %12939 = vst [vmem:[#allocation37_spill] sm:$0xff] %v10253_v35 }
  0xe6   :  { %2112 = vperm.xlu1 %9274, %v10015_v45   ;;  %9276 = vset.pattern.permute.xlu0 %v9696_v42 }
  0xe7   :  { %2430 = vperm.xlu0 %9276, %v10259_v39  }
  0xe8   :  { %v10262_v43 = vpop.permute.xlu1 %1501  ;;  %v10264_v41 = vpop.permute.xlu0 %1497 }
  0xe9   :  { %12941 = vst [vmem:[#allocation39_spill] sm:$0xff] %v10262_v43  ;;  %12942 = vst [vmem:[#allocation40_spill] sm:$0xff] %v10264_v41 }
  0xea   :  { %2120 = vperm.xlu1 %9274, %v10028_v47   ;;  %v10286_v47 = vld [vmem:[%s12706_s5 + $0x10] sm:$0xff] }
  0xeb   :  { %2442 = vperm.xlu0 %9276, %v10110_v63   ;;  %12948 = vst [vmem:[#allocation46_spill] sm:$0xff] %v10286_v47 }
  0xec   :  { %v10268_v44 = vpop.permute.xlu1 %1505  ;;  %v10270_v45 = vpop.permute.xlu0 %1509 }
  0xed   :  { %12943 = vst [vmem:[#allocation41_spill] sm:$0xff] %v10268_v44  ;;  %12944 = vst [vmem:[#allocation42_spill] sm:$0xff] %v10270_v45 }
  0xee   :  { %9277 = vset.pattern.permute.xlu1 %v9696_v42 }
  0xef   :  { %2434 = vperm.xlu1 %9277, %v10275_v46   ;;  %2450 = vperm.xlu0 %9276, %v10121_v2  }
  0xf0   :  { %v10279_v48 = vpop.permute.xlu1 %1513  ;;  %v10281_v49 = vpop.permute.xlu0 %1517 }
  0xf1   :  { %12946 = vst [vmem:[#allocation44_spill] sm:$0xff] %v10279_v48  ;;  %12947 = vst [vmem:[#allocation45_spill] sm:$0xff] %v10281_v49 }
  0xf3   :  { %2438 = vperm.xlu1 %9277, %v10286_v47   ;;  %2458 = vperm.xlu0 %9276, %v10135_v6  }
  0xf4   :  { %v10290_v50 = vpop.permute.xlu1 %1521  ;;  %v10292_v51 = vpop.permute.xlu0 %1525 }
  0xf5   :  { %12949 = vst [vmem:[#allocation47_spill] sm:$0xff] %v10290_v50  ;;  %12950 = vst [vmem:[#allocation48_spill] sm:$0xff] %v10292_v51 }
  0xf7   :  { %2446 = vperm.xlu1 %9277, %v10297_v52   ;;  %2466 = vperm.xlu0 %9276, %v10146_v9  }
  0xf8   :  { %v10301_v53 = vpop.permute.xlu1 %1529  ;;  %v10303_v56 = vpop.permute.xlu0 %1533 }
  0xf9   :  { %12952 = vst [vmem:[#allocation50_spill] sm:$0xff] %v10301_v53  ;;  %12953 = vst [vmem:[#allocation51_spill] sm:$0xff] %v10303_v56 }
  0xfb   :  { %2454 = vperm.xlu1 %9277, %v10308_v57   ;;  %2474 = vperm.xlu0 %9276, %v10160_v13  }
  0xfc   :  { %v10312_v62 = vpop.permute.xlu1 %1537  ;;  %v10314_v5 = vpop.permute.xlu0 %1541 }
  0xfd   :  { %12955 = vst [vmem:[#allocation53_spill] sm:$0xff] %v10312_v62  ;;  %12956 = vst [vmem:[#allocation54_spill] sm:$0xff] %v10314_v5  ;;  %v10330_v62 = vld [vmem:[%s12706_s5 + $0x50] sm:$0xff] }
  0xff   :  { %2462 = vperm.xlu1 %9277, %v10319_v12   ;;  %2482 = vperm.xlu0 %9276, %v10179_v18  }
 0x100   :  { %v10323_v17 = vpop.permute.xlu1 %1545  ;;  %v10325_v42 = vpop.permute.xlu0 %1549 }
 0x101   :  { %12958 = vst [vmem:[#allocation56_spill] sm:$0xff] %v10323_v17  ;;  %12959 = vst [vmem:[#allocation57_spill] sm:$0xff] %v10325_v42  ;;  %v8218_v53 = vpop.f32.mrb[0].mxu0  ;;  %v10341_v17 = vld [vmem:[%s12706_s5 + $0x60] sm:$0xff] }
 0x102   :  { %v277_v50 = vpop.f32.mrb[1].mxu0  ;;  %v286_v20 = vadd.f32 %v8218_v53, %v10441_v23  ;;  %v10474_v53 = vld [vmem:[%s12706_s5 + $0xf8] sm:$0xff] }
 0x103   :  { %2470 = vperm.xlu1 %9277, %v10330_v62   ;;  %2490 = vperm.xlu0 %9276, %v10195_v22   ;;  %v8219_v5 = vpop.f32.mrb[2].mxu0  ;;  %v278_v21 = vadd.f32 %v10441_v23, %v277_v50  ;;  %12984 = vst [vmem:[#allocation82_spill] sm:$0xff] %v10474_v53 }
 0x104   :  { %v280_v56 = vpop.f32.mrb[3].mxu0  ;;  %v10334_v51 = vpop.permute.xlu1 %1553 }
 0x105   :  { %12960 = vst [vmem:[#allocation58_spill] sm:$0xff] %v10334_v51  ;;  %v10336_v48 = vpop.permute.xlu0 %1557  ;;  %v404_v11 = vmul.f32 0.2, %v278_v21 }
 0x106   :  { %12961 = vst [vmem:[#allocation59_spill] sm:$0xff] %v10336_v48 }
 0x107   :  { %2478 = vperm.xlu1 %9277, %v10341_v17   ;;  %2498 = vperm.xlu0 %9276, %v10211_v26  }
 0x108   :  { %v10345_v42 = vpop.permute.xlu1 %1561  ;;  %v10349_v49 = vpop.f32.mrb[4].mxu0 }
 0x109   :  { %12962 = vst [vmem:[#allocation60_spill] sm:$0xff] %v10345_v42  ;;  %v10347_v44 = vpop.permute.xlu0 %1565  ;;  %v10351_v45 = vpop.f32.mrb[5].mxu0  ;;  %v10367_v42 = vld [vmem:[%s12706_s5 + $0xa8] sm:$0xff] }
 0x10a   :  { %12963 = vst [vmem:[#allocation61_spill] sm:$0xff] %v10347_v44  ;;  %v10355_v51 = vpop.f32.mrb[6].mxu0  ;;  %12966 = vst [vmem:[#allocation64_spill] sm:$0xff] %v10367_v42 }
 0x10b   :  { %2486 = vperm.xlu1 %9277, %v10166_v14   ;;  %2506 = vperm.xlu0 %9276, %v10223_v29   ;;  %v10357_v48 = vpop.f32.mrb[7].mxu0 }
 0x10c   :  { %v10359_v41 = vpop.permute.xlu1 %1569  ;;  %v297_v1 = vadd.f32 %v10441_v23, %v10357_v48 }
 0x10d   :  { %12964 = vst [vmem:[#allocation62_spill] sm:$0xff] %v10359_v41  ;;  %v10361_v43 = vpop.permute.xlu0 %1573  ;;  %v10381_v41 = vld [vmem:[%s12706_s5 + $0x90] sm:$0xff] }
 0x10e   :  { %12965 = vst [vmem:[#allocation63_spill] sm:$0xff] %v10361_v43  ;;  %v10387_v43 = vld [vmem:[%s12706_s5 + $0xb8] sm:$0xff] }
 0x10f   :  { %2494 = vperm.xlu1 %9277, %v10185_v19   ;;  %2514 = vperm.xlu0 %9276, %v10367_v42   ;;  %12969 = vst [vmem:[#allocation67_spill] sm:$0xff] %v10387_v43  ;;  %v289_v42 = vadd.f32 %v8219_v5, %v10441_v23 }
 0x110   :  { %v10370_v44 = vpop.permute.xlu1 %1577  ;;  %v10374_v40 = vpop.f32.mrb[8].mxu0 }
 0x111   :  { %12967 = vst [vmem:[#allocation65_spill] sm:$0xff] %v10370_v44  ;;  %v10372_v35 = vpop.permute.xlu0 %1581  ;;  %v10376_v38 = vpop.f32.mrb[9].mxu0  ;;  %v407_v26 = vmul.f32 0.2, %v289_v42 }
 0x112   :  { %12968 = vst [vmem:[#allocation66_spill] sm:$0xff] %v10372_v35  ;;  %v10390_v44 = vpop.f32.mrb[10].mxu0 }
 0x113   :  { %2502 = vperm.xlu1 %9277, %v10381_v41   ;;  %2522 = vperm.xlu0 %9276, %v10387_v43   ;;  %v10392_v35 = vpop.f32.mrb[11].mxu0 }
 0x114   :  { %v10394_v36 = vpop.permute.xlu1 %1585 }
 0x115   :  { %12970 = vst [vmem:[#allocation68_spill] sm:$0xff] %v10394_v36  ;;  %v10396_v33 = vpop.permute.xlu0 %1589 }
 0x116   :  { %12971 = vst [vmem:[#allocation69_spill] sm:$0xff] %v10396_v33 }
 0x117   :  { %2510 = vperm.xlu1 %9277, %v10401_v37   ;;  %2530 = vperm.xlu0 %9276, %v10407_v31   ;;  %v10446_v31 = vld [vmem:[%s12706_s5 + $0xc0] sm:$0xff] }
 0x118   :  { %v10410_v32 = vpop.permute.xlu1 %1593  ;;  %v10414_v36 = vpop.f32.mrb[12].mxu0  ;;  %12979 = vst [vmem:[#allocation77_spill] sm:$0xff] %v10446_v31 }
 0x119   :  { %12973 = vst [vmem:[#allocation71_spill] sm:$0xff] %v10410_v32  ;;  %v10412_v34 = vpop.permute.xlu0 %1597  ;;  %v10416_v33 = vpop.f32.mrb[13].mxu0 }
 0x11a   :  { %12974 = vst [vmem:[#allocation72_spill] sm:$0xff] %v10412_v34  ;;  %v10430_v32 = vpop.f32.mrb[14].mxu0 }
 0x11b   :  { %2518 = vperm.xlu1 %9277, %v10421_v30   ;;  %2538 = vperm.xlu0 %9276, %v10427_v24   ;;  %v10432_v34 = vpop.f32.mrb[15].mxu0  ;;  %v10452_v24 = vld [vmem:[%s12706_s5 + $0xe8] sm:$0xff] }
 0x11c   :  { %v10434_v27 = vpop.permute.xlu1 %1601  ;;  %12980 = vst [vmem:[#allocation78_spill] sm:$0xff] %v10452_v24 }
 0x11d   :  { %12977 = vst [vmem:[#allocation75_spill] sm:$0xff] %v10434_v27  ;;  %v10436_v28 = vpop.permute.xlu0 %1605  ;;  %v281_v27 = vadd.f32 %v10441_v23, %v280_v56  ;;  %v10468_v56 = vld [vmem:[%s12706_s5 + $0xd0] sm:$0xff] }
 0x11e   :  { %12978 = vst [vmem:[#allocation76_spill] sm:$0xff] %v10436_v28  ;;  %12983 = vst [vmem:[#allocation81_spill] sm:$0xff] %v10468_v56 }
 0x11f   :  { %2526 = vperm.xlu1 %9277, %v10446_v31   ;;  %2546 = vperm.xlu0 %9276, %v10452_v24   ;;  %v405_v5 = vmul.f32 0.2, %v281_v27  ;;  %v787_v31 = vlaneseq }
 0x120   :  { %v10456_v28 = vpop.permute.xlu1 %1609  ;;  %v8234_v16 = vpop.f32.mrb[16].mxu0 }
 0x121   :  { %12981 = vst [vmem:[#allocation79_spill] sm:$0xff] %v10456_v28  ;;  %v10458_v43 = vpop.permute.xlu0 %1613  ;;  %v341_v15 = vpop.f32.mrb[17].mxu0  ;;  %v350_v29 = vadd.f32 %v8234_v16, %v10441_v23  ;;  %v10512_v25 = vshrl.u32 %v787_v31, 7  ;;  %v409_v31 = vmul.f32 0.2, %v297_v1 }
 0x122   :  { %12982 = vst [vmem:[#allocation80_spill] sm:$0xff] %v10458_v43  ;;  %v342_v8 = vadd.f32 %v10441_v23, %v341_v15  ;;  %v8235_v50 = vpop.f32.mrb[18].mxu0 }
 0x123   :  { %2534 = vperm.xlu1 %9277, %v10468_v56   ;;  %2554 = vperm.xlu0 %9276, %v10474_v53   ;;  %v353_v16 = vadd.f32 %v8235_v50, %v10441_v23  ;;  %v344_v28 = vpop.f32.mrb[19].mxu0  ;;  %v406_v56 = vmul.f32 0.2, %v286_v20  ;;  %v422_v30 = vmul.f32 0.2, %v350_v29  ;;  %v10486_v53 = vld [vmem:[%s12706_s5 + $0xe0] sm:$0xff] }
 0x124   :  { %v10478_v15 = vpop.permute.xlu1 %1617  ;;  %v420_v43 = vmul.f32 0.2, %v342_v8  ;;  %v345_v24 = vadd.f32 %v10441_v23, %v344_v28  ;;  %12987 = vst [vmem:[#allocation85_spill] sm:$0xff] %v10486_v53  ;;  %v9697_v50 = vmov 5   ;;  %v294_v28 = vadd.f32 %v10441_v23, %v10351_v45 }
 0x125   :  { %12985 = vst [vmem:[#allocation83_spill] sm:$0xff] %v10478_v15  ;;  %v10481_v10 = vpop.permute.xlu0 %1621  ;;  %v423_v7 = vmul.f32 0.2, %v353_v16  ;;  %v10489_v15 = vmax.f32 %v281_v27, %v405_v5  ;;  %v10508_v5 = vmax.f32 %v286_v20, %v406_v56  ;;  %v10510_v45 = vmax.f32 %v278_v21, %v404_v11 }
 0x126   :  { %12986 = vst [vmem:[#allocation84_spill] sm:$0xff] %v10481_v10  ;;  %v421_v22 = vmul.f32 0.2, %v345_v24  ;;  %v305_v10 = vadd.f32 %v10355_v51, %v10441_v23  ;;  %v10498_v3 = vmax.f32 %v342_v8, %v420_v43  ;;  %v10516_v48 = vmax.f32 %v350_v29, %v422_v30 }
 0x127   :  { %2542 = vperm.xlu1 %9277, %v10486_v53   ;;  %9279 = vset.pattern.permute.xlu0 %v9697_v50  ;;  %12988 = vst [vmem:[#allocation86_spill] sm:$0xff] %v10489_v15  ;;  %v10500_v4 = vmax.f32 %v353_v16, %v423_v7  ;;  %12994 = vst [vmem:[#allocation92_spill] sm:$0xff] %v10508_v5  ;;  %v302_v20 = vadd.f32 %v10349_v49, %v10441_v23  ;;  %v408_v21 = vmul.f32 0.2, %v294_v28 }
 0x128   :  { %2868 = vperm.xlu0 %9279, %v10275_v46   ;;  %12989 = vst [vmem:[#allocation87_spill] sm:$0xff] %v10498_v3  ;;  %v10502_v53 = vmax.f32 %v345_v24, %v421_v22  ;;  %12995 = vst [vmem:[#allocation93_spill] sm:$0xff] %v10510_v45  ;;  %v8238_v51 = vpop.f32.mrb[20].mxu0  ;;  %v10514_v46 = vmax.f32 %v289_v42, %v407_v26  ;;  %v10522_v22 = vld [vmem:[%s12706_s5 + $0xf0] sm:$0xff]  ;;  %v10535_v29 = vpack.c.bf16 %v10489_v15, %v10510_v45 }
 0x129   :  { %12990 = vst [vmem:[#allocation88_spill] sm:$0xff] %v10500_v4  ;;  %v10504_v0 = vpop.permute.xlu1 %1996  ;;  %v10506_v27 = vpop.permute.xlu0 %2000  ;;  %12997 = vst [vmem:[#allocation95_spill] sm:$0xff] %v10516_v48  ;;  %v366_v7 = vadd.f32 %v8238_v51, %v10441_v23  ;;  %v411_v30 = vmul.f32 0.2, %v305_v10  ;;  %v10543_v49 = vpack.c.bf16 %v10500_v4, %v10516_v48  ;;  %vm789_vm1 = vcmp.lt.s32.totalorder %v10512_v25, 1 }
 0x12a   :  { %12991 = vst [vmem:[#allocation89_spill] sm:$0xff] %v10502_v53  ;;  %12992 = vst [vmem:[#allocation90_spill] sm:$0xff] %v10504_v0  ;;  %v357_v8 = vpop.f32.mrb[21].mxu0  ;;  %v10527_v11 = vpack.c.bf16 %v10502_v53, %v10498_v3  ;;  %vm1962_vm2 = vcmp.lt.s32.totalorder %v10512_v25, 7 }
 0x12b   :  { %12993 = vst [vmem:[#allocation91_spill] sm:$0xff] %v10506_v27  ;;  %12996 = vst [vmem:[#allocation94_spill] sm:$0xff] %v10514_v46  ;;  %2550 = vperm.xlu1 %9277, %v10522_v22   ;;  %v358_v24 = vadd.f32 %v10441_v23, %v357_v8  ;;  %v8239_v26 = vpop.f32.mrb[22].mxu0  ;;  %v426_v27 = vmul.f32 0.2, %v366_v7 }
 0x12c   :  { %12998 = vst [vmem:[#allocation96_spill] sm:$0xff] %v10522_v22  ;;  %12999 = vst [vmem:[#allocation97_spill] sm:$0xff] %v10527_v11  ;;  %2880 = vperm.xlu0 %9279, %v10297_v52   ;;  %v369_v43 = vadd.f32 %v8239_v26, %v10441_v23  ;;  %v360_v42 = vpop.f32.mrb[23].mxu0  ;;  %7478 = vmatprep.subr.bf16.mxu1 %v10527_v11  ;;  %v757_v26 = vrot.slane %v10508_v5, 7  ;;  %v313_v52 = vadd.f32 %v10441_v23, %v10392_v35 }
 0x12d   :  { %13000 = vst [vmem:[#allocation98_spill] sm:$0xff] %v10535_v29  ;;  %v10538_v56 = vpop.permute.xlu1 %2004  ;;  %13002 = vst [vmem:[#allocation100_spill] sm:$0xff] %v10543_v49  ;;  %v424_v16 = vmul.f32 0.2, %v358_v24  ;;  %v361_v51 = vadd.f32 %v10441_v23, %v360_v42  ;;  %v10546_v8 = vpop.permute.xlu0 %2012  ;;  %7479 = vmatpush3.bf16.msra.mxu1 %v10535_v29  ;;  %v10556_v42 = vpack.c.bf16 %v10514_v46, %v10508_v5 }
 0x12e   :  { %13001 = vst [vmem:[#allocation99_spill] sm:$0xff] %v10538_v56  ;;  %13003 = vst [vmem:[#allocation101_spill] sm:$0xff] %v10546_v8  ;;  %v427_v0 = vmul.f32 0.2, %v369_v43  ;;  %7480 = vmatprep.subr.bf16.mxu1 %v10543_v49  ;;  %v410_v56 = vmul.f32 0.2, %v302_v20  ;;  %v10559_v29 = vmax.f32 %v294_v28, %v408_v21  ;;  %v10563_v49 = vmax.f32 %v297_v1, %v409_v31 }
 0x12f   :  { %9278 = vset.pattern.permute.xlu1 %v9697_v50  ;;  %v425_v11 = vmul.f32 0.2, %v361_v51  ;;  %13004 = vst [vmem:[#allocation102_spill] sm:$0xff] %v10556_v42  ;;  %v10561_v50 = vmax.f32 %v305_v10, %v411_v30  ;;  %v10571_v22 = vmax.f32 %v358_v24, %v424_v16  ;;  %v10582_v1 = vadd.f32 %v10374_v40, %v10441_v23 }
 0x130   :  { %2864 = vperm.xlu1 %9278, %v10259_v39   ;;  %2888 = vperm.xlu0 %9279, %v10308_v57   ;;  %13005 = vst [vmem:[#allocation103_spill] sm:$0xff] %v10559_v29  ;;  %13007 = vst [vmem:[#allocation105_spill] sm:$0xff] %v10563_v49  ;;  %v8242_v39 = vpop.f32.mrb[24].mxu0  ;;  %v310_v57 = vadd.f32 %v10441_v23, %v10376_v38  ;;  %v10573_v5 = vmax.f32 %v369_v43, %v427_v0 }
 0x131   :  { %13006 = vst [vmem:[#allocation104_spill] sm:$0xff] %v10561_v50  ;;  %v10567_v48 = vpop.permute.xlu1 %2008  ;;  %13009 = vst [vmem:[#allocation107_spill] sm:$0xff] %v10571_v22  ;;  %v10575_v8 = vmax.f32 %v361_v51, %v425_v11  ;;  %v10577_v28 = vpop.permute.xlu0 %2020  ;;  %7481 = vmatpush3.bf16.msra.mxu1 %v10556_v42  ;;  %v321_v35 = vadd.f32 %v10390_v44, %v10441_v23  ;;  %v10586_v21 = vmax.f32 %v366_v7, %v426_v27 }
 0x132   :  { %13008 = vst [vmem:[#allocation106_spill] sm:$0xff] %v10567_v48  ;;  %13010 = vst [vmem:[#allocation108_spill] sm:$0xff] %v10573_v5  ;;  %v373_v10 = vpop.f32.mrb[25].mxu0  ;;  %v382_v24 = vadd.f32 %v8242_v39, %v10441_v23  ;;  %v413_v44 = vmul.f32 0.2, %v313_v52  ;;  %v10603_v39 = vpack.c.bf16 %v10563_v49, %v10559_v29  ;;  %v10605_v16 = vmax.f32 %v302_v20, %v410_v56 }
 0x133   :  { %13011 = vst [vmem:[#allocation109_spill] sm:$0xff] %v10575_v8  ;;  %13012 = vst [vmem:[#allocation110_spill] sm:$0xff] %v10577_v28  ;;  %v374_v38 = vadd.f32 %v10441_v23, %v373_v10  ;;  %v8243_v0 = vpop.f32.mrb[26].mxu0  ;;  %v10596_v31 = vpack.c.bf16 %v10575_v8, %v10571_v22  ;;  %v412_v51 = vmul.f32 0.2, %v310_v57  ;;  %v10612_v11 = vpack.c.bf16 %v10573_v5, %v10586_v21 }
 0x134   :  { %13013 = vst [vmem:[#allocation111_spill] sm:$0xff] %v10586_v21  ;;  %v385_v30 = vadd.f32 %v8243_v0, %v10441_v23  ;;  %2872 = vperm.xlu1 %9278, %v10286_v47   ;;  %2896 = vperm.xlu0 %9279, %v10319_v12   ;;  %v376_v40 = vpop.f32.mrb[27].mxu0  ;;  %13016 = vst [vmem:[#allocation114_spill] sm:$0xff] %v10603_v39  ;;  %v415_v28 = vmul.f32 0.2, %v321_v35  ;;  %v13020_v48 = vrot.slane %v10514_v46, 7 }
 0x135   :  { %13014 = vst [vmem:[#allocation112_spill] sm:$0xff] %v10596_v31  ;;  %v428_v27 = vmul.f32 0.2, %v374_v38  ;;  %v377_v7 = vadd.f32 %v10441_v23, %v376_v40  ;;  %v10599_v43 = vpop.permute.xlu1 %2016  ;;  %13017 = vst [vmem:[#allocation115_spill] sm:$0xff] %v10605_v16  ;;  %v10607_v0 = vpop.permute.xlu0 %2028  ;;  %7482 = vmatprep.subr.bf16.mxu1 %v10596_v31  ;;  %v329_v56 = vadd.f32 %v10441_v23, %v10432_v34  ;;  %v13022_v31 = vrot.slane %v10489_v15, 7 }
 0x136   :  { %13015 = vst [vmem:[#allocation113_spill] sm:$0xff] %v10599_v43  ;;  %v431_v10 = vmul.f32 0.2, %v385_v30  ;;  %13018 = vst [vmem:[#allocation116_spill] sm:$0xff] %v10607_v0  ;;  %7483 = vmatpush3.bf16.msra.mxu1 %v10603_v39  ;;  %v10620_v20 = vsel %vm789_vm1, %v757_v26, %v13020_v48  ;;  %v430_v0 = vmul.f32 0.2, %v382_v24  ;;  %v10628_v40 = vpack.c.bf16 %v10561_v50, %v10605_v16 }
 0x137   :  { %13019 = vst [vmem:[#allocation117_spill] sm:$0xff] %v10612_v11  ;;  %v429_v43 = vmul.f32 0.2, %v377_v7  ;;  %13021 = vst [vmem:[#allocation118_spill] sm:$0xff] %v10620_v20  ;;  %7484 = vmatprep.subr.bf16.mxu1 %v10612_v11  ;;  %v10634_v39 = vsel %vm789_vm1, %v13022_v31, %v757_v26  ;;  %v414_v48 = vmul.f32 0.2, %v10582_v1  ;;  %v10637_v42 = vmax.f32 %v313_v52, %v413_v44 }
 0x138   :  { %2876 = vperm.xlu1 %9278, %v10110_v63   ;;  %13023 = vst [vmem:[#allocation119_spill] sm:$0xff] %v10634_v39  ;;  %v10639_v34 = vmax.f32 %v374_v38, %v428_v27  ;;  %2904 = vperm.xlu0 %9279, %v10330_v62   ;;  %v8246_v11 = vpop.f32.mrb[28].mxu0  ;;  %v10646_v47 = vmax.f32 %v310_v57, %v412_v51 }
 0x139   :  { %13024 = vst [vmem:[#allocation120_spill] sm:$0xff] %v10637_v42  ;;  %v10641_v12 = vmax.f32 %v377_v7, %v429_v43  ;;  %v10644_v63 = vpop.permute.xlu1 %2024  ;;  %v326_v21 = vadd.f32 %v10441_v23, %v10416_v33  ;;  %v10650_v26 = vmax.f32 %v385_v30, %v431_v10  ;;  %v10652_v31 = vpop.permute.xlu0 %2036  ;;  %v398_v52 = vadd.f32 %v8246_v11, %v10441_v23 }
 0x13a   :  { %13025 = vst [vmem:[#allocation121_spill] sm:$0xff] %v10639_v34  ;;  %13027 = vst [vmem:[#allocation123_spill] sm:$0xff] %v10644_v63  ;;  %v389_v38 = vpop.f32.mrb[29].mxu0  ;;  %v10655_v44 = vmax.f32 %v321_v35, %v415_v28  ;;  %v337_v27 = vadd.f32 %v10430_v32, %v10441_v23  ;;  %7485 = vmatpush3.bf16.msra.mxu1 %v10628_v40  ;;  %v417_v30 = vmul.f32 0.2, %v329_v56  ;;  %v13039_v63 = vrot.slane %v10489_v15, 7 }
 0x13b   :  { %13026 = vst [vmem:[#allocation122_spill] sm:$0xff] %v10641_v12  ;;  %13028 = vst [vmem:[#allocation124_spill] sm:$0xff] %v10646_v47  ;;  %v390_v7 = vadd.f32 %v10441_v23, %v389_v38  ;;  %v8247_v57 = vpop.f32.mrb[30].mxu0  ;;  %v10663_v33 = vpack.c.bf16 %v10641_v12, %v10639_v34  ;;  %v10665_v43 = vmax.f32 %v382_v24, %v430_v0  ;;  %v434_v51 = vmul.f32 0.2, %v398_v52 }
 0x13c   :  { %13029 = vst [vmem:[#allocation125_spill] sm:$0xff] %v10650_v26  ;;  %13030 = vst [vmem:[#allocation126_spill] sm:$0xff] %v10652_v31  ;;  %v401_v11 = vadd.f32 %v8247_v57, %v10441_v23  ;;  %2884 = vperm.xlu1 %9278, %v10121_v2   ;;  %v392_v28 = vpop.f32.mrb[31].mxu0  ;;  %v334_v32 = vadd.f32 %v10414_v36, %v10441_v23  ;;  %2912 = vperm.xlu0 %9279, %v10341_v17   ;;  %v416_v0 = vmul.f32 0.2, %v326_v21 }
 0x13d   :  { %13031 = vst [vmem:[#allocation127_spill] sm:$0xff] %v10655_v44  ;;  %13032 = vst [vmem:[#allocation128_spill] sm:$0xff] %v10663_v33  ;;  %v432_v35 = vmul.f32 0.2, %v390_v7  ;;  %v393_v10 = vadd.f32 %v10441_v23, %v392_v28  ;;  %v10673_v38 = vpop.permute.xlu1 %2032  ;;  %7486 = vmatprep.subr.bf16.mxu1 %v10663_v33  ;;  %v10678_v24 = vpack.c.bf16 %v10637_v42, %v10646_v47  ;;  %v10682_v31 = vpop.permute.xlu0 %2044  ;;  %v419_v28 = vmul.f32 0.2, %v337_v27 }
 0x13e   :  { %13033 = vst [vmem:[#allocation129_spill] sm:$0xff] %v10665_v43  ;;  %13034 = vst [vmem:[#allocation130_spill] sm:$0xff] %v10673_v38  ;;  %v10680_v57 = vmax.f32 %v398_v52, %v434_v51  ;;  %v435_v2 = vmul.f32 0.2, %v401_v11  ;;  %v10686_v36 = vpack.c.bf16 %v10650_v26, %v10665_v43  ;;  %v10689_v23 = vmax.f32 %v10582_v1, %v414_v48 }
 0x13f   :  { %13035 = vst [vmem:[#allocation131_spill] sm:$0xff] %v10678_v24  ;;  %13037 = vst [vmem:[#allocation133_spill] sm:$0xff] %v10682_v31  ;;  %v433_v38 = vmul.f32 0.2, %v393_v10  ;;  %7487 = vmatpush3.bf16.msra.mxu1 %v10678_v24  ;;  %v13040_v33 = vrot.slane %v10510_v45, 7  ;;  %v10700_v51 = vmax.f32 %v329_v56, %v417_v30  ;;  %v1018_v1 = vmul.f32 %v10102_v61, %v10634_v39 }
 0x140   :  { %13036 = vst [vmem:[#allocation132_spill] sm:$0xff] %v10680_v57  ;;  %13038 = vst [vmem:[#allocation134_spill] sm:$0xff] %v10689_v23  ;;  %v10702_v31 = vmax.f32 %v401_v11, %v435_v2  ;;  %7488 = vmatprep.subr.bf16.mxu1 %v10686_v36  ;;  %2892 = vperm.xlu1 %9278, %v10135_v6   ;;  %v10708_v48 = vmax.f32 %v390_v7, %v432_v35  ;;  %v785_v61 = vrot.slane %v10680_v57, 7 }
 0x141   :  { %v10698_v52 = vsel %vm789_vm1, %v13040_v33, %v13039_v63  ;;  %13042 = vst [vmem:[#allocation136_spill] sm:$0xff] %v10700_v51  ;;  %v10710_v15 = vmax.f32 %v393_v10, %v433_v38  ;;  %2920 = vperm.xlu0 %9279, %v10166_v14   ;;  %v10713_v24 = vpop.permute.xlu1 %2040  ;;  %v10717_v56 = vpack.c.bf16 %v10655_v44, %v10689_v23  ;;  %v418_v33 = vmul.f32 0.2, %v334_v32  ;;  %v10723_v30 = vpop.permute.xlu0 %2052 }
 0x142   :  { %13041 = vst [vmem:[#allocation135_spill] sm:$0xff] %v10698_v52  ;;  %13043 = vst [vmem:[#allocation137_spill] sm:$0xff] %v10702_v31  ;;  %v1019_v63 = vmul.f32 %v10100_v60, %v10620_v20  ;;  %v10721_v6 = vmax.f32 %v326_v21, %v416_v0  ;;  %v786_v7 = vrot.slane %v10702_v31, 7  ;;  %v10727_v11 = vmax.f32 %v337_v27, %v419_v28 }
 0x143   :  { %13044 = vst [vmem:[#allocation138_spill] sm:$0xff] %v10708_v48  ;;  %13045 = vst [vmem:[#allocation139_spill] sm:$0xff] %v10710_v15  ;;  %7489 = vmatpush3.bf16.msra.mxu1 %v10717_v56  ;;  %v10732_v14 = vpack.c.bf16 %v10710_v15, %v10708_v48  ;;  %v12765_v35 = vrot.slane %v10710_v15, 7  ;;  %v13051_v10 = vrot.slane %v10510_v45, 7  ;;  %v12772_v0 = vrot.slane %v10680_v57, 1 }
 0x144   :  { %13046 = vst [vmem:[#allocation140_spill] sm:$0xff] %v10713_v24  ;;  %13047 = vst [vmem:[#allocation141_spill] sm:$0xff] %v10721_v6  ;;  %2900 = vperm.xlu1 %9278, %v10146_v9   ;;  %v10739_v21 = vpack.c.bf16 %v10700_v51, %v10721_v6  ;;  %v10743_v27 = vsel %vm789_vm1, %v785_v61, %v786_v7  ;;  %v760_v60 = vrot.slane %v10563_v49, 7  ;;  %v759_v20 = vrot.slane %v10559_v29, 7 }
 0x145   :  { %13048 = vst [vmem:[#allocation142_spill] sm:$0xff] %v10723_v30  ;;  %13049 = vst [vmem:[#allocation143_spill] sm:$0xff] %v10727_v11  ;;  %v10749_v38 = vsel %vm789_vm1, %v786_v7, %v13051_v10  ;;  %2928 = vperm.xlu0 %9279, %v10185_v19   ;;  %v10754_v9 = vpop.permute.xlu1 %2048  ;;  %7490 = vmatprep.subr.bf16.mxu1 %v10732_v14  ;;  %v10761_v2 = vsel %vm789_vm1, %v12765_v35, %v785_v61  ;;  %v13055_v61 = vrot.slane %v10710_v15, 1 }
 0x146   :  { %13050 = vst [vmem:[#allocation144_spill] sm:$0xff] %v10743_v27  ;;  %13052 = vst [vmem:[#allocation145_spill] sm:$0xff] %v10749_v38  ;;  %v1015_v28 = vmul.f32 %v10096_v59, %v10743_v27  ;;  %v1016_v7 = vmul.f32 %v10085_v54, %v10749_v38  ;;  %v10769_v10 = vpack.c.bf16 %v10702_v31, %v10680_v57  ;;  %v762_v27 = vrot.slane %v10561_v50, 7  ;;  %v13070_v38 = vld [vmem:[#allocation10_spill] sm:$0xff] }
 0x147   :  { %13053 = vst [vmem:[#allocation146_spill] sm:$0xff] %v10754_v9  ;;  %13054 = vst [vmem:[#allocation147_spill] sm:$0xff] %v10761_v2  ;;  %v1014_v19 = vmul.f32 %v10087_v55, %v10761_v2  ;;  %v10780_v35 = vsel %vm1962_vm2, %v13055_v61, %v12772_v0  ;;  %v10782_v59 = vmax.f32 %v334_v32, %v418_v33  ;;  %7491 = vmatpush3.bf16.msra.mxu1 %v10739_v21  ;;  %v10788_v55 = vpop.permute.xlu0 %2060 }
 0x148   :  { %13056 = vst [vmem:[#allocation148_spill] sm:$0xff] %v10780_v35  ;;  %v1017_v54 = vmul.f32 %v10094_v58, %v10698_v52  ;;  %13058 = vst [vmem:[#allocation150_spill] sm:$0xff] %v10788_v55  ;;  %7492 = vmatprep.subr.bf16.mxu1 %v10769_v10  ;;  %2908 = vperm.xlu1 %9278, %v10160_v13   ;;  %v761_v61 = vrot.slane %v10605_v16, 7  ;;  %v1048_v0 = vpack.c.bf16 %v1019_v63, %v1018_v1  ;;  %v9312_v13 = vld [vmem:[%s12704_s3 + $0x108] sm:$0xff]  }
 0x149   :  { %13057 = vst [vmem:[#allocation149_spill] sm:$0xff] %v10782_v59  ;;  %v1046_v2 = vpack.c.bf16 %v1015_v28, %v1014_v19  ;;  %2936 = vperm.xlu0 %9279, %v10381_v41   ;;  %v10794_v32 = vpop.permute.xlu1 %2056  ;;  %v10798_v33 = vpack.c.bf16 %v10727_v11, %v10782_v59  ;;  %v10803_v39 = vsel %vm789_vm1, %v759_v20, %v760_v60  ;;  %v13063_v1 = vrot.slane %v10514_v46, 7  ;;  %v13073_v55 = vld [vmem:[#allocation73_spill] sm:$0xff] }
 0x14a   :  { %13059 = vst [vmem:[#allocation151_spill] sm:$0xff] %v10794_v32  ;;  %v1047_v58 = vpack.c.bf16 %v1017_v54, %v1016_v7  ;;  %13060 = vst [vmem:[#allocation152_spill] sm:$0xff] %v10803_v39  ;;  %v10811_v28 = vsel %vm789_vm1, %v761_v61, %v762_v27  ;;  %v10815_v7 = vsel %vm789_vm1, %v760_v60, %v761_v61  ;;  %v13067_v54 = vld [vmem:[#allocation8_spill] sm:$0xff]  ;;  %v770_v9 = vrot.slane %v10727_v11, 7 }
 0x14b   :  { %8288 = vmatprep.mubr.bf16.mxu0 %v1046_v2  ;;  %7493 = vmatpush3.bf16.msra.mxu1 %v10798_v33  ;;  %13061 = vst [vmem:[#allocation153_spill] sm:$0xff] %v10811_v28  ;;  %13062 = vst [vmem:[#allocation154_spill] sm:$0xff] %v10815_v7  ;;  %v10822_v63 = vsel %vm789_vm1, %v13063_v1, %v759_v20  ;;  %v13065_v2 = vld [vmem:[#allocation23_spill] sm:$0xff]  ;;  %v10830_v60 = vpop.permute.xlu0 %2068  ;;  %v1023_v52 = vmul.f32 %v13070_v38, %v10811_v28  ;;  %v764_v20 = vrot.slane %v10637_v42, 7  ;;  %v9313_v1 = vld [vmem:[%s12704_s3 + $0x110] sm:$0xff]  }
 0x14c   :  { %8289 = vmatmul.mubr.bf16.vlgmr.msra.gmra.mrb[32].mxu0 %v1047_v58  ;;  %2916 = vperm.xlu1 %9278, %v10179_v18   ;;  %13064 = vst [vmem:[#allocation155_spill] sm:$0xff] %v10822_v63  ;;  %v1021_v58 = vmul.f32 %v13067_v54, %v10803_v39  ;;  %13068 = vst [vmem:[#allocation8_spill] sm:$0xff] %v10830_v60  ;;  %v766_v54 = vrot.slane %v10655_v44, 7  ;;  %v13072_v39 = vld [vmem:[#allocation20_spill] sm:$0xff]  ;;  %v763_v60 = vrot.slane %v10646_v47, 7  ;;  %v765_v28 = vrot.slane %v10689_v23, 7 }
 0x14d   :  { %8292 = vmatprep.mubr.bf16.mxu0 %v1048_v0  ;;  %2944 = vperm.xlu0 %9279, %v10401_v37   ;;  %v10826_v19 = vpop.permute.xlu1 %2064  ;;  %v13069_v0 = vld [vmem:[#allocation11_spill] sm:$0xff]  ;;  %v781_v47 = vrot.slane %v10665_v43, 7 }
 0x14e   :  { %8321 = vmatpush3.bf16.msra.mxu0 %v13065_v2  ;;  %13066 = vst [vmem:[#allocation23_spill] sm:$0xff] %v10826_v19  ;;  %v1022_v61 = vmul.f32 %v13069_v0, %v10815_v7  ;;  %v13071_v2 = vld [vmem:[#allocation9_spill] sm:$0xff]  ;;  %v10851_v30 = vsel %vm789_vm1, %v763_v60, %v764_v20  ;;  %v11077_v43 = vld [vmem:[%s12706_s5 + $0x58] sm:$0xff] }
 0x14f   :  { %8322 = vmatprep.subr.bf16.mxu0 %v9312_v13  ;;  %v1020_v35 = vmul.f32 %v13071_v2, %v10822_v63  ;;  %13075 = vst [vmem:[#allocation10_spill] sm:$0xff] %v10851_v30  ;;  %v9314_v2 = vld [vmem:[%s12704_s3 + $0x118] sm:$0xff]   ;;  %v10858_v63 = vsel %vm789_vm1, %v765_v28, %v766_v54 }
 0x150   :  { %2924 = vperm.xlu1 %9278, %v13072_v39   ;;  %v1050_v7 = vpack.c.bf16 %v1023_v52, %v1022_v61  ;;  %13076 = vst [vmem:[#allocation9_spill] sm:$0xff] %v10858_v63  ;;  %v13079_v52 = vld [vmem:[#allocation24_spill] sm:$0xff]  ;;  %v13081_v61 = vld [vmem:[#allocation77_spill] sm:$0xff] }
 0x151   :  { %2952 = vperm.xlu0 %9279, %v13073_v55   ;;  %v10846_v0 = vpop.permute.xlu1 %2072  ;;  %v1049_v38 = vpack.c.bf16 %v1021_v58, %v1020_v35  ;;  %v10862_v35 = vsel %vm789_vm1, %v764_v20, %v765_v28  ;;  %v10869_v58 = vsel %vm789_vm1, %v762_v27, %v763_v60  ;;  %v13084_v28 = vld [vmem:[#allocation15_spill] sm:$0xff]  ;;  %v9315_v27 = vld [vmem:[%s12704_s3 + $0x120] sm:$0xff]   ;;  %v13086_v60 = vld [vmem:[#allocation13_spill] sm:$0xff] }
 0x152   :  { %13074 = vst [vmem:[#allocation11_spill] sm:$0xff] %v10846_v0  ;;  %8323 = vmatpush3.bf16.msra.mxu0 %v9312_v13  ;;  %13077 = vst [vmem:[#allocation20_spill] sm:$0xff] %v10862_v35  ;;  %v10864_v13 = vpop.permute.xlu0 %2076  ;;  %v13083_v0 = vld [vmem:[#allocation12_spill] sm:$0xff]  ;;  %v1026_v20 = vmul.f32 %v13084_v28, %v10862_v35  ;;  %v13088_v28 = vld [vmem:[#allocation81_spill] sm:$0xff] }
 0x153   :  { %8324 = vmatprep.subr.bf16.mxu0 %v9313_v1  ;;  %13078 = vst [vmem:[#allocation73_spill] sm:$0xff] %v10864_v13  ;;  %13080 = vst [vmem:[#allocation24_spill] sm:$0xff] %v10869_v58  ;;  %v1025_v19 = vmul.f32 %v13083_v0, %v10851_v30  ;;  %v13085_v13 = vld [vmem:[#allocation14_spill] sm:$0xff]  ;;  %v13087_v0 = vld [vmem:[#allocation27_spill] sm:$0xff] }
 0x154   :  { %8293 = vmatmul.mubr.bf16.gmra.mrb[36].mxu0 %v1049_v38  ;;  %2932 = vperm.xlu1 %9278, %v13079_v52   ;;  %v1027_v32 = vmul.f32 %v13085_v13, %v10858_v63  ;;  %v769_v63 = vrot.slane %v10782_v59, 7 }
 0x155   :  { %8296 = vmatprep.mubr.bf16.mxu0 %v1050_v7  ;;  %2960 = vperm.xlu0 %9279, %v13081_v61   ;;  %v10872_v38 = vpop.permute.xlu1 %2080  ;;  %v768_v7 = vrot.slane %v10700_v51, 7 }
 0x156   :  { %13082 = vst [vmem:[#allocation77_spill] sm:$0xff] %v10872_v38  ;;  %8325 = vmatpush3.bf16.msra.mxu0 %v9313_v1  ;;  %v1024_v38 = vmul.f32 %v13086_v60, %v10869_v58  ;;  %v767_v1 = vrot.slane %v10721_v6, 7  ;;  %v10893_v30 = vpop.permute.xlu0 %2084  ;;  %v1052_v24 = vpack.c.bf16 %v1027_v32, %v1026_v20  ;;  %v9316_v58 = vld [vmem:[%s12704_s3 + $0x128] sm:$0xff]   ;;  %v13097_v20 = vld [vmem:[#allocation16_spill] sm:$0xff]  ;;  %v13099_v6 = vld [vmem:[#allocation18_spill] sm:$0xff] }
 0x157   :  { %8326 = vmatprep.subr.bf16.mxu0 %v9314_v2  ;;  %13090 = vst [vmem:[#allocation15_spill] sm:$0xff] %v10893_v30  ;;  %v13098_v30 = vld [vmem:[#allocation19_spill] sm:$0xff] }
 0x158   :  { %2940 = vperm.xlu1 %9278, %v13087_v0   ;;  %v1051_v13 = vpack.c.bf16 %v1025_v19, %v1024_v38  ;;  %v10897_v60 = vsel %vm789_vm1, %v767_v1, %v768_v7  ;;  %v10908_v19 = vsel %vm789_vm1, %v768_v7, %v769_v63  ;;  %v10913_v32 = vsel %vm789_vm1, %v766_v54, %v767_v1  ;;  %v13096_v38 = vld [vmem:[#allocation85_spill] sm:$0xff] }
 0x159   :  { %2968 = vperm.xlu0 %9279, %v13088_v28   ;;  %v10890_v35 = vpop.permute.xlu1 %2088  ;;  %13091 = vst [vmem:[#allocation14_spill] sm:$0xff] %v10897_v60  ;;  %13093 = vst [vmem:[#allocation27_spill] sm:$0xff] %v10908_v19  ;;  %v1030_v59 = vmul.f32 %v13098_v30, %v10908_v19  ;;  %v772_v7 = vrot.slane %v10502_v53, 7  ;;  %v13101_v1 = vld [vmem:[#allocation17_spill] sm:$0xff]  ;;  %v13103_v30 = vld [vmem:[#allocation67_spill] sm:$0xff] }
 0x15a   :  { %13089 = vst [vmem:[#allocation12_spill] sm:$0xff] %v10890_v35  ;;  %8327 = vmatpush3.bf16.msra.mxu0 %v9314_v2  ;;  %v10904_v35 = vsel %vm789_vm1, %v769_v63, %v770_v9  ;;  %v13094_v2 = vld [vmem:[#allocation64_spill] sm:$0xff]  ;;  %13095 = vst [vmem:[#allocation81_spill] sm:$0xff] %v10913_v32  ;;  %v1028_v11 = vmul.f32 %v13101_v1, %v10913_v32  ;;  %v9318_v1 = vld [vmem:[%s12704_s3 + $0x138] sm:$0xff]  }
 0x15b   :  { %8328 = vmatprep.subr.bf16.mxu0 %v9315_v27  ;;  %13092 = vst [vmem:[#allocation13_spill] sm:$0xff] %v10904_v35  ;;  %v1031_v63 = vmul.f32 %v13099_v6, %v10904_v35  ;;  %v771_v6 = vrot.slane %v10498_v3, 7  ;;  %v13104_v35 = vld [vmem:[#allocation96_spill] sm:$0xff]  ;;  %v13114_v3 = vld [vmem:[#allocation38_spill] sm:$0xff] }
 0x15c   :  { %8297 = vmatmul.mubr.bf16.gmra.mrb[40].mxu0 %v1051_v13  ;;  %2948 = vperm.xlu1 %9278, %v13094_v2   ;;  %v1029_v13 = vmul.f32 %v13097_v20, %v10897_v60  ;;  %v10931_v20 = vpop.permute.xlu0 %2092  ;;  %v13105_v60 = vld [vmem:[#allocation95_spill] sm:$0xff] }
 0x15d   :  { %8300 = vmatprep.mubr.bf16.mxu0 %v1052_v24  ;;  %2976 = vperm.xlu0 %9279, %v13096_v38   ;;  %v9317_v24 = vld [vmem:[%s12704_s3 + $0x130] sm:$0xff]   ;;  %v10926_v54 = vpop.permute.xlu1 %2096  ;;  %13102 = vst [vmem:[#allocation85_spill] sm:$0xff] %v10931_v20  ;;  %v773_v53 = vrot.slane %v13105_v60, 7  ;;  %v1054_v51 = vpack.c.bf16 %v1031_v63, %v1030_v59  ;;  %v10955_v59 = vsel %vm789_vm1, %v770_v9, %v771_v6  ;;  %v9698_v63 = vmov 6  }
 0x15e   :  { %8329 = vmatpush3.bf16.msra.mxu0 %v9315_v27  ;;  %13100 = vst [vmem:[#allocation64_spill] sm:$0xff] %v10926_v54  ;;  %v774_v27 = vrot.slane %v10500_v4, 7  ;;  %v1053_v19 = vpack.c.bf16 %v1029_v13, %v1028_v11  ;;  %v10939_v54 = vsel %vm789_vm1, %v771_v6, %v772_v7  ;;  %13110 = vst [vmem:[#allocation17_spill] sm:$0xff] %v10955_v59  ;;  %v776_v9 = vrot.slane %v10575_v8, 7  ;;  %v10972_v6 = vld [vmem:[%s12704_s3 + $0x40] sm:$0xff]  }
 0x15f   :  { %8330 = vmatprep.subr.bf16.mxu0 %v9316_v58  ;;  %13106 = vst [vmem:[#allocation16_spill] sm:$0xff] %v10939_v54  ;;  %v10950_v11 = vsel %vm789_vm1, %v772_v7, %v773_v53 }
 0x160   :  { %2956 = vperm.xlu1 %9278, %v13103_v30   ;;  %v10946_v32 = vsel %vm789_vm1, %v773_v53, %v774_v27  ;;  %13108 = vst [vmem:[#allocation18_spill] sm:$0xff] %v10950_v11  ;;  %v10961_v60 = vpop.permute.xlu0 %2100  ;;  %v13115_v53 = vld [vmem:[#allocation26_spill] sm:$0xff] }
 0x161   :  { %2984 = vperm.xlu0 %9279, %v13104_v35   ;;  %13107 = vst [vmem:[#allocation19_spill] sm:$0xff] %v10946_v32  ;;  %v10957_v13 = vpop.permute.xlu1 %2104  ;;  %13113 = vst [vmem:[#allocation96_spill] sm:$0xff] %v10961_v60  ;;  %v1034_v7 = vmul.f32 %v13115_v53, %v10950_v11  ;;  %v775_v53 = vrot.slane %v10571_v22, 7  ;;  %v13119_v60 = vld [vmem:[#allocation111_spill] sm:$0xff]  ;;  %v780_v22 = vrot.slane %v10641_v12, 7 }
 0x162   :  { %8331 = vmatpush3.bf16.msra.mxu0 %v9316_v58  ;;  %v13109_v58 = vld [vmem:[#allocation70_spill] sm:$0xff]  ;;  %13111 = vst [vmem:[#allocation67_spill] sm:$0xff] %v10957_v13 }
 0x163   :  { %8332 = vmatprep.subr.bf16.mxu0 %v9317_v24 }
 0x164   :  { %8301 = vmatmul.mubr.bf16.gmra.mrb[44].mxu0 %v1053_v19  ;;  %2964 = vperm.xlu1 %9278, %v13109_v58   ;;  %v13112_v19 = vld [vmem:[#allocation21_spill] sm:$0xff] }
 0x165   :  { %8304 = vmatprep.mubr.bf16.mxu0 %v1054_v51  ;;  %9280 = vset.pattern.permute.xlu0 %v9698_v63  ;;  %v1033_v20 = vmul.f32 %v13112_v19, %v10939_v54  ;;  %v13116_v51 = vld [vmem:[#allocation25_spill] sm:$0xff]  ;;  %v778_v54 = vrot.slane %v10573_v5, 7  ;;  %v779_v5 = vrot.slane %v10639_v34, 7 }
 0x166   :  { %8333 = vmatpush3.bf16.msra.mxu0 %v9317_v24  ;;  %3298 = vperm.xlu0 %9280, %v13114_v3   ;;  %v1035_v4 = vmul.f32 %v13116_v51, %v10946_v32  ;;  %v13117_v24 = vld [vmem:[#allocation22_spill] sm:$0xff]  ;;  %v777_v51 = vrot.slane %v13119_v60, 7  ;;  %v10983_v32 = vld [vmem:[%s12706_s5 + $0x18] sm:$0xff]  ;;  %v11013_v60 = vld [vmem:[%s12706_s5 + $0x28] sm:$0xff] }
 0x167   :  { %8334 = vmatprep.subr.bf16.mxu0 %v9318_v1  ;;  %v1032_v19 = vmul.f32 %v13117_v24, %v10955_v59  ;;  %v13118_v3 = vld [vmem:[#allocation74_spill] sm:$0xff]  ;;  %v10988_v24 = vsel %vm789_vm1, %v775_v53, %v776_v9  ;;  %v10991_v59 = vpop.permute.xlu1 %2112 }
 0x168   :  { %2972 = vperm.xlu1 %9278, %v13118_v3   ;;  %v1056_v13 = vpack.c.bf16 %v1035_v4, %v1034_v7  ;;  %13120 = vst [vmem:[#allocation70_spill] sm:$0xff] %v10988_v24  ;;  %13121 = vst [vmem:[#allocation21_spill] sm:$0xff] %v10991_v59  ;;  %v13125_v4 = vld [vmem:[#allocation78_spill] sm:$0xff]  ;;  %v11006_v7 = vsel %vm789_vm1, %v774_v27, %v775_v53  ;;  %v13127_v59 = vld [vmem:[#allocation28_spill] sm:$0xff] }
 0x169   :  { %v1055_v11 = vpack.c.bf16 %v1033_v20, %v1032_v19  ;;  %v10995_v20 = vsel %vm789_vm1, %v777_v51, %v778_v54  ;;  %v11001_v19 = vpop.permute.xlu0 %2108  ;;  %13126 = vst [vmem:[#allocation22_spill] sm:$0xff] %v11006_v7  ;;  %v13130_v27 = vld [vmem:[#allocation29_spill] sm:$0xff] }
 0x16a   :  { %8335 = vmatpush3.bf16.msra.mxu0 %v9318_v1  ;;  %3310 = vperm.xlu0 %9280, %v10983_v32   ;;  %13122 = vst [vmem:[#allocation38_spill] sm:$0xff] %v10995_v20  ;;  %v10999_v1 = vsel %vm789_vm1, %v776_v9, %v777_v51  ;;  %13124 = vst [vmem:[#allocation25_spill] sm:$0xff] %v11001_v19  ;;  %v13128_v9 = vld [vmem:[#allocation31_spill] sm:$0xff]  ;;  %v13129_v19 = vld [vmem:[#allocation30_spill] sm:$0xff]  ;;  %v1036_v53 = vmul.f32 %v13130_v27, %v11006_v7 }
 0x16b   :  { %8368 = vmatprep.subr.bf16.mxu0 %v10972_v6  ;;  %13123 = vst [vmem:[#allocation26_spill] sm:$0xff] %v10999_v1  ;;  %v1038_v51 = vmul.f32 %v13128_v9, %v10999_v1  ;;  %v11026_v8 = vpop.permute.xlu1 %2120  ;;  %v11051_v1 = vsel %vm789_vm1, %v778_v54, %v779_v5  ;;  %v13143_v54 = vld [vmem:[#allocation33_spill] sm:$0xff] }
 0x16c   :  { %8305 = vmatmul.mubr.bf16.gmra.mrb[48].mxu0 %v1055_v11  ;;  %2980 = vperm.xlu1 %9278, %v13125_v4   ;;  %v1037_v11 = vmul.f32 %v13127_v59, %v10988_v24  ;;  %v782_v59 = vrot.slane %v10650_v26, 7  ;;  %v13131_v24 = vld [vmem:[#allocation82_spill] sm:$0xff]  ;;  %13132 = vst [vmem:[#allocation74_spill] sm:$0xff] %v11026_v8  ;;  %13137 = vst [vmem:[#allocation29_spill] sm:$0xff] %v11051_v1 }
 0x16d   :  { %8308 = vmatprep.mubr.bf16.mxu0 %v1056_v13  ;;  %v1039_v13 = vmul.f32 %v13129_v19, %v10995_v20  ;;  %v11029_v9 = vpop.permute.xlu0 %2116  ;;  %v11034_v19 = vld [vmem:[%s12706_s5 + $0x38] sm:$0xff]  ;;  %v11039_v20 = vsel %vm789_vm1, %v779_v5, %v780_v22 }
 0x16e   :  { %3318 = vperm.xlu0 %9280, %v11013_v60   ;;  %v1057_v23 = vpack.c.bf16 %v1037_v11, %v1036_v53  ;;  %13133 = vst [vmem:[#allocation78_spill] sm:$0xff] %v11029_v9  ;;  %13134 = vst [vmem:[#allocation28_spill] sm:$0xff] %v11039_v20  ;;  %v11043_v11 = vsel %vm789_vm1, %v781_v47, %v782_v59  ;;  %v11047_v53 = vsel %vm789_vm1, %v780_v22, %v781_v47  ;;  %v13140_v47 = vld [vmem:[#allocation35_spill] sm:$0xff] }
 0x16f   :  { %v1058_v27 = vpack.c.bf16 %v1039_v13, %v1038_v51  ;;  %13135 = vst [vmem:[#allocation31_spill] sm:$0xff] %v11043_v11  ;;  %13136 = vst [vmem:[#allocation30_spill] sm:$0xff] %v11047_v53  ;;  %v13138_v51 = vld [vmem:[#allocation43_spill] sm:$0xff]  ;;  %v13139_v13 = vld [vmem:[#allocation32_spill] sm:$0xff]  ;;  %v1042_v22 = vmul.f32 %v13140_v47, %v11047_v53  ;;  %v11066_v5 = vpop.permute.xlu1 %2434 }
 0x170   :  { %2988 = vperm.xlu1 %9278, %v13131_v24   ;;  %v1041_v7 = vmul.f32 %v13139_v13, %v11039_v20  ;;  %13142 = vst [vmem:[#allocation82_spill] sm:$0xff] %v11066_v5  ;;  %v783_v13 = vrot.slane %v10708_v48, 7  ;;  %v13145_v20 = vld [vmem:[#allocation46_spill] sm:$0xff] }
 0x171   :  { %v11070_v9 = vpop.permute.xlu0 %2430 }
 0x172   :  { %3326 = vperm.xlu0 %9280, %v11034_v19   ;;  %13144 = vst [vmem:[#allocation43_spill] sm:$0xff] %v11070_v9 }
 0x174   :  { %8309 = vmatmul.mubr.bf16.gmra.mrb[52].mxu0 %v1057_v23  ;;  %9281 = vset.pattern.permute.xlu1 %v9698_v63  ;;  %v11059_v23 = vld [vmem:[%s12706_s5 + $0x48] sm:$0xff]  ;;  %v13141_v63 = vld [vmem:[#allocation34_spill] sm:$0xff] }
 0x175   :  { %8312 = vmatprep.mubr.bf16.mxu0 %v1058_v27  ;;  %3302 = vperm.xlu1 %9281, %v13138_v51   ;;  %v1043_v27 = vmul.f32 %v13141_v63, %v11043_v11  ;;  %v1040_v51 = vmul.f32 %v13143_v54, %v11051_v1  ;;  %v13146_v63 = vrot.slane %v10710_v15, 7  ;;  %v13151_v11 = vld [vmem:[#allocation36_spill] sm:$0xff] }
 0x176   :  { %3334 = vperm.xlu0 %9280, %v11059_v23  }
 0x177   :  { %v1059_v8 = vpack.c.bf16 %v1041_v7, %v1040_v51  ;;  %v1060_v47 = vpack.c.bf16 %v1043_v27, %v1042_v22  ;;  %v11084_v54 = vsel %vm789_vm1, %v783_v13, %v13146_v63  ;;  %v11090_v7 = vpop.permute.xlu1 %2438  ;;  %v13150_v51 = vld [vmem:[#allocation49_spill] sm:$0xff]  ;;  %v11095_v22 = vpop.permute.xlu0 %2442 }
 0x178   :  { %13147 = vst [vmem:[#allocation32_spill] sm:$0xff] %v11084_v54  ;;  %13149 = vst [vmem:[#allocation34_spill] sm:$0xff] %v11090_v7  ;;  %v1045_v53 = vmul.f32 %v13151_v11, %v11084_v54  ;;  %v13153_v27 = vld [vmem:[#allocation37_spill] sm:$0xff]  ;;  %v13158_v11 = vld [vmem:[#allocation55_spill] sm:$0xff] }
 0x179   :  { %3306 = vperm.xlu1 %9281, %v13145_v20   ;;  %v11088_v20 = vsel %vm789_vm1, %v782_v59, %v783_v13  ;;  %13152 = vst [vmem:[#allocation33_spill] sm:$0xff] %v11095_v22  ;;  %v9334_v7 = vld [vmem:[%s12704_s3 + $0xb8] sm:$0xff]  }
 0x17a   :  { %3342 = vperm.xlu0 %9280, %v11077_v43   ;;  %13148 = vst [vmem:[#allocation35_spill] sm:$0xff] %v11088_v20  ;;  %v1044_v63 = vmul.f32 %v13153_v27, %v11088_v20  ;;  %v13161_v27 = vld [vmem:[#allocation102_spill] sm:$0xff] }
 0x17b   :  { %v11102_v59 = vpop.permute.xlu1 %2446  ;;  %v11104_v13 = vpop.permute.xlu0 %2450 }
 0x17c   :  { %8313 = vmatmul.mubr.bf16.gmra.mrb[56].mxu0 %v1059_v8  ;;  %v13154_v8 = vld [vmem:[#allocation52_spill] sm:$0xff]  ;;  %13155 = vst [vmem:[#allocation46_spill] sm:$0xff] %v11102_v59  ;;  %13156 = vst [vmem:[#allocation49_spill] sm:$0xff] %v11104_v13 }
 0x17d   :  { %8316 = vmatprep.mubr.bf16.mxu0 %v1060_v47  ;;  %3314 = vperm.xlu1 %9281, %v13150_v51   ;;  %v1061_v47 = vpack.c.bf16 %v1045_v53, %v1044_v63  ;;  %v13157_v51 = vld [vmem:[#allocation98_spill] sm:$0xff]  ;;  %v9320_v53 = vld [vmem:[%s12704_s3 + $0x48] sm:$0xff]  }
 0x17e   :  { %3350 = vperm.xlu0 %9280, %v10179_v18   ;;  %v13162_v63 = vld [vmem:[#allocation114_spill] sm:$0xff] }
 0x17f   :  { %v11109_v18 = vpop.permute.xlu1 %2454 }
 0x180   :  { %13159 = vst [vmem:[#allocation36_spill] sm:$0xff] %v11109_v18  ;;  %v13228_v18 = vld [vmem:[#allocation60_spill] sm:$0xff] }
 0x181   :  { %3322 = vperm.xlu1 %9281, %v13154_v8  }
 0x182   :  { %3358 = vperm.xlu0 %9280, %v13072_v39   ;;  %v11115_v39 = vpop.permute.xlu0 %2458 }
 0x183   :  { %13160 = vst [vmem:[#allocation37_spill] sm:$0xff] %v11115_v39  ;;  %v13226_v39 = vld [vmem:[#allocation58_spill] sm:$0xff] }
 0x184   :  { %8317 = vmatmul.mubr.bf16.gmra.mrb[60].mxu0 %v1061_v47  ;;  %v11147_v47 = vld [vmem:[%s12706_s5 + $0x80] sm:$0xff]  ;;  %v13331_v25 = vld [vmem:[#allocation46_spill] sm:$0xff] }
 0x185   :  { %8336 = vmatprep.mubr.bf16.mxu0 %v13157_v51  ;;  %3330 = vperm.xlu1 %9281, %v13158_v11   ;;  %v9323_v51 = vld [vmem:[%s12704_s3 + $0x60] sm:$0xff]  }
 0x186   :  { %3366 = vperm.xlu0 %9280, %v13079_v52   ;;  %v11126_v52 = vpop.permute.xlu1 %2462  ;;  %v11128_v8 = vpop.permute.xlu0 %2466 }
 0x187   :  { %13163 = vst [vmem:[#allocation52_spill] sm:$0xff] %v11126_v52  ;;  %13164 = vst [vmem:[#allocation98_spill] sm:$0xff] %v11128_v8  ;;  %v11401_v8 = vld [vmem:[%s12706_s5 + $0x98] sm:$0xff]  ;;  %v13227_v52 = vld [vmem:[#allocation149_spill] sm:$0xff] }
 0x188   :  { %v1640_v13 = vmul.f32 %v13228_v18, %v13227_v52 }
 0x189   :  { %3338 = vperm.xlu1 %9281, %v10330_v62   ;;  %v9321_v62 = vld [vmem:[%s12704_s3 + $0x50] sm:$0xff]  }
 0x18a   :  { %3374 = vperm.xlu0 %9280, %v13087_v0   ;;  %v11133_v0 = vld [vmem:[%s12706_s5 + $0x70] sm:$0xff] }
 0x18c   :  { %8337 = vmatmul.mubr.bf16.vlgmr.msra.gmra.mrb[32].mxu0 %v13161_v27  ;;  %v13175_v27 = vld [vmem:[#allocation100_spill] sm:$0xff] }
 0x18d   :  { %8340 = vmatprep.mubr.bf16.mxu0 %v13162_v63  ;;  %8369 = vmatpush3.bf16.msra.mxu0 %v10972_v6  ;;  %v11142_v6 = vpop.permute.xlu1 %2470  ;;  %v13176_v63 = vld [vmem:[#allocation112_spill] sm:$0xff] }
 0x18e   :  { %3346 = vperm.xlu1 %9281, %v10341_v17   ;;  %8370 = vmatprep.subr.bf16.mxu0 %v9320_v53  ;;  %v9322_v17 = vld [vmem:[%s12704_s3 + $0x58] sm:$0xff]   ;;  %13166 = vst [vmem:[#allocation55_spill] sm:$0xff] %v11142_v6 }
 0x18f   :  { %3382 = vperm.xlu0 %9280, %v13094_v2   ;;  %v13165_v2 = vld [vmem:[#allocation131_spill] sm:$0xff] }
 0x191   :  { %8371 = vmatpush3.bf16.msra.mxu0 %v9320_v53  ;;  %v11161_v11 = vpop.permute.xlu1 %2478 }
 0x192   :  { %3354 = vperm.xlu1 %9281, %v11133_v0   ;;  %8372 = vmatprep.subr.bf16.mxu0 %v9321_v62  ;;  %13168 = vst [vmem:[#allocation114_spill] sm:$0xff] %v11161_v11 }
 0x193   :  { %3390 = vperm.xlu0 %9280, %v13103_v30   ;;  %v11153_v30 = vpop.permute.xlu0 %2474 }
 0x194   :  { %8341 = vmatmul.mubr.bf16.gmra.mrb[36].mxu0 %v10628_v40  ;;  %13167 = vst [vmem:[#allocation102_spill] sm:$0xff] %v11153_v30  ;;  %v9324_v40 = vld [vmem:[%s12704_s3 + $0x68] sm:$0xff]   ;;  %v13216_v30 = vld [vmem:[#allocation56_spill] sm:$0xff] }
 0x195   :  { %8344 = vmatprep.mubr.bf16.mxu0 %v13165_v2  ;;  %8373 = vmatpush3.bf16.msra.mxu0 %v9321_v62 }
 0x196   :  { %3362 = vperm.xlu1 %9281, %v11147_v47   ;;  %8374 = vmatprep.subr.bf16.mxu0 %v9322_v17 }
 0x197   :  { %3398 = vperm.xlu0 %9280, %v13109_v58   ;;  %v11164_v53 = vpop.permute.xlu0 %2482  ;;  %v11172_v58 = vpop.permute.xlu1 %2486 }
 0x198   :  { %13169 = vst [vmem:[#allocation131_spill] sm:$0xff] %v11164_v53  ;;  %13170 = vst [vmem:[#allocation156_spill] sm:$0xff] %v11172_v58  ;;  %v13215_v53 = vld [vmem:[#allocation134_spill] sm:$0xff] }
 0x199   :  { %8375 = vmatpush3.bf16.msra.mxu0 %v9322_v17  ;;  %v1636_v11 = vmul.f32 %v13216_v30, %v13215_v53 }
 0x19a   :  { %3370 = vperm.xlu1 %9281, %v10381_v41   ;;  %8376 = vmatprep.subr.bf16.mxu0 %v9323_v51  ;;  %v9325_v41 = vld [vmem:[%s12704_s3 + $0x70] sm:$0xff]  }
 0x19b   :  { %3406 = vperm.xlu0 %9280, %v13118_v3   ;;  %v9699_v3 = vmov 7  }
 0x19c   :  { %8345 = vmatmul.mubr.bf16.gmra.mrb[40].mxu0 %v10717_v56  ;;  %v9326_v56 = vld [vmem:[%s12704_s3 + $0x78] sm:$0xff]  }
 0x19d   :  { %8348 = vmatprep.mubr.bf16.mxu0 %v10739_v21  ;;  %8377 = vmatpush3.bf16.msra.mxu0 %v9323_v51  ;;  %v11178_v21 = vpop.permute.xlu0 %2490  ;;  %v11226_v51 = vld [vmem:[%s12706_s5 + $0x40] sm:$0xff] }
 0x19e   :  { %3378 = vperm.xlu1 %9281, %v10401_v37   ;;  %8378 = vmatprep.subr.bf16.mxu0 %v9324_v40  ;;  %13171 = vst [vmem:[#allocation157_spill] sm:$0xff] %v11178_v21  ;;  %v13172_v37 = vld [vmem:[#allocation97_spill] sm:$0xff] }
 0x19f   :  { %3414 = vperm.xlu0 %9280, %v13125_v4   ;;  %v11189_v4 = vpop.permute.xlu1 %2494 }
 0x1a0   :  { %13173 = vst [vmem:[#allocation97_spill] sm:$0xff] %v11189_v4  ;;  %v11338_v4 = vld [vmem:[%s12706_s5 + $0x68] sm:$0xff] }
 0x1a1   :  { %8379 = vmatpush3.bf16.msra.mxu0 %v9324_v40 }
 0x1a2   :  { %3386 = vperm.xlu1 %9281, %v13073_v55   ;;  %8380 = vmatprep.subr.bf16.mxu0 %v9325_v41  ;;  %v11187_v55 = vld [vmem:[%s12704_s3 + $0x80] sm:$0xff]  }
 0x1a3   :  { %3422 = vperm.xlu0 %9280, %v13131_v24   ;;  %v11194_v24 = vld [vmem:[%s12706_s5 + $0x8] sm:$0xff]  ;;  %v11209_v62 = vpop.permute.xlu1 %2502 }
 0x1a4   :  { %8349 = vmatmul.mubr.bf16.gmra.mrb[44].mxu0 %v10798_v33  ;;  %v11197_v33 = vpop.permute.xlu0 %2498  ;;  %13177 = vst [vmem:[#allocation100_spill] sm:$0xff] %v11209_v62  ;;  %v11304_v62 = vld [vmem:[%s12706_s5 + $0xa0] sm:$0xff] }
 0x1a5   :  { %8352 = vmatprep.mubr.bf16.mxu0 %v13172_v37  ;;  %8381 = vmatpush3.bf16.msra.mxu0 %v9325_v41  ;;  %13174 = vst [vmem:[#allocation158_spill] sm:$0xff] %v11197_v33  ;;  %v13182_v41 = vld [vmem:[#allocation128_spill] sm:$0xff] }
 0x1a6   :  { %3394 = vperm.xlu1 %9281, %v13081_v61   ;;  %8382 = vmatprep.subr.bf16.mxu0 %v9326_v56  ;;  %v11204_v61 = vld [vmem:[%s12706_s5 + $0x20] sm:$0xff] }
 0x1a7   :  { %9283 = vset.pattern.permute.xlu0 %v9699_v3  ;;  %v11221_v2 = vpop.permute.xlu1 %2510 }
 0x1a8   :  { %3736 = vperm.xlu0 %9283, %v11194_v24   ;;  %v11212_v17 = vpop.permute.xlu0 %2506  ;;  %13179 = vst [vmem:[#allocation159_spill] sm:$0xff] %v11221_v2 }
 0x1a9   :  { %8383 = vmatpush3.bf16.msra.mxu0 %v9326_v56  ;;  %13178 = vst [vmem:[#allocation112_spill] sm:$0xff] %v11212_v17  ;;  %v11242_v56 = vld [vmem:[%s12706_s5 + $0x50] sm:$0xff] }
 0x1aa   :  { %3402 = vperm.xlu1 %9281, %v13088_v28   ;;  %8416 = vmatprep.subr.bf16.mxu0 %v11187_v55  ;;  %v11217_v28 = vld [vmem:[%s12706_s5 + $0x30] sm:$0xff] }
 0x1ab   :  { %v11245_v37 = vpop.permute.xlu1 %2518 }
 0x1ac   :  { %3748 = vperm.xlu0 %9283, %v11204_v61   ;;  %8353 = vmatmul.mubr.bf16.gmra.mrb[48].mxu0 %v13175_v27  ;;  %v11230_v40 = vpop.permute.xlu0 %2514  ;;  %13183 = vst [vmem:[#allocation128_spill] sm:$0xff] %v11245_v37 }
 0x1ad   :  { %8356 = vmatprep.mubr.bf16.mxu0 %v13176_v63  ;;  %v11258_v63 = vld [vmem:[%s12706_s5 + $0x60] sm:$0xff] }
 0x1ae   :  { %3410 = vperm.xlu1 %9281, %v13096_v38   ;;  %v13180_v38 = vld [vmem:[#allocation117_spill] sm:$0xff] }
 0x1af   :  { %13181 = vst [vmem:[#allocation117_spill] sm:$0xff] %v11230_v40  ;;  %v11266_v54 = vpop.permute.xlu1 %2526 }
 0x1b0   :  { %3756 = vperm.xlu0 %9283, %v11217_v28   ;;  %v11247_v27 = vpop.permute.xlu0 %2522 }
 0x1b1   :  { %13184 = vst [vmem:[#allocation160_spill] sm:$0xff] %v11247_v27  ;;  %v13188_v27 = vld [vmem:[#allocation40_spill] sm:$0xff] }
 0x1b2   :  { %3418 = vperm.xlu1 %9281, %v13104_v35   ;;  %v11236_v35 = vld [vmem:[%s12706_s5] sm:$0xff]  ;;  %v1624_v1 = vmul.f32 %v13188_v27, %v10680_v57 }
 0x1b4   :  { %3764 = vperm.xlu0 %9283, %v11226_v51   ;;  %8357 = vmatmul.mubr.bf16.gmra.mrb[52].mxu0 %v13180_v38  ;;  %v13185_v38 = vld [vmem:[#allocation39_spill] sm:$0xff]  ;;  %v11269_v20 = vpop.permute.xlu0 %2530 }
 0x1b5   :  { %8360 = vmatprep.mubr.bf16.mxu0 %v13182_v41  ;;  %v1625_v41 = vmul.f32 %v13185_v38, %v10702_v31  ;;  %13186 = vst [vmem:[#allocation39_spill] sm:$0xff] %v11266_v54  ;;  %13187 = vst [vmem:[#allocation161_spill] sm:$0xff] %v11269_v20  ;;  %v13191_v38 = vld [vmem:[#allocation42_spill] sm:$0xff]  ;;  %v13193_v20 = vld [vmem:[#allocation45_spill] sm:$0xff] }
 0x1b6   :  { %9282 = vset.pattern.permute.xlu1 %v9699_v3  ;;  %v11252_v3 = vld [vmem:[%s12706_s5 + $0x10] sm:$0xff]  ;;  %v1629_v27 = vmul.f32 %v13193_v20, %v10514_v46 }
 0x1b7   :  { %3732 = vperm.xlu1 %9282, %v11236_v35   ;;  %v1656_v37 = vpack.c.bf16 %v1625_v41, %v1624_v1  ;;  %v11288_v1 = vld [vmem:[%s12706_s5 + $0x90] sm:$0xff]  ;;  %v13195_v41 = vld [vmem:[#allocation92_spill] sm:$0xff] }
 0x1b8   :  { %3772 = vperm.xlu0 %9283, %v11242_v56   ;;  %v11280_v40 = vpop.permute.xlu0 %2538 }
 0x1b9   :  { %13192 = vst [vmem:[#allocation42_spill] sm:$0xff] %v11280_v40  ;;  %v9328_v40 = vld [vmem:[%s12704_s3 + $0x88] sm:$0xff]  }
 0x1bb   :  { %3740 = vperm.xlu1 %9282, %v11252_v3  }
 0x1bc   :  { %3780 = vperm.xlu0 %9283, %v11258_v63   ;;  %8361 = vmatmul.mubr.bf16.gmra.mrb[56].mxu0 %v10686_v36  ;;  %v11276_v36 = vpop.permute.xlu1 %2534 }
 0x1bd   :  { %8364 = vmatprep.mubr.bf16.mxu0 %v10732_v14  ;;  %13189 = vst [vmem:[#allocation40_spill] sm:$0xff] %v11276_v36  ;;  %v13190_v14 = vld [vmem:[#allocation86_spill] sm:$0xff]  ;;  %v13196_v36 = vld [vmem:[#allocation44_spill] sm:$0xff] }
 0x1be   :  { %v1627_v54 = vmul.f32 %v13191_v38, %v13190_v14  ;;  %v1628_v38 = vmul.f32 %v13196_v36, %v13195_v41 }
 0x1bf   :  { %3744 = vperm.xlu1 %9282, %v10983_v32  }
 0x1c0   :  { %3788 = vperm.xlu0 %9283, %v11133_v0   ;;  %v1658_v20 = vpack.c.bf16 %v1629_v27, %v1628_v38  ;;  %v11299_v2 = vpop.permute.xlu1 %2542  ;;  %v9329_v27 = vld [vmem:[%s12704_s3 + $0x90] sm:$0xff]  }
 0x1c1   :  { %13197 = vst [vmem:[#allocation45_spill] sm:$0xff] %v11299_v2 }
 0x1c3   :  { %3752 = vperm.xlu1 %9282, %v11013_v60  }
 0x1c4   :  { %3796 = vperm.xlu0 %9283, %v11147_v47   ;;  %8365 = vmatmul.mubr.bf16.gmra.mrb[60].mxu0 %v10769_v10  ;;  %v13194_v10 = vld [vmem:[#allocation41_spill] sm:$0xff]  ;;  %v11328_v2 = vpop.permute.xlu1 %2550 }
 0x1c5   :  { %8384 = vmatprep.mubr.bf16.mxu0 %v1656_v37  ;;  %v1626_v37 = vmul.f32 %v13194_v10, %v10510_v45  ;;  %13198 = vst [vmem:[#allocation41_spill] sm:$0xff] %v11304_v62  ;;  %v11307_v10 = vpop.permute.xlu0 %2546 }
 0x1c6   :  { %13199 = vst [vmem:[#allocation44_spill] sm:$0xff] %v11307_v10 }
 0x1c7   :  { %3760 = vperm.xlu1 %9282, %v11034_v19   ;;  %v1657_v17 = vpack.c.bf16 %v1627_v54, %v1626_v37  ;;  %v13200_v54 = vld [vmem:[#allocation48_spill] sm:$0xff]  ;;  %v13201_v37 = vld [vmem:[#allocation51_spill] sm:$0xff] }
 0x1c8   :  { %3804 = vperm.xlu0 %9283, %v11288_v1   ;;  %v1631_v36 = vmul.f32 %v13200_v54, %v10563_v49  ;;  %v1633_v38 = vmul.f32 %v13201_v37, %v10561_v50  ;;  %v13204_v54 = vld [vmem:[#allocation50_spill] sm:$0xff]  ;;  %13205 = vst [vmem:[#allocation51_spill] sm:$0xff] %v11328_v2  ;;  %v9330_v37 = vld [vmem:[%s12704_s3 + $0x98] sm:$0xff]  }
 0x1c9   :  { %v1632_v10 = vmul.f32 %v13204_v54, %v10605_v16  ;;  %v11333_v21 = vpop.permute.xlu0 %2554  ;;  %v9331_v54 = vld [vmem:[%s12704_s3 + $0xa0] sm:$0xff]  }
 0x1cb   :  { %3768 = vperm.xlu1 %9282, %v11059_v23  }
 0x1cc   :  { %3812 = vperm.xlu0 %9283, %v11304_v62   ;;  %8385 = vmatmul.mubr.bf16.vlgmr.msra.gmra.mrb[32].mxu0 %v1657_v17  ;;  %v11321_v17 = vld [vmem:[%s12706_s5 + $0xb0] sm:$0xff] }
 0x1cd   :  { %8388 = vmatprep.mubr.bf16.mxu0 %v1658_v20  ;;  %8417 = vmatpush3.bf16.msra.mxu0 %v11187_v55  ;;  %13202 = vst [vmem:[#allocation48_spill] sm:$0xff] %v11321_v17  ;;  %v13203_v55 = vld [vmem:[#allocation47_spill] sm:$0xff]  ;;  %v11370_v58 = vpop.permute.xlu0 %2868 }
 0x1ce   :  { %8418 = vmatprep.subr.bf16.mxu0 %v9328_v40  ;;  %v1630_v20 = vmul.f32 %v13203_v55, %v10559_v29  ;;  %13206 = vst [vmem:[#allocation47_spill] sm:$0xff] %v11333_v21  ;;  %v1660_v55 = vpack.c.bf16 %v1633_v38, %v1632_v10  ;;  %v11355_v10 = vld [vmem:[%s12706_s5 + $0x78] sm:$0xff]  ;;  %v13209_v38 = vld [vmem:[#allocation57_spill] sm:$0xff] }
 0x1cf   :  { %3776 = vperm.xlu1 %9282, %v11077_v43   ;;  %v13213_v21 = vld [vmem:[#allocation53_spill] sm:$0xff] }
 0x1d0   :  { %3820 = vperm.xlu0 %9283, %v11321_v17   ;;  %v1659_v33 = vpack.c.bf16 %v1631_v36, %v1630_v20  ;;  %v13208_v36 = vld [vmem:[#allocation54_spill] sm:$0xff]  ;;  %13214 = vst [vmem:[#allocation53_spill] sm:$0xff] %v11370_v58  ;;  %v11386_v58 = vld [vmem:[%s12706_s5 + $0xe0] sm:$0xff] }
 0x1d1   :  { %8419 = vmatpush3.bf16.msra.mxu0 %v9328_v40  ;;  %v11344_v40 = vld [vmem:[%s12706_s5 + $0xc0] sm:$0xff]  ;;  %v1635_v20 = vmul.f32 %v13208_v36, %v10637_v42  ;;  %13217 = vst [vmem:[#allocation56_spill] sm:$0xff] %v11386_v58 }
 0x1d2   :  { %8420 = vmatprep.subr.bf16.mxu0 %v9329_v27  ;;  %13207 = vst [vmem:[#allocation50_spill] sm:$0xff] %v11344_v40  ;;  %v13212_v36 = vld [vmem:[#allocation124_spill] sm:$0xff] }
 0x1d3   :  { %3784 = vperm.xlu1 %9282, %v11338_v4   ;;  %v1634_v2 = vmul.f32 %v13213_v21, %v13212_v36 }
 0x1d4   :  { %3828 = vperm.xlu0 %9283, %v11344_v40   ;;  %8389 = vmatmul.mubr.bf16.gmra.mrb[36].mxu0 %v1659_v33  ;;  %v1637_v33 = vmul.f32 %v13209_v38, %v10655_v44  ;;  %v9332_v38 = vld [vmem:[%s12704_s3 + $0xa8] sm:$0xff]  }
 0x1d5   :  { %8392 = vmatprep.mubr.bf16.mxu0 %v1660_v55  ;;  %8421 = vmatpush3.bf16.msra.mxu0 %v9329_v27  ;;  %v11360_v55 = vpop.permute.xlu1 %2864  ;;  %v11365_v27 = vld [vmem:[%s12706_s5 + $0xd0] sm:$0xff]  ;;  %v1661_v6 = vpack.c.bf16 %v1635_v20, %v1634_v2  ;;  %v13219_v2 = vld [vmem:[#allocation136_spill] sm:$0xff] }
 0x1d6   :  { %8422 = vmatprep.subr.bf16.mxu0 %v9330_v37  ;;  %13210 = vst [vmem:[#allocation54_spill] sm:$0xff] %v11360_v55  ;;  %13211 = vst [vmem:[#allocation57_spill] sm:$0xff] %v11365_v27  ;;  %v11380_v55 = vld [vmem:[%s12706_s5 + $0x88] sm:$0xff]  ;;  %v1662_v21 = vpack.c.bf16 %v1637_v33, %v1636_v11  ;;  %v9333_v11 = vld [vmem:[%s12704_s3 + $0xb0] sm:$0xff]   ;;  %v11396_v33 = vpop.permute.xlu0 %2880 }
 0x1d7   :  { %3792 = vperm.xlu1 %9282, %v11355_v10  }
 0x1d8   :  { %3836 = vperm.xlu0 %9283, %v11365_v27  }
 0x1d9   :  { %8423 = vmatpush3.bf16.msra.mxu0 %v9330_v37  ;;  %v11389_v30 = vpop.permute.xlu1 %2872  ;;  %v13220_v37 = vld [vmem:[#allocation59_spill] sm:$0xff] }
 0x1da   :  { %8424 = vmatprep.subr.bf16.mxu0 %v9331_v54  ;;  %13218 = vst [vmem:[#allocation162_spill] sm:$0xff] %v11389_v30  ;;  %v1639_v20 = vmul.f32 %v13220_v37, %v13219_v2  ;;  %13221 = vst [vmem:[#allocation59_spill] sm:$0xff] %v11396_v33  ;;  %v11409_v37 = vld [vmem:[%s12706_s5 + $0xf0] sm:$0xff]  ;;  %v13225_v30 = vld [vmem:[#allocation141_spill] sm:$0xff]  ;;  %v11427_v18 = vpop.permute.xlu0 %2888 }
 0x1db   :  { %3800 = vperm.xlu1 %9282, %v11380_v55   ;;  %v1638_v33 = vmul.f32 %v13226_v39, %v13225_v30  ;;  %v9700_v39 = vmov 8   ;;  %13230 = vst [vmem:[#allocation60_spill] sm:$0xff] %v11427_v18  ;;  %v13238_v18 = vld [vmem:[#allocation65_spill] sm:$0xff] }
 0x1dc   :  { %3844 = vperm.xlu0 %9283, %v11386_v58   ;;  %8393 = vmatmul.mubr.bf16.gmra.mrb[40].mxu0 %v1661_v6  ;;  %v13222_v6 = vld [vmem:[#allocation143_spill] sm:$0xff] }
 0x1dd   :  { %8396 = vmatprep.mubr.bf16.mxu0 %v1662_v21  ;;  %8425 = vmatpush3.bf16.msra.mxu0 %v9331_v54  ;;  %v13223_v54 = vld [vmem:[#allocation61_spill] sm:$0xff]  ;;  %v1663_v22 = vpack.c.bf16 %v1639_v20, %v1638_v33  ;;  %v11425_v9 = vpop.permute.xlu1 %2876  ;;  %v13232_v20 = vld [vmem:[#allocation63_spill] sm:$0xff] }
 0x1de   :  { %8426 = vmatprep.subr.bf16.mxu0 %v9332_v38  ;;  %v1641_v21 = vmul.f32 %v13223_v54, %v13222_v6  ;;  %13224 = vst [vmem:[#allocation61_spill] sm:$0xff] %v11409_v37  ;;  %v11419_v54 = vld [vmem:[%s12706_s5 + $0xa8] sm:$0xff]  ;;  %13229 = vst [vmem:[#allocation58_spill] sm:$0xff] %v11425_v9  ;;  %v13234_v9 = vld [vmem:[#allocation66_spill] sm:$0xff]  ;;  %v11452_v40 = vpop.permute.xlu0 %2896 }
 0x1df   :  { %3808 = vperm.xlu1 %9282, %v11401_v8   ;;  %13240 = vst [vmem:[#allocation66_spill] sm:$0xff] %v11452_v40 }
 0x1e0   :  { %3852 = vperm.xlu0 %9283, %v11409_v37   ;;  %v1664_v59 = vpack.c.bf16 %v1641_v21, %v1640_v13  ;;  %v11435_v13 = vld [vmem:[%s12706_s5 + $0xb8] sm:$0xff]  ;;  %v13233_v21 = vld [vmem:[#allocation88_spill] sm:$0xff] }
 0x1e1   :  { %8427 = vmatpush3.bf16.msra.mxu0 %v9332_v38  ;;  %v13231_v38 = vld [vmem:[#allocation89_spill] sm:$0xff]  ;;  %v1645_v5 = vmul.f32 %v13234_v9, %v13233_v21  ;;  %v11450_v58 = vpop.permute.xlu1 %2884 }
 0x1e2   :  { %8428 = vmatprep.subr.bf16.mxu0 %v9333_v11  ;;  %v1643_v33 = vmul.f32 %v13232_v20, %v13231_v38  ;;  %13239 = vst [vmem:[#allocation63_spill] sm:$0xff] %v11450_v58  ;;  %v11457_v9 = vld [vmem:[%s12706_s5 + $0xc8] sm:$0xff] }
 0x1e3   :  { %3816 = vperm.xlu1 %9282, %v11419_v54   ;;  %v11484_v21 = vld [vmem:[%s12706_s5 + $0xe8] sm:$0xff] }
 0x1e4   :  { %9284 = vset.pattern.permute.xlu0 %v9700_v39  ;;  %8397 = vmatmul.mubr.bf16.gmra.mrb[44].mxu0 %v1663_v22  ;;  %v11443_v22 = vld [vmem:[%s12704_s3 + $0xc0] sm:$0xff]  }
 0x1e5   :  { %4166 = vperm.xlu0 %9284, %v11236_v35   ;;  %8400 = vmatprep.mubr.bf16.mxu0 %v1664_v59  ;;  %v13235_v59 = vld [vmem:[#allocation87_spill] sm:$0xff]  ;;  %v13236_v35 = vld [vmem:[#allocation62_spill] sm:$0xff] }
 0x1e6   :  { %8429 = vmatpush3.bf16.msra.mxu0 %v9333_v11  ;;  %v1642_v20 = vmul.f32 %v13236_v35, %v13235_v59  ;;  %v13237_v11 = vld [vmem:[#allocation95_spill] sm:$0xff]  ;;  %v13243_v35 = vld [vmem:[#allocation108_spill] sm:$0xff] }
 0x1e7   :  { %3824 = vperm.xlu1 %9282, %v11435_v13   ;;  %8430 = vmatprep.subr.bf16.mxu0 %v9334_v7  ;;  %v1644_v37 = vmul.f32 %v13238_v18, %v13237_v11  ;;  %v13242_v18 = vld [vmem:[#allocation69_spill] sm:$0xff] }
 0x1e8   :  { %v1665_v27 = vpack.c.bf16 %v1643_v33, %v1642_v20  ;;  %v13244_v20 = vld [vmem:[#allocation72_spill] sm:$0xff] }
 0x1e9   :  { %4178 = vperm.xlu0 %9284, %v10983_v32   ;;  %v1666_v17 = vpack.c.bf16 %v1645_v5, %v1644_v37  ;;  %v13241_v32 = vld [vmem:[#allocation109_spill] sm:$0xff]  ;;  %v1649_v40 = vmul.f32 %v13244_v20, %v13243_v35  ;;  %v11472_v5 = vpop.permute.xlu1 %2892  ;;  %v13246_v37 = vld [vmem:[#allocation107_spill] sm:$0xff] }
 0x1ea   :  { %8431 = vmatpush3.bf16.msra.mxu0 %v9334_v7  ;;  %v1647_v33 = vmul.f32 %v13242_v18, %v13241_v32  ;;  %v11467_v7 = vld [vmem:[%s12706_s5 + $0xd8] sm:$0xff]  ;;  %13245 = vst [vmem:[#allocation62_spill] sm:$0xff] %v11472_v5 }
 0x1eb   :  { %3832 = vperm.xlu1 %9282, %v11457_v9   ;;  %8464 = vmatprep.subr.bf16.mxu0 %v11443_v22  ;;  %v13250_v18 = vld [vmem:[#allocation71_spill] sm:$0xff] }
 0x1ec   :  { %8401 = vmatmul.mubr.bf16.gmra.mrb[48].mxu0 %v1665_v27  ;;  %v13247_v27 = vld [vmem:[#allocation68_spill] sm:$0xff] }
 0x1ed   :  { %4186 = vperm.xlu0 %9284, %v11013_v60   ;;  %8404 = vmatprep.mubr.bf16.mxu0 %v1666_v17  ;;  %v1646_v58 = vmul.f32 %v13247_v27, %v13246_v37  ;;  %v11476_v60 = vpop.permute.xlu0 %2904  ;;  %v13249_v17 = vld [vmem:[#allocation111_spill] sm:$0xff]  ;;  %v11488_v27 = vpop.permute.xlu1 %2900 }
 0x1ee   :  { %13248 = vst [vmem:[#allocation65_spill] sm:$0xff] %v11476_v60  ;;  %v1648_v32 = vmul.f32 %v13250_v18, %v13249_v17  ;;  %13251 = vst [vmem:[#allocation69_spill] sm:$0xff] %v11488_v27  ;;  %v13256_v18 = vld [vmem:[#allocation129_spill] sm:$0xff]  ;;  %v13258_v17 = vrot.slane %v10680_v57, 1 }
 0x1ef   :  { %3840 = vperm.xlu1 %9282, %v11467_v7   ;;  %v1667_v62 = vpack.c.bf16 %v1647_v33, %v1646_v58  ;;  %v11497_v58 = vld [vmem:[%s12706_s5 + $0xf8] sm:$0xff] }
 0x1f0   :  { %v1668_v20 = vpack.c.bf16 %v1649_v40, %v1648_v32  ;;  %v13254_v40 = vld [vmem:[#allocation80_spill] sm:$0xff]  ;;  %v13255_v32 = vld [vmem:[#allocation75_spill] sm:$0xff] }
 0x1f1   :  { %4194 = vperm.xlu0 %9284, %v11034_v19   ;;  %v13252_v19 = vld [vmem:[#allocation76_spill] sm:$0xff]  ;;  %v11492_v5 = vpop.permute.xlu0 %2912  ;;  %v1650_v33 = vmul.f32 %v13255_v32, %v10639_v34  ;;  %v11509_v35 = vpop.permute.xlu1 %2908 }
 0x1f2   :  { %v1651_v60 = vmul.f32 %v13252_v19, %v10641_v12  ;;  %13253 = vst [vmem:[#allocation72_spill] sm:$0xff] %v11492_v5  ;;  %v1930_v5 = vrot.slane %v10510_v45, 1 }
 0x1f3   :  { %3848 = vperm.xlu1 %9282, %v11484_v21  }
 0x1f4   :  { %8405 = vmatmul.mubr.bf16.gmra.mrb[52].mxu0 %v1667_v62  ;;  %v1653_v62 = vmul.f32 %v13254_v40, %v10650_v26  ;;  %v1669_v27 = vpack.c.bf16 %v1651_v60, %v1650_v33 }
 0x1f5   :  { %4202 = vperm.xlu0 %9284, %v11059_v23   ;;  %8408 = vmatprep.mubr.bf16.mxu0 %v1668_v20  ;;  %v1961_v23 = vrot.slane %v10702_v31, 1  ;;  %v13257_v20 = vld [vmem:[#allocation79_spill] sm:$0xff] }
 0x1f6   :  { %v1652_v19 = vmul.f32 %v13257_v20, %v13256_v18 }
 0x1f7   :  { %3856 = vperm.xlu1 %9282, %v11497_v58   ;;  %v11515_v40 = vsel %vm1962_vm2, %v13258_v17, %v1961_v23  ;;  %v11519_v32 = vsel %vm1962_vm2, %v1961_v23, %v1930_v5  ;;  %v13263_v17 = vld [vmem:[#allocation91_spill] sm:$0xff] }
 0x1f8   :  { %v1670_v12 = vpack.c.bf16 %v1653_v62, %v1652_v19  ;;  %13259 = vst [vmem:[#allocation68_spill] sm:$0xff] %v11515_v40  ;;  %13260 = vst [vmem:[#allocation71_spill] sm:$0xff] %v11519_v32  ;;  %v13262_v62 = vld [vmem:[#allocation90_spill] sm:$0xff]  ;;  %v2124_v20 = vmul.f32 %v13263_v17, %v11519_v32  ;;  %v13264_v23 = vld [vmem:[#allocation83_spill] sm:$0xff]  ;;  %v1933_v17 = vrot.slane %v10514_v46, 1 }
 0x1f9   :  { %4210 = vperm.xlu0 %9284, %v11077_v43   ;;  %v11522_v43 = vpop.permute.xlu0 %2920  ;;  %v2123_v33 = vmul.f32 %v13262_v62, %v11515_v40  ;;  %v1956_v40 = vrot.slane %v13256_v18, 1  ;;  %v13308_v32 = vld [vmem:[#allocation56_spill] sm:$0xff] }
 0x1fb   :  { %9285 = vset.pattern.permute.xlu1 %v9700_v39  ;;  %v13261_v39 = vld [vmem:[#allocation84_spill] sm:$0xff]  ;;  %v2155_v45 = vpack.c.bf16 %v2124_v20, %v2123_v33 }
 0x1fc   :  { %4170 = vperm.xlu1 %9285, %v11194_v24   ;;  %8409 = vmatmul.mubr.bf16.gmra.mrb[56].mxu0 %v1669_v27  ;;  %v1655_v60 = vmul.f32 %v13261_v39, %v10710_v15  ;;  %v1654_v24 = vmul.f32 %v13264_v23, %v10708_v48  ;;  %v1931_v27 = vrot.slane %v13190_v14, 1  ;;  %v1932_v39 = vrot.slane %v13195_v41, 1 }
 0x1fd   :  { %4218 = vperm.xlu0 %9284, %v11338_v4   ;;  %8412 = vmatprep.mubr.bf16.mxu0 %v1670_v12  ;;  %v1934_v12 = vrot.slane %v10559_v29, 1  ;;  %v11537_v4 = vpop.permute.xlu1 %2916  ;;  %v11540_v62 = vpop.permute.xlu0 %2928 }
 0x1fe   :  { %v1671_v19 = vpack.c.bf16 %v1655_v60, %v1654_v24  ;;  %v11557_v33 = vsel %vm1962_vm2, %v1930_v5, %v1931_v27  ;;  %v13269_v24 = vld [vmem:[#allocation99_spill] sm:$0xff]  ;;  %v1935_v5 = vrot.slane %v10563_v49, 1 }
 0x1ff   :  { %v11553_v23 = vsel %vm1962_vm2, %v1933_v17, %v1934_v12  ;;  %13267 = vst [vmem:[#allocation80_spill] sm:$0xff] %v11557_v33 }
 0x200   :  { %4174 = vperm.xlu1 %9285, %v11252_v3   ;;  %v11546_v3 = vsel %vm1962_vm2, %v1931_v27, %v1932_v39 }
 0x201   :  { %4226 = vperm.xlu0 %9284, %v11355_v10   ;;  %13265 = vst [vmem:[#allocation76_spill] sm:$0xff] %v11546_v3  ;;  %v13266_v10 = vld [vmem:[#allocation106_spill] sm:$0xff]  ;;  %v11573_v27 = vpop.permute.xlu0 %2936 }
 0x202   :  { %v2126_v60 = vmul.f32 %v13266_v10, %v11546_v3  ;;  %v13270_v10 = vld [vmem:[#allocation101_spill] sm:$0xff] }
 0x204   :  { %4182 = vperm.xlu1 %9285, %v11204_v61   ;;  %8413 = vmatmul.mubr.bf16.gmra.mrb[60].mxu0 %v1671_v19  ;;  %v13268_v61 = vld [vmem:[#allocation113_spill] sm:$0xff]  ;;  %v2125_v19 = vmul.f32 %v13269_v24, %v11557_v33  ;;  %v1938_v24 = vrot.slane %v13212_v36, 1 }
 0x205   :  { %4234 = vperm.xlu0 %9284, %v11380_v55   ;;  %8432 = vmatprep.mubr.bf16.mxu0 %v2155_v45  ;;  %v2128_v20 = vmul.f32 %v13268_v61, %v11553_v23  ;;  %v11565_v45 = vsel %vm1962_vm2, %v1932_v39, %v1933_v17  ;;  %v11567_v55 = vpop.permute.xlu1 %2924  ;;  %v1936_v39 = vrot.slane %v10605_v16, 1  ;;  %v9336_v17 = vld [vmem:[%s12704_s3 + $0xc8] sm:$0xff]   ;;  %v1942_v16 = vrot.slane %v13225_v30, 1 }
 0x206   :  { %v2127_v14 = vmul.f32 %v13270_v10, %v11565_v45  ;;  %v2156_v61 = vpack.c.bf16 %v2126_v60, %v2125_v19  ;;  %v13272_v19 = vld [vmem:[#allocation130_spill] sm:$0xff]  ;;  %v1946_v30 = vrot.slane %v13235_v59, 1 }
 0x207   :  { %v11585_v10 = vsel %vm1962_vm2, %v1935_v5, %v1936_v39 }
 0x208   :  { %4190 = vperm.xlu1 %9285, %v11217_v28   ;;  %v2157_v57 = vpack.c.bf16 %v2128_v20, %v2127_v14  ;;  %v1937_v28 = vrot.slane %v10561_v50, 1  ;;  %v13293_v50 = vld [vmem:[#allocation111_spill] sm:$0xff] }
 0x209   :  { %4242 = vperm.xlu0 %9284, %v11401_v8   ;;  %v13271_v8 = vld [vmem:[#allocation123_spill] sm:$0xff]  ;;  %v11594_v20 = vpop.permute.xlu1 %2932  ;;  %v1952_v49 = vrot.slane %v13293_v50, 1 }
 0x20a   :  { %v2130_v14 = vmul.f32 %v13271_v8, %v11585_v10  ;;  %v11592_v60 = vsel %vm1962_vm2, %v1937_v28, %v1938_v24  ;;  %v13273_v8 = vld [vmem:[#allocation110_spill] sm:$0xff] }
 0x20c   :  { %4198 = vperm.xlu1 %9285, %v11226_v51   ;;  %8433 = vmatmul.mubr.bf16.vlgmr.msra.gmra.mrb[32].mxu0 %v2156_v61  ;;  %v11599_v51 = vsel %vm1962_vm2, %v1934_v12, %v1935_v5  ;;  %v2132_v61 = vmul.f32 %v13272_v19, %v11592_v60  ;;  %v13274_v12 = vld [vmem:[#allocation116_spill] sm:$0xff]  ;;  %v1939_v19 = vrot.slane %v10637_v42, 1 }
 0x20d   :  { %4250 = vperm.xlu0 %9284, %v11419_v54   ;;  %8436 = vmatprep.mubr.bf16.mxu0 %v2157_v57  ;;  %v11603_v54 = vpop.permute.xlu0 %2944  ;;  %v9337_v57 = vld [vmem:[%s12704_s3 + $0xd0] sm:$0xff]   ;;  %v2129_v31 = vmul.f32 %v13273_v8, %v11599_v51  ;;  %v1940_v8 = vrot.slane %v13215_v53, 1 }
 0x20e   :  { %8465 = vmatpush3.bf16.msra.mxu0 %v11443_v22  ;;  %v11612_v22 = vsel %vm1962_vm2, %v1936_v39, %v1937_v28  ;;  %v9338_v39 = vld [vmem:[%s12704_s3 + $0xd8] sm:$0xff]   ;;  %v11625_v28 = vpop.permute.xlu1 %2940 }
 0x20f   :  { %8466 = vmatprep.subr.bf16.mxu0 %v9336_v17  ;;  %v2131_v5 = vmul.f32 %v13274_v12, %v11612_v22  ;;  %v2158_v36 = vpack.c.bf16 %v2130_v14, %v2129_v31  ;;  %v11630_v31 = vsel %vm1962_vm2, %v1939_v19, %v1940_v8 }
 0x210   :  { %4206 = vperm.xlu1 %9285, %v11242_v56   ;;  %v1941_v56 = vrot.slane %v10655_v44, 1  ;;  %v1944_v44 = vrot.slane %v13227_v52, 1 }
 0x211   :  { %4258 = vperm.xlu0 %9284, %v11435_v13   ;;  %v2159_v29 = vpack.c.bf16 %v2132_v61, %v2131_v5  ;;  %v11632_v13 = vpop.permute.xlu0 %2952 }
 0x212   :  { %8467 = vmatpush3.bf16.msra.mxu0 %v9336_v17  ;;  %v13275_v17 = vld [vmem:[#allocation140_spill] sm:$0xff]  ;;  %v11639_v61 = vsel %vm1962_vm2, %v1941_v56, %v1942_v16  ;;  %v11662_v53 = vpop.permute.xlu1 %2948 }
 0x213   :  { %8468 = vmatprep.subr.bf16.mxu0 %v9337_v57  ;;  %v2134_v14 = vmul.f32 %v13275_v17, %v11630_v31  ;;  %13276 = vst [vmem:[#allocation75_spill] sm:$0xff] %v11639_v61  ;;  %v11654_v17 = vsel %vm1962_vm2, %v1940_v8, %v1941_v56  ;;  %v1945_v56 = vrot.slane %v13222_v6, 1  ;;  %v13286_v6 = vld [vmem:[#allocation41_spill] sm:$0xff] }
 0x214   :  { %4214 = vperm.xlu1 %9285, %v11258_v63   ;;  %8437 = vmatmul.mubr.bf16.gmra.mrb[36].mxu0 %v2158_v36  ;;  %v11643_v63 = vsel %vm1962_vm2, %v1938_v24, %v1939_v19  ;;  %v13277_v36 = vld [vmem:[#allocation146_spill] sm:$0xff]  ;;  %v13279_v24 = vld [vmem:[#allocation133_spill] sm:$0xff]  ;;  %v1943_v19 = vrot.slane %v13219_v2, 1  ;;  %v1954_v2 = vrot.slane %v10639_v34, 1 }
 0x215   :  { %4266 = vperm.xlu0 %9284, %v11457_v9   ;;  %8440 = vmatprep.mubr.bf16.mxu0 %v2159_v29  ;;  %v2136_v12 = vmul.f32 %v13277_v36, %v11639_v61  ;;  %v9339_v29 = vld [vmem:[%s12704_s3 + $0xe0] sm:$0xff]   ;;  %v13278_v9 = vld [vmem:[#allocation126_spill] sm:$0xff]  ;;  %v11665_v8 = vpop.permute.xlu0 %2960  ;;  %v13304_v34 = vld [vmem:[#allocation57_spill] sm:$0xff] }
 0x216   :  { %8469 = vmatpush3.bf16.msra.mxu0 %v9337_v57  ;;  %v2133_v5 = vmul.f32 %v13278_v9, %v11643_v63  ;;  %v2135_v57 = vmul.f32 %v13279_v24, %v11654_v17 }
 0x217   :  { %8470 = vmatprep.subr.bf16.mxu0 %v9338_v39 }
 0x218   :  { %4222 = vperm.xlu1 %9285, %v11133_v0   ;;  %v2160_v36 = vpack.c.bf16 %v2134_v14, %v2133_v5  ;;  %v2161_v9 = vpack.c.bf16 %v2136_v12, %v2135_v57  ;;  %v9340_v0 = vld [vmem:[%s12704_s3 + $0xe8] sm:$0xff]   ;;  %v11681_v12 = vsel %vm1962_vm2, %v1945_v56, %v1946_v30  ;;  %v11685_v5 = vsel %vm1962_vm2, %v1942_v16, %v1943_v19  ;;  %v13282_v57 = vld [vmem:[#allocation142_spill] sm:$0xff] }
 0x219   :  { %4274 = vperm.xlu0 %9284, %v11467_v7   ;;  %v11674_v7 = vsel %vm1962_vm2, %v1943_v19, %v1944_v44  ;;  %v13283_v16 = vld [vmem:[#allocation150_spill] sm:$0xff] }
 0x21a   :  { %8471 = vmatpush3.bf16.msra.mxu0 %v9338_v39  ;;  %v13280_v39 = vld [vmem:[#allocation151_spill] sm:$0xff] }
 0x21b   :  { %8472 = vmatprep.subr.bf16.mxu0 %v9339_v29  ;;  %v2138_v14 = vmul.f32 %v13280_v39, %v11674_v7  ;;  %v1947_v39 = vrot.slane %v13231_v38, 1 }
 0x21c   :  { %4230 = vperm.xlu1 %9285, %v11147_v47   ;;  %8441 = vmatmul.mubr.bf16.gmra.mrb[40].mxu0 %v2160_v36  ;;  %v13281_v47 = vld [vmem:[#allocation23_spill] sm:$0xff]  ;;  %v2137_v36 = vmul.f32 %v13282_v57, %v11685_v5  ;;  %v1950_v57 = vrot.slane %v13246_v37, 1 }
 0x21d   :  { %4282 = vperm.xlu0 %9284, %v11484_v21   ;;  %8444 = vmatprep.mubr.bf16.mxu0 %v2161_v9  ;;  %v2140_v24 = vmul.f32 %v13281_v47, %v11681_v12  ;;  %v9341_v21 = vld [vmem:[%s12704_s3 + $0xf0] sm:$0xff]   ;;  %v11696_v9 = vsel %vm1962_vm2, %v1944_v44, %v1945_v56  ;;  %v11704_v47 = vpop.permute.xlu0 %2968  ;;  %v1948_v44 = vrot.slane %v13237_v11, 1  ;;  %v13285_v56 = vld [vmem:[#allocation88_spill] sm:$0xff] }
 0x21e   :  { %8473 = vmatpush3.bf16.msra.mxu0 %v9339_v29  ;;  %v11698_v29 = vpop.permute.xlu1 %2956  ;;  %v2139_v19 = vmul.f32 %v13283_v16, %v11696_v9  ;;  %13284 = vst [vmem:[#allocation79_spill] sm:$0xff] %v11704_v47  ;;  %v2162_v59 = vpack.c.bf16 %v2138_v14, %v2137_v36  ;;  %v1949_v16 = vrot.slane %v13285_v56, 1  ;;  %v13292_v56 = vld [vmem:[#allocation109_spill] sm:$0xff] }
 0x21f   :  { %8474 = vmatprep.subr.bf16.mxu0 %v9340_v0 }
 0x220   :  { %4238 = vperm.xlu1 %9285, %v11288_v1   ;;  %v2163_v52 = vpack.c.bf16 %v2140_v24, %v2139_v19  ;;  %v9342_v1 = vld [vmem:[%s12704_s3 + $0xf8] sm:$0xff]   ;;  %v11722_v24 = vsel %vm1962_vm2, %v1949_v16, %v1950_v57  ;;  %v11728_v19 = vsel %vm1962_vm2, %v1946_v30, %v1947_v39  ;;  %v11741_v11 = vsel %vm1962_vm2, %v1948_v44, %v1949_v16  ;;  %v13291_v30 = vld [vmem:[#allocation73_spill] sm:$0xff]  ;;  %v13296_v16 = vld [vmem:[#allocation50_spill] sm:$0xff] }
 0x221   :  { %4290 = vperm.xlu0 %9284, %v11497_v58   ;;  %v11716_v58 = vsel %vm1962_vm2, %v1947_v39, %v1948_v44  ;;  %v2143_v39 = vmul.f32 %v13291_v30, %v11741_v11  ;;  %v13301_v30 = vld [vmem:[#allocation64_spill] sm:$0xff] }
 0x222   :  { %8475 = vmatpush3.bf16.msra.mxu0 %v9340_v0  ;;  %v13287_v0 = vld [vmem:[#allocation11_spill] sm:$0xff]  ;;  %v11724_v36 = vpop.permute.xlu1 %2964 }
 0x223   :  { %8476 = vmatprep.subr.bf16.mxu0 %v9341_v21  ;;  %v2142_v14 = vmul.f32 %v13287_v0, %v11716_v58  ;;  %v13289_v0 = vld [vmem:[#allocation8_spill] sm:$0xff] }
 0x224   :  { %4246 = vperm.xlu1 %9285, %v13286_v6   ;;  %8445 = vmatmul.mubr.bf16.gmra.mrb[44].mxu0 %v2162_v59  ;;  %v13288_v6 = vld [vmem:[#allocation77_spill] sm:$0xff]  ;;  %v2141_v37 = vmul.f32 %v13289_v0, %v11728_v19  ;;  %v13294_v0 = vld [vmem:[#allocation108_spill] sm:$0xff] }
 0x225   :  { %8448 = vmatprep.mubr.bf16.mxu0 %v2163_v52  ;;  %v2144_v59 = vmul.f32 %v13288_v6, %v11722_v24  ;;  %v11735_v52 = vld [vmem:[%s12704_s3 + $0x140] sm:$0xff]   ;;  %v1951_v6 = vrot.slane %v13292_v56, 1  ;;  %v1953_v46 = vrot.slane %v13294_v0, 1  ;;  %v13306_v0 = vld [vmem:[#allocation122_spill] sm:$0xff] }
 0x226   :  { %8477 = vmatpush3.bf16.msra.mxu0 %v9341_v21  ;;  %v13290_v21 = vld [vmem:[#allocation48_spill] sm:$0xff]  ;;  %v2164_v38 = vpack.c.bf16 %v2142_v14, %v2141_v37  ;;  %v11751_v44 = vpop.permute.xlu1 %2972  ;;  %v1955_v56 = vrot.slane %v13306_v0, 1 }
 0x227   :  { %8478 = vmatprep.subr.bf16.mxu0 %v9342_v1  ;;  %v2165_v42 = vpack.c.bf16 %v2144_v59, %v2143_v39  ;;  %13295 = vst [vmem:[#allocation84_spill] sm:$0xff] %v11751_v44  ;;  %v13298_v37 = vld [vmem:[#allocation12_spill] sm:$0xff]  ;;  %v11762_v14 = vsel %vm1962_vm2, %v1953_v46, %v1954_v2  ;;  %v11766_v59 = vsel %vm1962_vm2, %v1950_v57, %v1951_v6  ;;  %v1958_v57 = vrot.slane %v10708_v48, 1  ;;  %v13318_v48 = vld [vmem:[#allocation25_spill] sm:$0xff] }
 0x228   :  { %4254 = vperm.xlu1 %9285, %v13290_v21   ;;  %v11756_v21 = vsel %vm1962_vm2, %v1951_v6, %v1952_v49  ;;  %13299 = vst [vmem:[#allocation91_spill] sm:$0xff] %v11762_v14  ;;  %13300 = vst [vmem:[#allocation83_spill] sm:$0xff] %v11766_v59  ;;  %v2148_v39 = vmul.f32 %v13301_v30, %v11762_v14 }
 0x229   :  { %13297 = vst [vmem:[#allocation90_spill] sm:$0xff] %v11756_v21 }
 0x22a   :  { %8479 = vmatpush3.bf16.msra.mxu0 %v9342_v1  ;;  %v2146_v1 = vmul.f32 %v13298_v37, %v11756_v21  ;;  %v13305_v37 = vld [vmem:[#allocation85_spill] sm:$0xff]  ;;  %v11781_v6 = vpop.permute.xlu1 %2980 }
 0x22b   :  { %8512 = vmatprep.subr.bf16.mxu0 %v11735_v52  ;;  %13307 = vst [vmem:[#allocation113_spill] sm:$0xff] %v11781_v6 }
 0x22c   :  { %4262 = vperm.xlu1 %9285, %v13296_v16   ;;  %8449 = vmatmul.mubr.bf16.gmra.mrb[48].mxu0 %v2164_v38  ;;  %v13302_v38 = vld [vmem:[#allocation15_spill] sm:$0xff] }
 0x22d   :  { %8452 = vmatprep.mubr.bf16.mxu0 %v2165_v42  ;;  %v2145_v16 = vmul.f32 %v13302_v38, %v11766_v59  ;;  %v11774_v42 = vsel %vm1962_vm2, %v1952_v49, %v1953_v46  ;;  %v1957_v38 = vrot.slane %v10650_v26, 1  ;;  %v11788_v46 = vsel %vm1962_vm2, %v1955_v56, %v1956_v40  ;;  %v13310_v49 = vld [vmem:[#allocation67_spill] sm:$0xff] }
 0x22e   :  { %13303 = vst [vmem:[#allocation106_spill] sm:$0xff] %v11774_v42  ;;  %v2147_v50 = vmul.f32 %v13305_v37, %v11774_v42  ;;  %13309 = vst [vmem:[#allocation99_spill] sm:$0xff] %v11788_v46 }
 0x22f   :  { %v2166_v41 = vpack.c.bf16 %v2146_v1, %v2145_v16  ;;  %v11794_v1 = vsel %vm1962_vm2, %v1957_v38, %v1958_v57  ;;  %v11806_v37 = vsel %vm1962_vm2, %v1956_v40, %v1957_v38  ;;  %v13323_v38 = vld [vmem:[#allocation135_spill] sm:$0xff] }
 0x230   :  { %4270 = vperm.xlu1 %9285, %v13304_v34   ;;  %v2167_v30 = vpack.c.bf16 %v2148_v39, %v2147_v50  ;;  %v2150_v34 = vmul.f32 %v13310_v49, %v11788_v46  ;;  %13311 = vst [vmem:[#allocation101_spill] sm:$0xff] %v11794_v1  ;;  %v11798_v50 = vsel %vm1962_vm2, %v1954_v2, %v1955_v56  ;;  %v13313_v39 = vld [vmem:[#allocation21_spill] sm:$0xff]  ;;  %13315 = vst [vmem:[#allocation130_spill] sm:$0xff] %v11806_v37  ;;  %v13319_v56 = vld [vmem:[#allocation148_spill] sm:$0xff] }
 0x231   :  { %13312 = vst [vmem:[#allocation123_spill] sm:$0xff] %v11798_v50  ;;  %v13317_v49 = vld [vmem:[#allocation61_spill] sm:$0xff]  ;;  %v2151_v18 = vmul.f32 %v13318_v48, %v11806_v37 }
 0x232   :  { %v13326_v48 = vld [vmem:[#allocation145_spill] sm:$0xff] }
 0x233   :  { %v13333_v37 = vld [vmem:[#allocation33_spill] sm:$0xff] }
 0x234   :  { %4278 = vperm.xlu1 %9285, %v13308_v32   ;;  %8453 = vmatmul.mubr.bf16.gmra.mrb[52].mxu0 %v2166_v41  ;;  %v2152_v32 = vmul.f32 %v13313_v39, %v11794_v1  ;;  %v13314_v41 = vld [vmem:[#allocation96_spill] sm:$0xff]  ;;  %v13320_v39 = vld [vmem:[#allocation74_spill] sm:$0xff] }
 0x235   :  { %8456 = vmatprep.mubr.bf16.mxu0 %v2167_v30  ;;  %v2149_v16 = vmul.f32 %v13314_v41, %v11798_v50  ;;  %v11808_v30 = vpop.permute.xlu1 %2988  ;;  %v2154_v0 = vmul.f32 %v13320_v39, %v13319_v56  ;;  %v13321_v41 = vrot.slane %v10710_v15, 1  ;;  %v13330_v15 = vld [vmem:[#allocation155_spill] sm:$0xff] }
 0x236   :  { %13316 = vst [vmem:[#allocation110_spill] sm:$0xff] %v11808_v30  ;;  %v2169_v2 = vpack.c.bf16 %v2152_v32, %v2151_v18  ;;  %v13324_v30 = vld [vmem:[#allocation82_spill] sm:$0xff] }
 0x237   :  { %v2168_v26 = vpack.c.bf16 %v2150_v34, %v2149_v16  ;;  %v11819_v40 = vsel %vm1962_vm2, %v1958_v57, %v13321_v41  ;;  %v2558_v47 = vmul.f32 %v13324_v30, %v13323_v38  ;;  %v13327_v34 = vld [vmem:[#allocation43_spill] sm:$0xff]  ;;  %v2561_v57 = vmul.f32 %v13331_v25, %v13330_v15  ;;  %v13332_v41 = vld [vmem:[#allocation118_spill] sm:$0xff]  ;;  %v13334_v30 = vld [vmem:[#allocation152_spill] sm:$0xff] }
 0x238   :  { %4286 = vperm.xlu1 %9285, %v13317_v49   ;;  %13322 = vst [vmem:[#allocation116_spill] sm:$0xff] %v11819_v40  ;;  %v13325_v49 = vld [vmem:[#allocation78_spill] sm:$0xff]  ;;  %v2557_v18 = vmul.f32 %v13327_v34, %v13326_v48  ;;  %v13328_v16 = vld [vmem:[#allocation119_spill] sm:$0xff]  ;;  %v2560_v56 = vmul.f32 %v13333_v37, %v13332_v41  ;;  %v13335_v38 = vld [vmem:[#allocation49_spill] sm:$0xff] }
 0x239   :  { %v2153_v6 = vmul.f32 %v13325_v49, %v11819_v40  ;;  %v2562_v44 = vmul.f32 %v13335_v38, %v13334_v30  ;;  %v13337_v34 = vld [vmem:[#allocation36_spill] sm:$0xff]  ;;  %v9345_v37 = vld [vmem:[%s12704_s3 + $0x150] sm:$0xff]   ;;  %v13345_v48 = vld [vmem:[#allocation55_spill] sm:$0xff] }
 0x23a   :  { %v2589_v32 = vpack.c.bf16 %v2558_v47, %v2557_v18  ;;  %v13339_v38 = vld [vmem:[#allocation52_spill] sm:$0xff]  ;;  %v13342_v25 = vld [vmem:[#allocation10_spill] sm:$0xff]  ;;  %v13351_v30 = vld [vmem:[#allocation131_spill] sm:$0xff] }
 0x23b   :  { %v2591_v47 = vpack.c.bf16 %v2562_v44, %v2561_v57  ;;  %v13343_v44 = vld [vmem:[#allocation98_spill] sm:$0xff] }
 0x23c   :  { %8457 = vmatmul.mubr.bf16.gmra.mrb[56].mxu0 %v2168_v26  ;;  %v2170_v26 = vpack.c.bf16 %v2154_v0, %v2153_v6  ;;  %v9344_v0 = vld [vmem:[%s12704_s3 + $0x148] sm:$0xff]   ;;  %v13336_v6 = vld [vmem:[#allocation154_spill] sm:$0xff]  ;;  %v2566_v57 = vmul.f32 %v13343_v44, %v13342_v25 }
 0x23d   :  { %8460 = vmatprep.mubr.bf16.mxu0 %v2169_v2  ;;  %v13329_v2 = vld [vmem:[#allocation34_spill] sm:$0xff]  ;;  %v2563_v18 = vmul.f32 %v13337_v34, %v13336_v6  ;;  %v13344_v34 = vld [vmem:[#allocation20_spill] sm:$0xff]  ;;  %v13346_v44 = vld [vmem:[#allocation81_spill] sm:$0xff] }
 0x23e   :  { %v2559_v39 = vmul.f32 %v13329_v2, %v13328_v16  ;;  %v13341_v2 = vld [vmem:[#allocation37_spill] sm:$0xff]  ;;  %v13349_v25 = vld [vmem:[#allocation102_spill] sm:$0xff]  ;;  %v13375_v16 = vld [vmem:[#allocation128_spill] sm:$0xff] }
 0x240   :  { %v2590_v49 = vpack.c.bf16 %v2560_v56, %v2559_v39 }
 0x244   :  { %8461 = vmatmul.mubr.bf16.gmra.mrb[60].mxu0 %v2170_v26  ;;  %v13338_v26 = vld [vmem:[#allocation24_spill] sm:$0xff] }
 0x245   :  { %8480 = vmatprep.mubr.bf16.mxu0 %v2589_v32  ;;  %v2565_v56 = vmul.f32 %v13339_v38, %v13338_v26  ;;  %v13340_v32 = vld [vmem:[#allocation153_spill] sm:$0xff]  ;;  %v2567_v38 = vmul.f32 %v13345_v48, %v13344_v34 }
 0x246   :  { %v2564_v39 = vmul.f32 %v13341_v2, %v13340_v32  ;;  %v9347_v2 = vld [vmem:[%s12704_s3 + $0x160] sm:$0xff]   ;;  %v13350_v32 = vld [vmem:[#allocation14_spill] sm:$0xff]  ;;  %v9348_v48 = vld [vmem:[%s12704_s3 + $0x168] sm:$0xff]  }
 0x24c   :  { %8481 = vmatmul.mubr.bf16.vlgmr.msra.gmra.mrb[32].mxu0 %v2590_v49  ;;  %v2592_v49 = vpack.c.bf16 %v2564_v39, %v2563_v18  ;;  %v13348_v39 = vld [vmem:[#allocation9_spill] sm:$0xff] }
 0x24d   :  { %8484 = vmatprep.mubr.bf16.mxu0 %v2591_v47  ;;  %8513 = vmatpush3.bf16.msra.mxu0 %v11735_v52  ;;  %v9346_v52 = vld [vmem:[%s12704_s3 + $0x158] sm:$0xff]   ;;  %v2593_v47 = vpack.c.bf16 %v2566_v57, %v2565_v56  ;;  %v2568_v26 = vmul.f32 %v13349_v25, %v13348_v39  ;;  %v2570_v56 = vmul.f32 %v13351_v30, %v13350_v32  ;;  %v13354_v25 = vld [vmem:[#allocation156_spill] sm:$0xff]  ;;  %v9349_v30 = vld [vmem:[%s12704_s3 + $0x170] sm:$0xff]  }
 0x24e   :  { %8514 = vmatprep.subr.bf16.mxu0 %v9344_v0  ;;  %v13357_v32 = vld [vmem:[#allocation13_spill] sm:$0xff] }
 0x24f   :  { %v2594_v57 = vpack.c.bf16 %v2568_v26, %v2567_v38  ;;  %v13355_v26 = vld [vmem:[#allocation17_spill] sm:$0xff] }
 0x250   :  { %v13358_v39 = vld [vmem:[#allocation157_spill] sm:$0xff] }
 0x251   :  { %8515 = vmatpush3.bf16.msra.mxu0 %v9344_v0  ;;  %v13347_v0 = vld [vmem:[#allocation114_spill] sm:$0xff]  ;;  %v2572_v34 = vmul.f32 %v13358_v39, %v13357_v32  ;;  %v13364_v39 = vld [vmem:[#allocation100_spill] sm:$0xff] }
 0x252   :  { %8516 = vmatprep.subr.bf16.mxu0 %v9345_v37  ;;  %v2569_v18 = vmul.f32 %v13347_v0, %v13346_v44  ;;  %v13353_v0 = vld [vmem:[#allocation27_spill] sm:$0xff] }
 0x253   :  { %v2571_v44 = vmul.f32 %v13354_v25, %v13353_v0  ;;  %v9350_v25 = vld [vmem:[%s12704_s3 + $0x178] sm:$0xff]  }
 0x254   :  { %8485 = vmatmul.mubr.bf16.gmra.mrb[36].mxu0 %v2592_v49  ;;  %v2595_v49 = vpack.c.bf16 %v2570_v56, %v2569_v18  ;;  %v13360_v56 = vld [vmem:[#allocation16_spill] sm:$0xff] }
 0x255   :  { %8488 = vmatprep.mubr.bf16.mxu0 %v2593_v47  ;;  %8517 = vmatpush3.bf16.msra.mxu0 %v9345_v37  ;;  %v11864_v37 = vpop.permute.xlu1 %3302  ;;  %v11869_v47 = vpop.permute.xlu0 %2976 }
 0x256   :  { %8518 = vmatprep.subr.bf16.mxu0 %v9346_v52  ;;  %13352 = vst [vmem:[#allocation140_spill] sm:$0xff] %v11864_v37  ;;  %v13380_v37 = vld [vmem:[#allocation160_spill] sm:$0xff] }
 0x259   :  { %8519 = vmatpush3.bf16.msra.mxu0 %v9346_v52  ;;  %v13356_v52 = vld [vmem:[#allocation97_spill] sm:$0xff]  ;;  %v11880_v18 = vpop.permute.xlu1 %3306  ;;  %v11884_v6 = vpop.permute.xlu0 %2984 }
 0x25a   :  { %8520 = vmatprep.subr.bf16.mxu0 %v9347_v2  ;;  %v2573_v38 = vmul.f32 %v13356_v52, %v13355_v26  ;;  %13359 = vst [vmem:[#allocation146_spill] sm:$0xff] %v11880_v18  ;;  %13362 = vst [vmem:[#allocation126_spill] sm:$0xff] %v11884_v6  ;;  %v13363_v52 = vld [vmem:[#allocation18_spill] sm:$0xff]  ;;  %v13369_v18 = vld [vmem:[#allocation112_spill] sm:$0xff] }
 0x25b   :  { %v2575_v26 = vmul.f32 %v13364_v39, %v13363_v52 }
 0x25c   :  { %8489 = vmatmul.mubr.bf16.gmra.mrb[40].mxu0 %v2594_v57  ;;  %v13361_v57 = vld [vmem:[#allocation158_spill] sm:$0xff] }
 0x25d   :  { %8492 = vmatprep.mubr.bf16.mxu0 %v2595_v49  ;;  %8521 = vmatpush3.bf16.msra.mxu0 %v9347_v2  ;;  %v2574_v49 = vmul.f32 %v13361_v57, %v13360_v56  ;;  %v2596_v2 = vpack.c.bf16 %v2572_v34, %v2571_v44  ;;  %v11891_v32 = vpop.permute.xlu1 %3314  ;;  %v9351_v34 = vld [vmem:[%s12704_s3 + $0x180] sm:$0xff]   ;;  %v13366_v44 = vld [vmem:[#allocation22_spill] sm:$0xff]  ;;  %v13368_v56 = vld [vmem:[#allocation19_spill] sm:$0xff] }
 0x25e   :  { %8522 = vmatprep.subr.bf16.mxu0 %v9348_v48  ;;  %13365 = vst [vmem:[#allocation133_spill] sm:$0xff] %v11891_v32  ;;  %v2576_v15 = vmul.f32 %v13369_v18, %v13368_v56  ;;  %v13374_v32 = vld [vmem:[#allocation26_spill] sm:$0xff]  ;;  %v13378_v18 = vld [vmem:[#allocation39_spill] sm:$0xff] }
 0x25f   :  { %v2597_v0 = vpack.c.bf16 %v2574_v49, %v2573_v38  ;;  %v11900_v38 = vpop.permute.xlu0 %3298  ;;  %v2579_v6 = vmul.f32 %v13375_v16, %v13374_v32  ;;  %v13384_v16 = vld [vmem:[#allocation30_spill] sm:$0xff]  ;;  %v13386_v32 = vld [vmem:[#allocation35_spill] sm:$0xff] }
 0x260   :  { %13370 = vst [vmem:[#allocation151_spill] sm:$0xff] %v11900_v38  ;;  %v13379_v38 = vld [vmem:[#allocation38_spill] sm:$0xff] }
 0x261   :  { %8523 = vmatpush3.bf16.msra.mxu0 %v9348_v48  ;;  %v13367_v48 = vld [vmem:[#allocation159_spill] sm:$0xff]  ;;  %v11904_v52 = vpop.permute.xlu1 %3322  ;;  %v2580_v41 = vmul.f32 %v13380_v37, %v13379_v38 }
 0x262   :  { %8524 = vmatprep.subr.bf16.mxu0 %v9349_v30  ;;  %v2577_v57 = vmul.f32 %v13367_v48, %v13366_v44  ;;  %13373 = vst [vmem:[#allocation23_spill] sm:$0xff] %v11904_v52  ;;  %v13377_v44 = vld [vmem:[#allocation29_spill] sm:$0xff] }
 0x263   :  { %v11908_v48 = vpop.permute.xlu0 %3310  ;;  %v2581_v56 = vmul.f32 %v13378_v18, %v13377_v44  ;;  %v13387_v52 = vld [vmem:[#allocation45_spill] sm:$0xff]  ;;  %v13388_v44 = vld [vmem:[#allocation31_spill] sm:$0xff] }
 0x264   :  { %8493 = vmatmul.mubr.bf16.gmra.mrb[44].mxu0 %v2596_v2  ;;  %v2598_v2 = vpack.c.bf16 %v2576_v15, %v2575_v26  ;;  %13376 = vst [vmem:[#allocation142_spill] sm:$0xff] %v11908_v48  ;;  %v2600_v26 = vpack.c.bf16 %v2580_v41, %v2579_v6  ;;  %v2585_v18 = vmul.f32 %v13387_v52, %v13386_v32  ;;  %v13389_v48 = vld [vmem:[#allocation42_spill] sm:$0xff]  ;;  %v13392_v41 = vld [vmem:[#allocation44_spill] sm:$0xff] }
 0x265   :  { %8496 = vmatprep.mubr.bf16.mxu0 %v2597_v0  ;;  %8525 = vmatpush3.bf16.msra.mxu0 %v9349_v30  ;;  %v13371_v0 = vld [vmem:[#allocation70_spill] sm:$0xff]  ;;  %v13372_v30 = vld [vmem:[#allocation117_spill] sm:$0xff]  ;;  %v2584_v37 = vmul.f32 %v13389_v48, %v13388_v44  ;;  %v13396_v48 = vld [vmem:[#allocation144_spill] sm:$0xff] }
 0x266   :  { %8526 = vmatprep.subr.bf16.mxu0 %v9350_v25  ;;  %v2578_v49 = vmul.f32 %v13372_v30, %v13371_v0  ;;  %v13381_v30 = vld [vmem:[#allocation28_spill] sm:$0xff]  ;;  %v13395_v52 = vld [vmem:[#allocation54_spill] sm:$0xff]  ;;  %v13397_v44 = vld [vmem:[#allocation47_spill] sm:$0xff] }
 0x267   :  { %v2991_v32 = vmul.f32 %v13395_v52, %v11557_v33  ;;  %v13400_v52 = vld [vmem:[#allocation63_spill] sm:$0xff] }
 0x268   :  { %v2599_v39 = vpack.c.bf16 %v2578_v49, %v2577_v57  ;;  %v11916_v57 = vpop.permute.xlu1 %3330  ;;  %v2996_v33 = vmul.f32 %v13400_v52, %v11585_v10  ;;  %v13405_v52 = vld [vmem:[#allocation60_spill] sm:$0xff] }
 0x269   :  { %8527 = vmatpush3.bf16.msra.mxu0 %v9350_v25  ;;  %v13382_v25 = vld [vmem:[#allocation161_spill] sm:$0xff]  ;;  %13383 = vst [vmem:[#allocation150_spill] sm:$0xff] %v11916_v57 }
 0x26a   :  { %8560 = vmatprep.subr.bf16.mxu0 %v9351_v34  ;;  %v2582_v15 = vmul.f32 %v13382_v25, %v13381_v30  ;;  %v13391_v25 = vld [vmem:[#allocation32_spill] sm:$0xff] }
 0x26b   :  { %v2586_v6 = vmul.f32 %v13392_v41, %v13391_v25  ;;  %v13402_v25 = vld [vmem:[#allocation59_spill] sm:$0xff] }
 0x26c   :  { %8497 = vmatmul.mubr.bf16.gmra.mrb[48].mxu0 %v2598_v2  ;;  %v2601_v49 = vpack.c.bf16 %v2582_v15, %v2581_v56  ;;  %v11918_v2 = vpop.permute.xlu0 %3318  ;;  %v11926_v38 = vpop.permute.xlu1 %3338 }
 0x26d   :  { %8500 = vmatprep.mubr.bf16.mxu0 %v2599_v39  ;;  %v13385_v39 = vld [vmem:[#allocation40_spill] sm:$0xff]  ;;  %13390 = vst [vmem:[#allocation41_spill] sm:$0xff] %v11926_v38  ;;  %v2603_v15 = vpack.c.bf16 %v2586_v6, %v2585_v18  ;;  %v2588_v38 = vmul.f32 %v13397_v44, %v13396_v48  ;;  %v13399_v6 = vld [vmem:[#allocation58_spill] sm:$0xff] }
 0x26e   :  { %v2583_v0 = vmul.f32 %v13385_v39, %v13384_v16  ;;  %v13401_v44 = vld [vmem:[#allocation162_spill] sm:$0xff] }
 0x26f   :  { %v2993_v48 = vmul.f32 %v13401_v44, %v11565_v45  ;;  %v2997_v44 = vmul.f32 %v13405_v52, %v11612_v22 }
 0x270   :  { %v2602_v30 = vpack.c.bf16 %v2584_v37, %v2583_v0  ;;  %v11930_v56 = vpop.permute.xlu0 %3326  ;;  %v11934_v16 = vpop.permute.xlu1 %3346  ;;  %v13398_v0 = vld [vmem:[#allocation53_spill] sm:$0xff] }
 0x271   :  { %v2992_v37 = vmul.f32 %v13398_v0, %v11546_v3  ;;  %v2995_v0 = vmul.f32 %v13402_v25, %v11599_v51  ;;  %v9353_v25 = vld [vmem:[%s12704_s3 + $0x190] sm:$0xff]  }
 0x273   :  { %v3023_v18 = vpack.c.bf16 %v2992_v37, %v2991_v32  ;;  %v3025_v37 = vpack.c.bf16 %v2996_v33, %v2995_v0  ;;  %v13406_v0 = vld [vmem:[#allocation66_spill] sm:$0xff] }
 0x274   :  { %8501 = vmatmul.mubr.bf16.gmra.mrb[52].mxu0 %v2600_v26  ;;  %v13393_v26 = vld [vmem:[#allocation147_spill] sm:$0xff]  ;;  %v11940_v57 = vpop.permute.xlu0 %3334 }
 0x275   :  { %8504 = vmatprep.mubr.bf16.mxu0 %v2601_v49  ;;  %v13394_v49 = vld [vmem:[#allocation51_spill] sm:$0xff] }
 0x276   :  { %v2587_v39 = vmul.f32 %v13394_v49, %v13393_v26 }
 0x278   :  { %v2604_v41 = vpack.c.bf16 %v2588_v38, %v2587_v39  ;;  %v11948_v49 = vpop.permute.xlu0 %3342  ;;  %v9352_v39 = vld [vmem:[%s12704_s3 + $0x188] sm:$0xff]  }
 0x27c   :  { %8505 = vmatmul.mubr.bf16.gmra.mrb[56].mxu0 %v2602_v30  ;;  %v11944_v30 = vpop.permute.xlu1 %3354 }
 0x27d   :  { %8508 = vmatprep.mubr.bf16.mxu0 %v2603_v15  ;;  %v2994_v15 = vmul.f32 %v13399_v6, %v11553_v23 }
 0x27f   :  { %v3024_v38 = vpack.c.bf16 %v2994_v15, %v2993_v48  ;;  %v13404_v48 = vld [vmem:[#allocation69_spill] sm:$0xff] }
 0x280   :  { %v11956_v32 = vpop.permute.xlu1 %3362  ;;  %v3000_v15 = vmul.f32 %v13404_v48, %v11630_v31  ;;  %v3002_v48 = vmul.f32 %v11509_v35, %v11639_v61 }
 0x284   :  { %8509 = vmatmul.mubr.bf16.gmra.mrb[60].mxu0 %v2604_v41  ;;  %v11961_v41 = vpop.permute.xlu0 %3350  ;;  %v11972_v33 = vpop.permute.xlu1 %3370 }
 0x285   :  { %8528 = vmatprep.mubr.bf16.mxu0 %v3023_v18  ;;  %v13403_v18 = vld [vmem:[#allocation62_spill] sm:$0xff] }
 0x286   :  { %v2998_v6 = vmul.f32 %v13403_v18, %v11592_v60  ;;  %v9354_v18 = vld [vmem:[%s12704_s3 + $0x198] sm:$0xff]  }
 0x288   :  { %v11983_v52 = vpop.permute.xlu1 %3378 }
 0x28c   :  { %8529 = vmatmul.mubr.bf16.vlgmr.msra.gmra.mrb[32].mxu0 %v3024_v38  ;;  %v2999_v38 = vmul.f32 %v13406_v0, %v11643_v63  ;;  %v11999_v61 = vpop.permute.xlu1 %3386 }
 0x28d   :  { %8532 = vmatprep.mubr.bf16.mxu0 %v3025_v37  ;;  %8561 = vmatpush3.bf16.msra.mxu0 %v9351_v34  ;;  %v3026_v34 = vpack.c.bf16 %v2998_v6, %v2997_v44  ;;  %v11976_v37 = vpop.permute.xlu0 %3358  ;;  %v3004_v6 = vmul.f32 %v11537_v4, %v11674_v7  ;;  %v13407_v44 = vld [vmem:[#allocation65_spill] sm:$0xff]  ;;  %v3006_v4 = vmul.f32 %v11567_v55, %v11681_v12  ;;  %v9358_v55 = vld [vmem:[%s12704_s3 + $0x1b8] sm:$0xff]  }
 0x28e   :  { %8562 = vmatprep.subr.bf16.mxu0 %v9352_v39  ;;  %v3027_v3 = vpack.c.bf16 %v3000_v15, %v2999_v38  ;;  %v3001_v0 = vmul.f32 %v13407_v44, %v11654_v17  ;;  %v9356_v38 = vld [vmem:[%s12704_s3 + $0x1a8] sm:$0xff]  }
 0x290   :  { %v3028_v35 = vpack.c.bf16 %v3002_v48, %v3001_v0  ;;  %v3008_v48 = vmul.f32 %v11594_v20, %v11716_v58  ;;  %v3007_v0 = vmul.f32 %v11540_v62, %v11728_v19  ;;  %v9359_v62 = vld [vmem:[%s12704_s3 + $0x1c0] sm:$0xff]   ;;  %v3012_v20 = vmul.f32 %v11662_v53, %v11756_v21 }
 0x291   :  { %8563 = vmatpush3.bf16.msra.mxu0 %v9352_v39  ;;  %v9355_v39 = vld [vmem:[%s12704_s3 + $0x1a0] sm:$0xff]   ;;  %v11992_v15 = vpop.permute.xlu0 %3366 }
 0x292   :  { %8564 = vmatprep.subr.bf16.mxu0 %v9353_v25 }
 0x294   :  { %8533 = vmatmul.mubr.bf16.gmra.mrb[36].mxu0 %v3026_v34 }
 0x295   :  { %8536 = vmatprep.mubr.bf16.mxu0 %v3027_v3  ;;  %8565 = vmatpush3.bf16.msra.mxu0 %v9353_v25  ;;  %v13408_v3 = vld [vmem:[#allocation72_spill] sm:$0xff]  ;;  %v12003_v44 = vpop.permute.xlu0 %3374 }
 0x296   :  { %8566 = vmatprep.subr.bf16.mxu0 %v9354_v18  ;;  %v3003_v25 = vmul.f32 %v13408_v3, %v11685_v5  ;;  %v12014_v3 = vpop.permute.xlu1 %3394 }
 0x298   :  { %v3029_v34 = vpack.c.bf16 %v3004_v6, %v3003_v25  ;;  %v3005_v6 = vmul.f32 %v11522_v43, %v11696_v9  ;;  %v3031_v25 = vpack.c.bf16 %v3008_v48, %v3007_v0  ;;  %v3010_v43 = vmul.f32 %v11625_v28, %v11722_v24 }
 0x299   :  { %8567 = vmatpush3.bf16.msra.mxu0 %v9354_v18  ;;  %v9357_v18 = vld [vmem:[%s12704_s3 + $0x1b0] sm:$0xff]   ;;  %v3013_v0 = vmul.f32 %v11632_v13, %v11774_v42 }
 0x29a   :  { %8568 = vmatprep.subr.bf16.mxu0 %v9355_v39  ;;  %v13412_v13 = vld [vmem:[#allocation130_spill] sm:$0xff] }
 0x29c   :  { %8537 = vmatmul.mubr.bf16.gmra.mrb[40].mxu0 %v3028_v35  ;;  %v12019_v35 = vpop.permute.xlu0 %3382 }
 0x29d   :  { %8540 = vmatprep.mubr.bf16.mxu0 %v3029_v34  ;;  %8569 = vmatpush3.bf16.msra.mxu0 %v9355_v39  ;;  %v3030_v39 = vpack.c.bf16 %v3006_v4, %v3005_v6  ;;  %v12030_v34 = vpop.permute.xlu1 %3402  ;;  %v3011_v4 = vmul.f32 %v11603_v54, %v11766_v59  ;;  %v3014_v6 = vmul.f32 %v11698_v29, %v11762_v14  ;;  %v13409_v29 = vld [vmem:[#allocation84_spill] sm:$0xff]  ;;  %v13419_v14 = vld [vmem:[#allocation126_spill] sm:$0xff] }
 0x29e   :  { %8570 = vmatprep.subr.bf16.mxu0 %v9356_v38 }
 0x29f   :  { %v3033_v28 = vpack.c.bf16 %v3012_v20, %v3011_v4  ;;  %v3018_v20 = vmul.f32 %v13409_v29, %v11794_v1  ;;  %v13411_v4 = vld [vmem:[#allocation113_spill] sm:$0xff]  ;;  %v13416_v1 = vld [vmem:[#allocation118_spill] sm:$0xff] }
 0x2a0   :  { %v12034_v48 = vpop.permute.xlu0 %3390 }
 0x2a1   :  { %8571 = vmatpush3.bf16.msra.mxu0 %v9356_v38  ;;  %v3009_v38 = vmul.f32 %v11573_v27, %v11741_v11  ;;  %v12038_v53 = vpop.permute.xlu1 %3410  ;;  %v3016_v27 = vmul.f32 %v11724_v36, %v11788_v46  ;;  %v13410_v36 = vld [vmem:[#allocation148_spill] sm:$0xff] }
 0x2a2   :  { %8572 = vmatprep.subr.bf16.mxu0 %v9357_v18 }
 0x2a4   :  { %8541 = vmatmul.mubr.bf16.gmra.mrb[44].mxu0 %v3030_v39  ;;  %v12044_v54 = vpop.permute.xlu0 %3398  ;;  %v3015_v39 = vmul.f32 %v11665_v8, %v11798_v50  ;;  %v3019_v8 = vmul.f32 %v11869_v47, %v11819_v40  ;;  %v13417_v50 = vld [vmem:[#allocation140_spill] sm:$0xff]  ;;  %v13420_v47 = vld [vmem:[#allocation119_spill] sm:$0xff] }
 0x2a5   :  { %8544 = vmatprep.mubr.bf16.mxu0 %v3031_v25  ;;  %8573 = vmatpush3.bf16.msra.mxu0 %v9357_v18  ;;  %v3032_v18 = vpack.c.bf16 %v3010_v43, %v3009_v38  ;;  %v12048_v43 = vpop.permute.xlu1 %3418 }
 0x2a6   :  { %8574 = vmatprep.subr.bf16.mxu0 %v9358_v55  ;;  %v3035_v25 = vpack.c.bf16 %v3016_v27, %v3015_v39 }
 0x2a8   :  { %v12052_v38 = vpop.permute.xlu0 %3406 }
 0x2a9   :  { %8575 = vmatpush3.bf16.msra.mxu0 %v9358_v55  ;;  %v3034_v55 = vpack.c.bf16 %v3014_v6, %v3013_v0  ;;  %v12060_v27 = vpop.permute.xlu1 %3732 }
 0x2aa   :  { %8608 = vmatprep.subr.bf16.mxu0 %v9359_v62 }
 0x2ac   :  { %8545 = vmatmul.mubr.bf16.gmra.mrb[48].mxu0 %v3032_v18  ;;  %v3020_v18 = vmul.f32 %v13411_v4, %v13410_v36  ;;  %v12062_v39 = vpop.permute.xlu0 %3414  ;;  %v3426_v4 = vmul.f32 %v13417_v50, %v13416_v1  ;;  %v13418_v36 = vld [vmem:[#allocation68_spill] sm:$0xff]  ;;  %v13424_v1 = vld [vmem:[#allocation154_spill] sm:$0xff]  ;;  %v13425_v50 = vld [vmem:[#allocation133_spill] sm:$0xff] }
 0x2ad   :  { %8548 = vmatprep.mubr.bf16.mxu0 %v3033_v28  ;;  %v13413_v28 = vld [vmem:[#allocation79_spill] sm:$0xff]  ;;  %v3429_v21 = vmul.f32 %v13425_v50, %v13424_v1  ;;  %v13433_v1 = vld [vmem:[#allocation10_spill] sm:$0xff]  ;;  %v13434_v50 = vld [vmem:[#allocation9_spill] sm:$0xff] }
 0x2ae   :  { %v3017_v46 = vmul.f32 %v13413_v28, %v13412_v13  ;;  %v3037_v0 = vpack.c.bf16 %v3020_v18, %v3019_v8  ;;  %v3021_v28 = vmul.f32 %v13419_v14, %v13418_v36  ;;  %v12070_v13 = vpop.permute.xlu1 %3740  ;;  %v13426_v14 = vld [vmem:[#allocation152_spill] sm:$0xff]  ;;  %v13427_v36 = vld [vmem:[#allocation142_spill] sm:$0xff] }
 0x2af   :  { %v3428_v42 = vmul.f32 %v13427_v36, %v13426_v14  ;;  %v3434_v14 = vmul.f32 %v11940_v57, %v13434_v50  ;;  %v9363_v57 = vld [vmem:[%s12704_s3 + $0x1e0] sm:$0xff]  }
 0x2b0   :  { %v3036_v6 = vpack.c.bf16 %v3018_v20, %v3017_v46  ;;  %v13421_v46 = vld [vmem:[#allocation151_spill] sm:$0xff]  ;;  %v12074_v18 = vpop.permute.xlu0 %3422 }
 0x2b1   :  { %v3425_v20 = vmul.f32 %v13421_v46, %v13420_v47  ;;  %v13428_v47 = vld [vmem:[#allocation153_spill] sm:$0xff] }
 0x2b3   :  { %v3457_v8 = vpack.c.bf16 %v3426_v4, %v3425_v20  ;;  %v13429_v20 = vld [vmem:[#allocation24_spill] sm:$0xff] }
 0x2b4   :  { %8549 = vmatmul.mubr.bf16.gmra.mrb[52].mxu0 %v3034_v55  ;;  %v13414_v55 = vld [vmem:[#allocation71_spill] sm:$0xff]  ;;  %v12084_v59 = vpop.permute.xlu0 %3736 }
 0x2b5   :  { %8552 = vmatprep.mubr.bf16.mxu0 %v3035_v25  ;;  %v13415_v25 = vld [vmem:[#allocation110_spill] sm:$0xff] }
 0x2b6   :  { %v3022_v29 = vmul.f32 %v13415_v25, %v13414_v55  ;;  %v12078_v55 = vpop.permute.xlu1 %3744 }
 0x2b8   :  { %v3038_v40 = vpack.c.bf16 %v3022_v29, %v3021_v28  ;;  %v3430_v29 = vmul.f32 %v11918_v2, %v13428_v47  ;;  %v12095_v36 = vpop.permute.xlu0 %3748  ;;  %v13431_v2 = vld [vmem:[#allocation20_spill] sm:$0xff] }
 0x2ba   :  { %v3459_v4 = vpack.c.bf16 %v3430_v29, %v3429_v21  ;;  %v12091_v46 = vpop.permute.xlu1 %3752  ;;  %v3432_v21 = vmul.f32 %v11930_v56, %v13433_v1  ;;  %v9362_v29 = vld [vmem:[%s12704_s3 + $0x1d8] sm:$0xff]   ;;  %v13436_v56 = vld [vmem:[#allocation41_spill] sm:$0xff] }
 0x2bb   :  { %v13439_v1 = vld [vmem:[#allocation13_spill] sm:$0xff] }
 0x2bc   :  { %8553 = vmatmul.mubr.bf16.gmra.mrb[56].mxu0 %v3036_v6  ;;  %v13422_v6 = vld [vmem:[#allocation155_spill] sm:$0xff] }
 0x2bd   :  { %8556 = vmatprep.mubr.bf16.mxu0 %v3037_v0  ;;  %v13423_v0 = vld [vmem:[#allocation146_spill] sm:$0xff] }
 0x2be   :  { %v3427_v25 = vmul.f32 %v13423_v0, %v13422_v6  ;;  %v13432_v0 = vld [vmem:[#allocation150_spill] sm:$0xff]  ;;  %v12106_v47 = vpop.permute.xlu1 %3760 }
 0x2c0   :  { %v3458_v28 = vpack.c.bf16 %v3428_v42, %v3427_v25  ;;  %v9361_v42 = vld [vmem:[%s12704_s3 + $0x1d0] sm:$0xff]   ;;  %v3433_v25 = vmul.f32 %v13432_v0, %v13431_v2 }
 0x2c1   :  { %v13438_v2 = vld [vmem:[#allocation14_spill] sm:$0xff] }
 0x2c2   :  { %v3436_v0 = vmul.f32 %v11948_v49, %v13438_v2  ;;  %v9377_v49 = vld [vmem:[%s12707_s6 + $0x4] ss:$8 sps:$4 sm:$0xff]   ;;  %v13443_v2 = vld [vmem:[#allocation19_spill] sm:$0xff] }
 0x2c3   :  { %581 = vmatprep.mubr.bf16.mxu1 %v9377_v49  ;;  %v13445_v49 = vld [vmem:[#allocation26_spill] sm:$0xff] }
 0x2c4   :  { %8557 = vmatmul.mubr.bf16.gmra.mrb[60].mxu0 %v3038_v40  ;;  %v9360_v40 = vld [vmem:[%s12704_s3 + $0x1c8] sm:$0xff]  }
 0x2c5   :  { %8576 = vmatprep.mubr.bf16.mxu0 %v3457_v8  ;;  %v13430_v8 = vld [vmem:[#allocation23_spill] sm:$0xff] }
 0x2c6   :  { %v3431_v6 = vmul.f32 %v13430_v8, %v13429_v20  ;;  %v13435_v20 = vld [vmem:[#allocation81_spill] sm:$0xff] }
 0x2c7   :  { %v3435_v8 = vmul.f32 %v13436_v56, %v13435_v20  ;;  %v9365_v20 = vld [vmem:[%s12704_s3 + $0x1f0] sm:$0xff]  }
 0x2c8   :  { %v13441_v56 = vld [vmem:[#allocation18_spill] sm:$0xff] }
 0x2cc   :  { %8577 = vmatmul.mubr.bf16.vlgmr.msra.gmra.mrb[32].mxu0 %v3458_v28  ;;  %v3461_v28 = vpack.c.bf16 %v3434_v14, %v3433_v25  ;;  %v12122_v25 = vpop.permute.xlu1 %3768  ;;  %v9364_v14 = vld [vmem:[%s12704_s3 + $0x1e8] sm:$0xff]  }
 0x2cd   :  { %8580 = vmatprep.mubr.bf16.mxu0 %v3459_v4  ;;  %8609 = vmatpush3.bf16.msra.mxu0 %v9359_v62  ;;  %v3460_v62 = vpack.c.bf16 %v3432_v21, %v3431_v6  ;;  %v12111_v4 = vpop.permute.xlu0 %3756  ;;  %v3438_v21 = vmul.f32 %v11961_v41, %v13439_v1  ;;  %v13440_v41 = vld [vmem:[#allocation17_spill] sm:$0xff]  ;;  %v9366_v1 = vld [vmem:[%s12704_s3 + $0x1f8] sm:$0xff]  }
 0x2ce   :  { %8610 = vmatprep.subr.bf16.mxu0 %v9360_v40 }
 0x2d1   :  { %8611 = vmatpush3.bf16.msra.mxu0 %v9360_v40  ;;  %v13437_v40 = vld [vmem:[#allocation27_spill] sm:$0xff]  ;;  %v12126_v50 = vpop.permute.xlu0 %3764 }
 0x2d2   :  { %8612 = vmatprep.subr.bf16.mxu0 %v9361_v42  ;;  %v3437_v6 = vmul.f32 %v11934_v16, %v13437_v40  ;;  %v9375_v16 = vld [vmem:[%s12707_s6] ss:$8 sps:$4 sm:$0xff]  }
 0x2d3   :  { %582 = vmatmul.mubr.bf16.vlgmr.msra.gmra.mrb[0].mxu1 %v9375_v16  ;;  %v12170_v16 = vld [vmem:[%s12704_s3 + $0x200] sm:$0xff]  }
 0x2d4   :  { %8581 = vmatmul.mubr.bf16.gmra.mrb[36].mxu0 %v3460_v62  ;;  %v3463_v62 = vpack.c.bf16 %v3438_v21, %v3437_v6 }
 0x2d5   :  { %8584 = vmatprep.mubr.bf16.mxu0 %v3461_v28  ;;  %8613 = vmatpush3.bf16.msra.mxu0 %v9361_v42  ;;  %v3462_v42 = vpack.c.bf16 %v3436_v0, %v3435_v8  ;;  %v12139_v28 = vpop.permute.xlu1 %3776  ;;  %v3441_v8 = vmul.f32 %v11956_v32, %v13441_v56  ;;  %v12148_v6 = vpop.permute.xlu0 %3772  ;;  %v9378_v32 = vld [vmem:[%s12707_s6 + $0x14] ss:$8 sps:$4 sm:$0xff]  }
 0x2d6   :  { %8614 = vmatprep.subr.bf16.mxu0 %v9362_v29  ;;  %589 = vmatprep.mubr.bf16.mxu1 %v9378_v32  ;;  %v13447_v56 = vld [vmem:[#allocation38_spill] sm:$0xff]  ;;  %v13451_v32 = vld [vmem:[#allocation31_spill] sm:$0xff] }
 0x2d9   :  { %8615 = vmatpush3.bf16.msra.mxu0 %v9362_v29  ;;  %v3439_v29 = vmul.f32 %v11944_v30, %v13440_v41  ;;  %v3442_v30 = vmul.f32 %v11992_v15, %v13443_v2  ;;  %v13444_v15 = vld [vmem:[#allocation22_spill] sm:$0xff]  ;;  %v3445_v41 = vmul.f32 %v11983_v52, %v13445_v49  ;;  %v13448_v52 = vld [vmem:[#allocation29_spill] sm:$0xff] }
 0x2da   :  { %8616 = vmatprep.subr.bf16.mxu0 %v9363_v57 }
 0x2db   :  { %v3465_v21 = vpack.c.bf16 %v3442_v30, %v3441_v8  ;;  %v3446_v8 = vmul.f32 %v12019_v35, %v13447_v56  ;;  %v3447_v30 = vmul.f32 %v11999_v61, %v13448_v52  ;;  %v9381_v61 = vld [vmem:[%s12707_s6 + $0x24] ss:$8 sps:$4 sm:$0xff]  }
 0x2dc   :  { %8585 = vmatmul.mubr.bf16.gmra.mrb[40].mxu0 %v3462_v42  ;;  %v12155_v42 = vpop.permute.xlu1 %3784 }
 0x2dd   :  { %8588 = vmatprep.mubr.bf16.mxu0 %v3463_v62  ;;  %8617 = vmatpush3.bf16.msra.mxu0 %v9363_v57  ;;  %v13442_v57 = vld [vmem:[#allocation16_spill] sm:$0xff]  ;;  %v12165_v62 = vpop.permute.xlu0 %3780 }
 0x2de   :  { %8618 = vmatprep.subr.bf16.mxu0 %v9364_v14  ;;  %v3440_v40 = vmul.f32 %v11976_v37, %v13442_v57  ;;  %v9380_v37 = vld [vmem:[%s12707_s6 + $0x10] ss:$8 sps:$4 sm:$0xff]  }
 0x2df   :  { %590 = vmatmul.mubr.bf16.gmra.mrb[4].mxu1 %v9380_v37  ;;  %v3450_v37 = vmul.f32 %v12044_v54, %v13451_v32  ;;  %v3453_v54 = vmul.f32 %v12038_v53, %v13393_v26  ;;  %v9384_v26 = vld [vmem:[%s12707_s6 + $0x34] ss:$8 sps:$4 sm:$0xff]   ;;  %v13455_v53 = vld [vmem:[#allocation145_spill] sm:$0xff] }
 0x2e0   :  { %v3464_v0 = vpack.c.bf16 %v3440_v40, %v3439_v29  ;;  %v13446_v29 = vld [vmem:[#allocation70_spill] sm:$0xff]  ;;  %v12178_v57 = vpop.permute.xlu1 %3792  ;;  %v3467_v40 = vpack.c.bf16 %v3446_v8, %v3445_v41  ;;  %597 = vmatprep.mubr.bf16.mxu1 %v9381_v61 }
 0x2e1   :  { %8619 = vmatpush3.bf16.msra.mxu0 %v9364_v14  ;;  %v3443_v14 = vmul.f32 %v11972_v33, %v13444_v15  ;;  %v12181_v2 = vpop.permute.xlu0 %3788 }
 0x2e2   :  { %8620 = vmatprep.subr.bf16.mxu0 %v9365_v20 }
 0x2e4   :  { %8589 = vmatmul.mubr.bf16.gmra.mrb[44].mxu0 %v3464_v0  ;;  %v13449_v0 = vld [vmem:[#allocation30_spill] sm:$0xff] }
 0x2e5   :  { %8592 = vmatprep.mubr.bf16.mxu0 %v3465_v21  ;;  %8621 = vmatpush3.bf16.msra.mxu0 %v9365_v20  ;;  %v3444_v20 = vmul.f32 %v12003_v44, %v13446_v29  ;;  %v3449_v44 = vmul.f32 %v12014_v3, %v13449_v0  ;;  %v13450_v21 = vld [vmem:[#allocation28_spill] sm:$0xff] }
 0x2e6   :  { %8622 = vmatprep.subr.bf16.mxu0 %v9366_v1  ;;  %v3448_v35 = vmul.f32 %v12034_v48, %v13450_v21  ;;  %v9383_v3 = vld [vmem:[%s12707_s6 + $0x20] ss:$8 sps:$4 sm:$0xff]   ;;  %v13452_v48 = vld [vmem:[#allocation35_spill] sm:$0xff] }
 0x2e7   :  { %v3466_v33 = vpack.c.bf16 %v3444_v20, %v3443_v14  ;;  %v12193_v14 = vpop.permute.xlu0 %3796  ;;  %v3469_v49 = vpack.c.bf16 %v3450_v37, %v3449_v44  ;;  %v3451_v41 = vmul.f32 %v12030_v34, %v13452_v48  ;;  %v13453_v20 = vld [vmem:[#allocation32_spill] sm:$0xff]  ;;  %598 = vmatmul.mubr.bf16.gmra.mrb[8].mxu1 %v9383_v3  ;;  %v9386_v34 = vld [vmem:[%s12707_s6 + $0x30] ss:$8 sps:$4 sm:$0xff]  }
 0x2e8   :  { %v3468_v15 = vpack.c.bf16 %v3448_v35, %v3447_v30  ;;  %v3452_v56 = vmul.f32 %v12052_v38, %v13453_v20  ;;  %v3455_v38 = vmul.f32 %v12048_v43, %v13455_v53  ;;  %605 = vmatprep.mubr.bf16.mxu1 %v9384_v26  ;;  %v13457_v35 = vld [vmem:[#allocation135_spill] sm:$0xff]  ;;  %v13458_v37 = vld [vmem:[#allocation94_spill] sm:$0xff]  ;;  %v13459_v43 = vld [vmem:[#allocation105_spill] sm:$0xff] }
 0x2e9   :  { %8623 = vmatpush3.bf16.msra.mxu0 %v9366_v1  ;;  %v12189_v1 = vpop.permute.xlu1 %3800  ;;  %v3456_v32 = vmul.f32 %v12074_v18, %v13457_v35  ;;  %v13461_v20 = vld [vmem:[#allocation103_spill] sm:$0xff]  ;;  %v13466_v35 = vld [vmem:[#allocation134_spill] sm:$0xff] }
 0x2ea   :  { %8656 = vmatprep.subr.bf16.mxu0 %v12170_v16  ;;  %v3470_v52 = vpack.c.bf16 %v3452_v56, %v3451_v41  ;;  %v3862_v41 = vmul.f32 %v12078_v55, %v13459_v43  ;;  %v3861_v18 = vmul.f32 %v12070_v13, %v13461_v20  ;;  %v13463_v55 = vld [vmem:[#allocation120_spill] sm:$0xff] }
 0x2eb   :  { %v12209_v8 = vpop.permute.xlu0 %3804  ;;  %v3866_v13 = vmul.f32 %v12106_v47, %v13463_v55  ;;  %v13473_v55 = vld [vmem:[#allocation87_spill] sm:$0xff] }
 0x2ec   :  { %8593 = vmatmul.mubr.bf16.gmra.mrb[48].mxu0 %v3466_v33  ;;  %v13454_v33 = vld [vmem:[#allocation144_spill] sm:$0xff] }
 0x2ed   :  { %8596 = vmatprep.mubr.bf16.mxu0 %v3467_v40  ;;  %v12203_v29 = vpop.permute.xlu1 %3808  ;;  %v3454_v40 = vmul.f32 %v12062_v39, %v13454_v33  ;;  %v13456_v39 = vld [vmem:[#allocation92_spill] sm:$0xff] }
 0x2ee   :  { %v3859_v21 = vmul.f32 %v12060_v27, %v13456_v39  ;;  %v13460_v27 = vld [vmem:[#allocation104_spill] sm:$0xff] }
 0x2ef   :  { %v3471_v30 = vpack.c.bf16 %v3454_v40, %v3453_v54  ;;  %v12223_v44 = vpop.permute.xlu0 %3812  ;;  %606 = vmatmul.mubr.bf16.gmra.mrb[12].mxu1 %v9386_v34  ;;  %v3864_v54 = vmul.f32 %v12091_v46, %v13460_v27  ;;  %v3892_v40 = vpack.c.bf16 %v3862_v41, %v3861_v18  ;;  %v13464_v34 = vld [vmem:[#allocation127_spill] sm:$0xff]  ;;  %v13469_v41 = vld [vmem:[#allocation141_spill] sm:$0xff] }
 0x2f0   :  { %v3868_v53 = vmul.f32 %v12122_v25, %v13464_v34  ;;  %v13467_v25 = vld [vmem:[#allocation136_spill] sm:$0xff]  ;;  %v3869_v27 = vmul.f32 %v12148_v6, %v13469_v41  ;;  %v9373_v6 = vld [vmem:[%s12704_s3 + $0x230] sm:$0xff]   ;;  %v13474_v34 = vld [vmem:[#allocation95_spill] sm:$0xff] }
 0x2f1   :  { %v12213_v0 = vpop.permute.xlu1 %3816 }
 0x2f3   :  { %v12233_v48 = vpop.permute.xlu0 %3820 }
 0x2f4   :  { %8597 = vmatmul.mubr.bf16.gmra.mrb[52].mxu0 %v3468_v15  ;;  %v3860_v15 = vmul.f32 %v12084_v59, %v13458_v37  ;;  %v13462_v59 = vld [vmem:[#allocation115_spill] sm:$0xff] }
 0x2f5   :  { %8600 = vmatprep.mubr.bf16.mxu0 %v3469_v49  ;;  %v3472_v49 = vpack.c.bf16 %v3456_v32, %v3455_v38  ;;  %v12231_v61 = vpop.permute.xlu1 %3824  ;;  %v3863_v33 = vmul.f32 %v12095_v36, %v13462_v59  ;;  %v9369_v36 = vld [vmem:[%s12704_s3 + $0x210] sm:$0xff]   ;;  %v13465_v38 = vld [vmem:[#allocation124_spill] sm:$0xff]  ;;  %v9370_v32 = vld [vmem:[%s12704_s3 + $0x218] sm:$0xff]  }
 0x2f6   :  { %v3891_v3 = vpack.c.bf16 %v3860_v15, %v3859_v21  ;;  %v3865_v39 = vmul.f32 %v12111_v4, %v13465_v38  ;;  %v3870_v4 = vmul.f32 %v12139_v28, %v13467_v25  ;;  %v9372_v28 = vld [vmem:[%s12704_s3 + $0x228] sm:$0xff]  }
 0x2f7   :  { %v3893_v26 = vpack.c.bf16 %v3864_v54, %v3863_v33  ;;  %v13470_v54 = vld [vmem:[#allocation149_spill] sm:$0xff] }
 0x2f8   :  { %v3894_v47 = vpack.c.bf16 %v3866_v13, %v3865_v39  ;;  %v3871_v20 = vmul.f32 %v12165_v62, %v13470_v54  ;;  %v3896_v18 = vpack.c.bf16 %v3870_v4, %v3869_v27  ;;  %v13472_v62 = vld [vmem:[#allocation88_spill] sm:$0xff]  ;;  %v3873_v13 = vmul.f32 %v12181_v2, %v13473_v55  ;;  %v13478_v4 = vld [vmem:[#allocation111_spill] sm:$0xff]  ;;  %v13479_v27 = vld [vmem:[#allocation122_spill] sm:$0xff] }
 0x2f9   :  { %v12241_v56 = vpop.permute.xlu1 %3832 }
 0x2fc   :  { %8601 = vmatmul.mubr.bf16.gmra.mrb[56].mxu0 %v3470_v52  ;;  %v12245_v52 = vpop.permute.xlu0 %3828 }
 0x2fd   :  { %8604 = vmatprep.mubr.bf16.mxu0 %v3471_v30  ;;  %v9368_v30 = vld [vmem:[%s12704_s3 + $0x208] sm:$0xff]   ;;  %v12253_v46 = vpop.permute.xlu1 %3840 }
 0x300   :  { %v12262_v21 = vpop.permute.xlu0 %3836 }
 0x301   :  { %v3849_v15 = vpop.permute.xlu1 %3848 }
 0x304   :  { %8605 = vmatmul.mubr.bf16.gmra.mrb[60].mxu0 %v3472_v49  ;;  %v3845_v49 = vpop.permute.xlu0 %3844 }
 0x305   :  { %8624 = vmatprep.mubr.bf16.mxu0 %v3891_v3  ;;  %v13468_v3 = vld [vmem:[#allocation143_spill] sm:$0xff]  ;;  %v3857_v59 = vpop.permute.xlu1 %3856 }
 0x306   :  { %v3872_v43 = vmul.f32 %v12155_v42, %v13468_v3  ;;  %v13471_v42 = vld [vmem:[#allocation89_spill] sm:$0xff] }
 0x308   :  { %v3897_v33 = vpack.c.bf16 %v3872_v43, %v3871_v20  ;;  %v13480_v20 = vld [vmem:[#allocation125_spill] sm:$0xff] }
 0x30c   :  { %8625 = vmatmul.mubr.bf16.vlgmr.msra.gmra.mrb[32].mxu0 %v3892_v40  ;;  %v3853_v40 = vpop.permute.xlu0 %3852 }
 0x30d   :  { %8628 = vmatprep.mubr.bf16.mxu0 %v3893_v26  ;;  %8657 = vmatpush3.bf16.msra.mxu0 %v12170_v16  ;;  %v3867_v16 = vmul.f32 %v12126_v50, %v13466_v35  ;;  %v9371_v50 = vld [vmem:[%s12704_s3 + $0x220] sm:$0xff]   ;;  %v3876_v26 = vmul.f32 %v12189_v1, %v13472_v62  ;;  %v13475_v1 = vld [vmem:[#allocation109_spill] sm:$0xff]  ;;  %v13483_v62 = vld [vmem:[#allocation139_spill] sm:$0xff] }
 0x30e   :  { %8658 = vmatprep.subr.bf16.mxu0 %v9368_v30 }
 0x30f   :  { %v3895_v37 = vpack.c.bf16 %v3868_v53, %v3867_v16  ;;  %v3875_v53 = vmul.f32 %v12193_v14, %v13474_v34  ;;  %v3878_v16 = vmul.f32 %v12203_v29, %v13475_v1  ;;  %v3882_v29 = vmul.f32 %v12231_v61, %v13479_v27  ;;  %v13484_v61 = vld [vmem:[#allocation137_spill] sm:$0xff] }
 0x310   :  { %v4167_v39 = vpop.permute.xlu0 %4166  ;;  %v3888_v55 = vmul.f32 %v3849_v15, %v13484_v61 }
 0x311   :  { %8659 = vmatpush3.bf16.msra.mxu0 %v9368_v30  ;;  %v3874_v30 = vmul.f32 %v12178_v57, %v13471_v42  ;;  %v9374_v57 = vld [vmem:[%s12704_s3 + $0x238] sm:$0xff]   ;;  %v3899_v35 = vpack.c.bf16 %v3876_v26, %v3875_v53  ;;  %v3886_v26 = vmul.f32 %v12253_v46, %v13483_v62  ;;  %v13486_v53 = vld [vmem:[#allocation132_spill] sm:$0xff]  ;;  %v4293_v15 = vmul.f32 %v4167_v39, %v11565_v45 }
 0x312   :  { %8660 = vmatprep.subr.bf16.mxu0 %v9369_v36 }
 0x313   :  { %v3898_v38 = vpack.c.bf16 %v3874_v30, %v3873_v13  ;;  %v13485_v13 = vld [vmem:[#allocation138_spill] sm:$0xff] }
 0x314   :  { %8629 = vmatmul.mubr.bf16.gmra.mrb[36].mxu0 %v3894_v47  ;;  %v13476_v47 = vld [vmem:[#allocation108_spill] sm:$0xff]  ;;  %v4179_v25 = vpop.permute.xlu0 %4178 }
 0x315   :  { %8632 = vmatprep.mubr.bf16.mxu0 %v3895_v37  ;;  %8661 = vmatpush3.bf16.msra.mxu0 %v9369_v36  ;;  %v4171_v36 = vpop.permute.xlu1 %4170  ;;  %v3880_v14 = vmul.f32 %v12213_v0, %v13476_v47  ;;  %v3884_v0 = vmul.f32 %v12241_v56, %v13480_v20  ;;  %v3885_v56 = vmul.f32 %v12262_v21, %v13485_v13 }
 0x316   :  { %8662 = vmatprep.subr.bf16.mxu0 %v9370_v32  ;;  %v4294_v47 = vmul.f32 %v4171_v36, %v11553_v23 }
 0x318   :  { %v4187_v54 = vpop.permute.xlu0 %4186  ;;  %v4325_v21 = vpack.c.bf16 %v4294_v47, %v4293_v15  ;;  %v13497_v47 = vld [vmem:[#allocation101_spill] sm:$0xff] }
 0x319   :  { %8663 = vmatpush3.bf16.msra.mxu0 %v9370_v32  ;;  %v4175_v2 = vpop.permute.xlu1 %4174  ;;  %v13477_v32 = vld [vmem:[#allocation107_spill] sm:$0xff] }
 0x31a   :  { %8664 = vmatprep.subr.bf16.mxu0 %v9371_v50  ;;  %v3877_v37 = vmul.f32 %v12209_v8, %v13477_v32 }
 0x31c   :  { %8633 = vmatmul.mubr.bf16.gmra.mrb[40].mxu0 %v3896_v18  ;;  %v3900_v3 = vpack.c.bf16 %v3878_v16, %v3877_v37  ;;  %v13481_v18 = vld [vmem:[#allocation121_spill] sm:$0xff] }
 0x31d   :  { %8636 = vmatprep.mubr.bf16.mxu0 %v3897_v33  ;;  %8665 = vmatpush3.bf16.msra.mxu0 %v9371_v50  ;;  %v3879_v50 = vmul.f32 %v12223_v44, %v13478_v4  ;;  %v4183_v41 = vpop.permute.xlu1 %4182  ;;  %v3881_v8 = vmul.f32 %v12233_v48, %v13481_v18  ;;  %v3887_v48 = vmul.f32 %v3845_v49, %v13486_v53 }
 0x31e   :  { %8666 = vmatprep.subr.bf16.mxu0 %v9372_v28 }
 0x31f   :  { %v3901_v43 = vpack.c.bf16 %v3880_v14, %v3879_v50  ;;  %v3902_v44 = vpack.c.bf16 %v3882_v29, %v3881_v8  ;;  %v13488_v14 = vld [vmem:[#allocation93_spill] sm:$0xff]  ;;  %v4295_v50 = vmul.f32 %v4175_v2, %v11599_v51  ;;  %v13489_v51 = vld [vmem:[#allocation75_spill] sm:$0xff] }
 0x320   :  { %v3889_v46 = vmul.f32 %v3853_v40, %v13488_v14 }
 0x321   :  { %8667 = vmatpush3.bf16.msra.mxu0 %v9372_v28  ;;  %v13482_v28 = vld [vmem:[#allocation129_spill] sm:$0xff]  ;;  %v4191_v42 = vpop.permute.xlu1 %4190 }
 0x322   :  { %8668 = vmatprep.subr.bf16.mxu0 %v9373_v6  ;;  %v3883_v33 = vmul.f32 %v12245_v52, %v13482_v28  ;;  %v3905_v52 = vpack.c.bf16 %v3888_v55, %v3887_v48  ;;  %v4299_v45 = vmul.f32 %v4191_v42, %v11643_v63  ;;  %v13492_v55 = vld [vmem:[#allocation90_spill] sm:$0xff] }
 0x324   :  { %8637 = vmatmul.mubr.bf16.gmra.mrb[44].mxu0 %v3898_v38  ;;  %v3903_v30 = vpack.c.bf16 %v3884_v0, %v3883_v33  ;;  %v3904_v38 = vpack.c.bf16 %v3886_v26, %v3885_v56  ;;  %v13491_v26 = vld [vmem:[#allocation106_spill] sm:$0xff] }
 0x325   :  { %8640 = vmatprep.mubr.bf16.mxu0 %v3899_v35  ;;  %8669 = vmatpush3.bf16.msra.mxu0 %v9373_v6  ;;  %v4195_v6 = vpop.permute.xlu0 %4194  ;;  %v4199_v34 = vpop.permute.xlu1 %4198  ;;  %v13487_v35 = vld [vmem:[#allocation86_spill] sm:$0xff] }
 0x326   :  { %8670 = vmatprep.subr.bf16.mxu0 %v9374_v57  ;;  %v3890_v1 = vmul.f32 %v3857_v59, %v13487_v35  ;;  %v4296_v59 = vmul.f32 %v4179_v25, %v11585_v10  ;;  %v4301_v39 = vmul.f32 %v4199_v34, %v11654_v17  ;;  %v4300_v29 = vmul.f32 %v4195_v6, %v11630_v31  ;;  %v13496_v35 = vld [vmem:[#allocation99_spill] sm:$0xff] }
 0x328   :  { %v3906_v37 = vpack.c.bf16 %v3890_v1, %v3889_v46  ;;  %v4326_v23 = vpack.c.bf16 %v4296_v59, %v4295_v50 }
 0x329   :  { %8671 = vmatpush3.bf16.msra.mxu0 %v9374_v57  ;;  %v4203_v57 = vpop.permute.xlu0 %4202  ;;  %v4207_v16 = vpop.permute.xlu1 %4206 }
 0x32a   :  { %v4302_v2 = vmul.f32 %v4203_v57, %v13489_v51  ;;  %v13495_v57 = vld [vmem:[#allocation130_spill] sm:$0xff] }
 0x32c   :  { %8641 = vmatmul.mubr.bf16.gmra.mrb[48].mxu0 %v3900_v3  ;;  %v4297_v3 = vmul.f32 %v4183_v41, %v11612_v22  ;;  %v4328_v41 = vpack.c.bf16 %v4300_v29, %v4299_v45  ;;  %v4329_v10 = vpack.c.bf16 %v4302_v2, %v4301_v39  ;;  %v13502_v39 = vld [vmem:[#allocation80_spill] sm:$0xff] }
 0x32d   :  { %8644 = vmatprep.mubr.bf16.mxu0 %v3901_v43  ;;  %v4211_v32 = vpop.permute.xlu0 %4210  ;;  %v4215_v4 = vpop.permute.xlu1 %4214  ;;  %v4298_v43 = vmul.f32 %v4187_v54, %v11592_v60  ;;  %v4303_v60 = vmul.f32 %v4207_v16, %v11685_v5 }
 0x32e   :  { %v4305_v54 = vmul.f32 %v4215_v4, %v11696_v9  ;;  %v4304_v0 = vmul.f32 %v4211_v32, %v11674_v7 }
 0x32f   :  { %v4327_v40 = vpack.c.bf16 %v4298_v43, %v4297_v3  ;;  %v13500_v3 = vld [vmem:[#allocation148_spill] sm:$0xff]  ;;  %v13501_v43 = vld [vmem:[#allocation71_spill] sm:$0xff] }
 0x330   :  { %v4330_v18 = vpack.c.bf16 %v4304_v0, %v4303_v60  ;;  %v9390_v60 = vld [vmem:[%s12708_s7 + $0x18] sm:$0xff]  }
 0x331   :  { %v4219_v49 = vpop.permute.xlu0 %4218  ;;  %v4223_v36 = vpop.permute.xlu1 %4222 }
 0x332   :  { %v4306_v17 = vmul.f32 %v4219_v49, %v11681_v12  ;;  %v4307_v33 = vmul.f32 %v4223_v36, %v11728_v19  ;;  %v13490_v12 = vld [vmem:[#allocation83_spill] sm:$0xff]  ;;  %v13499_v49 = vld [vmem:[#allocation68_spill] sm:$0xff] }
 0x333   :  { %v13493_v19 = vld [vmem:[#allocation91_spill] sm:$0xff] }
 0x334   :  { %8645 = vmatmul.mubr.bf16.gmra.mrb[52].mxu0 %v3902_v44  ;;  %v4331_v31 = vpack.c.bf16 %v4306_v17, %v4305_v54 }
 0x335   :  { %8648 = vmatprep.mubr.bf16.mxu0 %v3903_v30  ;;  %v4227_v27 = vpop.permute.xlu0 %4226  ;;  %v4231_v20 = vpop.permute.xlu1 %4230 }
 0x336   :  { %v4309_v44 = vmul.f32 %v4231_v20, %v11741_v11  ;;  %v4308_v5 = vmul.f32 %v4227_v27, %v11716_v58  ;;  %v13503_v20 = vld [vmem:[#allocation76_spill] sm:$0xff] }
 0x338   :  { %v4332_v9 = vpack.c.bf16 %v4308_v5, %v4307_v33 }
 0x339   :  { %v4235_v22 = vpop.permute.xlu0 %4234  ;;  %v4239_v25 = vpop.permute.xlu1 %4238 }
 0x33a   :  { %v4310_v42 = vmul.f32 %v4235_v22, %v11722_v24  ;;  %v4311_v62 = vmul.f32 %v4239_v25, %v13490_v12  ;;  %v13494_v24 = vld [vmem:[#allocation123_spill] sm:$0xff]  ;;  %v9387_v22 = vld [vmem:[%s12708_s7] sm:$0xff]  }
 0x33b   :  { %8248 = vmatprep.subr.bf16.mxu1 %v9387_v22  ;;  %v9391_v25 = vld [vmem:[%s12708_s7 + $0x20] sm:$0xff]  }
 0x33c   :  { %8649 = vmatmul.mubr.bf16.gmra.mrb[56].mxu0 %v3904_v38  ;;  %v4333_v7 = vpack.c.bf16 %v4310_v42, %v4309_v44  ;;  %8249 = vmatpush3.bf16.msra.mxu1 %v9387_v22 }
 0x33d   :  { %8652 = vmatprep.mubr.bf16.mxu0 %v3905_v52  ;;  %v4243_v63 = vpop.permute.xlu0 %4242  ;;  %v4247_v8 = vpop.permute.xlu1 %4246 }
 0x33e   :  { %v4313_v61 = vmul.f32 %v4247_v8, %v13491_v26  ;;  %v4312_v13 = vmul.f32 %v4243_v63, %v13492_v55  ;;  %v9392_v63 = vld [vmem:[%s12708_s7 + $0x28] sm:$0xff]  }
 0x340   :  { %v4334_v53 = vpack.c.bf16 %v4312_v13, %v4311_v62 }
 0x341   :  { %v4251_v28 = vpop.permute.xlu0 %4250  ;;  %v4255_v30 = vpop.permute.xlu1 %4254 }
 0x342   :  { %v4314_v34 = vmul.f32 %v4251_v28, %v13493_v19  ;;  %v4315_v48 = vmul.f32 %v4255_v30, %v13494_v24 }
 0x344   :  { %8653 = vmatmul.mubr.bf16.gmra.mrb[60].mxu0 %v3906_v37  ;;  %v4335_v58 = vpack.c.bf16 %v4314_v34, %v4313_v61 }
 0x345   :  { %8672 = vmatprep.mubr.bf16.mxu0 %v4325_v21  ;;  %v4259_v6 = vpop.permute.xlu0 %4258  ;;  %v4263_v56 = vpop.permute.xlu1 %4262  ;;  %v13498_v21 = vld [vmem:[#allocation116_spill] sm:$0xff] }
 0x346   :  { %v4317_v52 = vmul.f32 %v4263_v56, %v13495_v57  ;;  %v4316_v1 = vmul.f32 %v4259_v6, %v13496_v35  ;;  %v9394_v6 = vld [vmem:[%s12708_s7 + $0x38] sm:$0xff]   ;;  %v9397_v57 = vld [vmem:[#allocation2 + $0x4] ss:$8 sps:$4 sm:$0xff]  }
 0x348   :  { %v4336_v46 = vpack.c.bf16 %v4316_v1, %v4315_v48 }
 0x349   :  { %v4267_v11 = vpop.permute.xlu0 %4266  ;;  %v4271_v38 = vpop.permute.xlu1 %4270 }
 0x34a   :  { %v4318_v14 = vmul.f32 %v4267_v11, %v13497_v47  ;;  %v4319_v4 = vmul.f32 %v4271_v38, %v13498_v21 }
 0x34c   :  { %8673 = vmatmul.mubr.bf16.vlgmr.msra.gmra.mrb[32].mxu0 %v4326_v23  ;;  %v4337_v32 = vpack.c.bf16 %v4318_v14, %v4317_v52  ;;  %v12380_v52 = vld [vmem:[%s12705_s4] ss:$0 sm:$0xff] }
 0x34d   :  { %8676 = vmatprep.mubr.bf16.mxu0 %v4327_v40  ;;  %v4275_v16 = vpop.permute.xlu0 %4274  ;;  %v4279_v15 = vpop.permute.xlu1 %4278 }
 0x34e   :  { %v4321_v50 = vmul.f32 %v4279_v15, %v13499_v49  ;;  %v4320_v59 = vmul.f32 %v4275_v16, %v13500_v3 }
 0x350   :  { %v4338_v36 = vpack.c.bf16 %v4320_v59, %v4319_v4 }
 0x351   :  { %v4283_v37 = vpop.permute.xlu0 %4282  ;;  %v4287_v27 = vpop.permute.xlu1 %4286 }
 0x352   :  { %v4322_v23 = vmul.f32 %v4283_v37, %v13501_v43  ;;  %v4323_v29 = vmul.f32 %v4287_v27, %v13502_v39 }
 0x354   :  { %8677 = vmatmul.mubr.bf16.gmra.mrb[36].mxu0 %v4328_v41  ;;  %v4339_v40 = vpack.c.bf16 %v4322_v23, %v4321_v50  ;;  %v9388_v41 = vld [vmem:[%s12708_s7 + $0x8] sm:$0xff]  }
 0x355   :  { %8680 = vmatprep.mubr.bf16.mxu0 %v4329_v10  ;;  %v4291_v45 = vpop.permute.xlu0 %4290  ;;  %v9389_v10 = vld [vmem:[%s12708_s7 + $0x10] sm:$0xff]   ;;  %8250 = vmatprep.subr.bf16.mxu1 %v9388_v41 }
 0x356   :  { %v4324_v51 = vmul.f32 %v4291_v45, %v13503_v20  ;;  %8251 = vmatpush3.bf16.msra.mxu1 %v9388_v41 }
 0x357   :  { %8252 = vmatprep.subr.bf16.mxu1 %v9389_v10 }
 0x358   :  { %v4340_v2 = vpack.c.bf16 %v4324_v51, %v4323_v29 }
 0x35a   :  { %8253 = vmatpush3.bf16.msra.mxu1 %v9389_v10 }
 0x35b   :  { %8254 = vmatprep.subr.bf16.mxu1 %v9390_v60 }
 0x35c   :  { %8681 = vmatmul.mubr.bf16.gmra.mrb[40].mxu0 %v4330_v18 }
 0x35d   :  { %8684 = vmatprep.mubr.bf16.mxu0 %v4331_v31  ;;  %v9393_v31 = vld [vmem:[%s12708_s7 + $0x30] sm:$0xff]  }
 0x35e   :  { %8255 = vmatpush3.bf16.msra.mxu1 %v9390_v60 }
 0x35f   :  { %8256 = vmatprep.subr.bf16.mxu1 %v9391_v25 }
 0x362   :  { %8257 = vmatpush3.bf16.msra.mxu1 %v9391_v25 }
 0x363   :  { %8258 = vmatprep.subr.bf16.mxu1 %v9392_v63 }
 0x364   :  { %8685 = vmatmul.mubr.bf16.gmra.mrb[44].mxu0 %v4332_v9 }
 0x365   :  { %8688 = vmatprep.mubr.bf16.mxu0 %v4333_v7 }
 0x366   :  { %8259 = vmatpush3.bf16.msra.mxu1 %v9392_v63 }
 0x367   :  { %8260 = vmatprep.subr.bf16.mxu1 %v9393_v31 }
 0x36a   :  { %8261 = vmatpush3.bf16.msra.mxu1 %v9393_v31 }
 0x36b   :  { %8262 = vmatprep.subr.bf16.mxu1 %v9394_v6 }
 0x36c   :  { %8689 = vmatmul.mubr.bf16.gmra.mrb[48].mxu0 %v4334_v53 }
 0x36d   :  { %8692 = vmatprep.mubr.bf16.mxu0 %v4335_v58 }
 0x36e   :  { %8263 = vmatpush3.bf16.msra.mxu1 %v9394_v6 }
 0x374   :  { %8693 = vmatmul.mubr.bf16.gmra.mrb[52].mxu0 %v4336_v46 }
 0x375   :  { %8696 = vmatprep.mubr.bf16.mxu0 %v4337_v32 }
 0x37c   :  { %8697 = vmatmul.mubr.bf16.gmra.mrb[56].mxu0 %v4338_v36 }
 0x37d   :  { %8700 = vmatprep.mubr.bf16.mxu0 %v4339_v40 }
 0x384   :  { %8701 = vmatmul.mubr.bf16.gmra.mrb[60].mxu0 %v4340_v2 }
 0x3a6   :  { %v7494_v54 = vpop.f32.mrb[0].mxu1 }
 0x3a7   :  { %v7495_v0 = vpop.f32.mrb[1].mxu1 }
 0x3a8   :  { %v7496_v17 = vadd.f32 %v7495_v0, %v7494_v54  ;;  %v7497_v18 = vpop.f32.mrb[2].mxu1 }
 0x3a9   :  { %v7498_v8 = vpop.f32.mrb[3].mxu1 }
 0x3aa   :  { %v7499_v28 = vadd.f32 %v7498_v8, %v7497_v18 }
 0x3ac   :  { %v614_v5 = vpack.c.bf16 %v7499_v28, %v7496_v17 }
 0x3ae   :  { %8264 = vmatprep.mubr.bf16.mxu1 %v614_v5 }
 0x3b2   :  { %v7500_v33 = vpop.f32.mrb[4].mxu1 }
 0x3b3   :  { %v7501_v44 = vpop.f32.mrb[5].mxu1 }
 0x3b4   :  { %v7502_v42 = vadd.f32 %v7501_v44, %v7500_v33  ;;  %v7503_v9 = vpop.f32.mrb[6].mxu1 }
 0x3b5   :  { %v7504_v30 = vpop.f32.mrb[7].mxu1 }
 0x3b6   :  { %v7505_v7 = vadd.f32 %v7504_v30, %v7503_v9 }
 0x3b8   :  { %v615_v12 = vpack.c.bf16 %v7505_v7, %v7502_v42 }
 0x3ba   :  { %8265 = vmatmul.mubr.bf16.vlgmr.msra.gmra.mrb[16].mxu1 %v615_v12  ;;  %v7506_v62 = vpop.f32.mrb[8].mxu1 }
 0x3bb   :  { %v7507_v26 = vpop.f32.mrb[9].mxu1 }
 0x3bc   :  { %v7508_v61 = vadd.f32 %v7507_v26, %v7506_v62  ;;  %v7509_v55 = vpop.f32.mrb[10].mxu1 }
 0x3bd   :  { %v7510_v13 = vpop.f32.mrb[11].mxu1 }
 0x3be   :  { %v7511_v56 = vadd.f32 %v7510_v13, %v7509_v55 }
 0x3c0   :  { %v616_v11 = vpack.c.bf16 %v7511_v56, %v7508_v61 }
 0x3c2   :  { %v7512_v19 = vpop.f32.mrb[12].mxu1  ;;  %8268 = vmatprep.mubr.bf16.mxu1 %v616_v11 }
 0x3c3   :  { %v7513_v34 = vpop.f32.mrb[13].mxu1 }
 0x3c4   :  { %v7514_v53 = vadd.f32 %v7513_v34, %v7512_v19  ;;  %v7515_v58 = vpop.f32.mrb[14].mxu1 }
 0x3c5   :  { %v7516_v24 = vpop.f32.mrb[15].mxu1 }
 0x3c6   :  { %v7517_v48 = vadd.f32 %v7516_v24, %v7515_v58 }
 0x3c8   :  { %v617_v38 = vpack.c.bf16 %v7517_v48, %v7514_v53 }
 0x3ca   :  { %8269 = vmatmul.mubr.bf16.gmra.mrb[20].mxu1 %v617_v38 }
 0x3cb   :  { %4798 = vmatprep.mubr.bf16.mxu1 %v9397_v57 }
 0x41f   :  { %v8674_v35 = vpop.f32.mrb[32].mxu0 }
 0x420   :  { %v4608_v1 = vadd.f32 %v8674_v35, %v12380_v52  ;;  %v4440_v16 = vpop.f32.mrb[33].mxu0 }
 0x421   :  { %v4606_v47 = vadd.f32 %v12380_v52, %v4440_v16  ;;  %v8675_v14 = vpop.f32.mrb[34].mxu0 }
 0x422   :  { %v4640_v46 = vmul.f32 0.2, %v4608_v1  ;;  %v4609_v32 = vadd.f32 %v8675_v14, %v12380_v52  ;;  %v4443_v15 = vpop.f32.mrb[35].mxu0 }
 0x423   :  { %v4638_v37 = vmul.f32 0.2, %v4606_v47  ;;  %v4607_v21 = vadd.f32 %v12380_v52, %v4443_v15 }
 0x424   :  { %v4641_v4 = vmul.f32 0.2, %v4609_v32  ;;  %v4672_v50 = vmax.f32 %v4608_v1, %v4640_v46 }
 0x425   :  { %v4639_v49 = vmul.f32 0.2, %v4607_v21  ;;  %v4670_v59 = vmax.f32 %v4606_v47, %v4638_v37 }
 0x426   :  { %v4673_v3 = vmax.f32 %v4609_v32, %v4641_v4 }
 0x427   :  { %v4671_v43 = vmax.f32 %v4607_v21, %v4639_v49  ;;  %v8678_v23 = vpop.f32.mrb[36].mxu0 }
 0x428   :  { %v12386_v36 = vpack.c.bf16 %v4673_v3, %v4672_v50  ;;  %v4612_v40 = vadd.f32 %v8678_v23, %v12380_v52  ;;  %v4456_v27 = vpop.f32.mrb[37].mxu0 }
 0x429   :  { %v12389_v45 = vpack.c.bf16 %v4671_v43, %v4670_v59  ;;  %v4610_v39 = vadd.f32 %v12380_v52, %v4456_v27  ;;  %v8679_v29 = vpop.f32.mrb[38].mxu0 }
 0x42a   :  { %v4644_v20 = vmul.f32 0.2, %v4612_v40  ;;  %v4613_v51 = vadd.f32 %v8679_v29, %v12380_v52  ;;  %v4459_v2 = vpop.f32.mrb[39].mxu0 }
 0x42b   :  { %v4642_v22 = vmul.f32 0.2, %v4610_v39  ;;  %v4611_v41 = vadd.f32 %v12380_v52, %v4459_v2 }
 0x42c   :  { %v4645_v10 = vmul.f32 0.2, %v4613_v51  ;;  %v4676_v25 = vmax.f32 %v4612_v40, %v4644_v20 }
 0x42d   :  { %v4643_v60 = vmul.f32 0.2, %v4611_v41  ;;  %v4674_v0 = vmax.f32 %v4610_v39, %v4642_v22 }
 0x42e   :  { %v4677_v54 = vmax.f32 %v4613_v51, %v4645_v10 }
 0x42f   :  { %v4675_v63 = vmax.f32 %v4611_v41, %v4643_v60  ;;  %v8682_v17 = vpop.f32.mrb[40].mxu0 }
 0x430   :  { %v12394_v18 = vpack.c.bf16 %v4677_v54, %v4676_v25  ;;  %v4616_v31 = vadd.f32 %v8682_v17, %v12380_v52  ;;  %v4472_v8 = vpop.f32.mrb[41].mxu0 }
 0x431   :  { %v12397_v28 = vpack.c.bf16 %v4675_v63, %v4674_v0  ;;  %v4614_v33 = vadd.f32 %v12380_v52, %v4472_v8  ;;  %v8683_v44 = vpop.f32.mrb[42].mxu0 }
 0x432   :  { %v4648_v5 = vmul.f32 0.2, %v4616_v31  ;;  %v4617_v42 = vadd.f32 %v8683_v44, %v12380_v52  ;;  %v4475_v9 = vpop.f32.mrb[43].mxu0 }
 0x433   :  { %v4646_v30 = vmul.f32 0.2, %v4614_v33  ;;  %v4615_v7 = vadd.f32 %v12380_v52, %v4475_v9 }
 0x434   :  { %v4649_v6 = vmul.f32 0.2, %v4617_v42  ;;  %v4680_v62 = vmax.f32 %v4616_v31, %v4648_v5 }
 0x435   :  { %v4647_v12 = vmul.f32 0.2, %v4615_v7  ;;  %v4678_v61 = vmax.f32 %v4614_v33, %v4646_v30 }
 0x436   :  { %v4681_v26 = vmax.f32 %v4617_v42, %v4649_v6 }
 0x437   :  { %v4679_v55 = vmax.f32 %v4615_v7, %v4647_v12  ;;  %v8686_v13 = vpop.f32.mrb[44].mxu0 }
 0x438   :  { %v12402_v56 = vpack.c.bf16 %v4681_v26, %v4680_v62  ;;  %v4620_v19 = vadd.f32 %v8686_v13, %v12380_v52  ;;  %v4488_v34 = vpop.f32.mrb[45].mxu0 }
 0x439   :  { %v12405_v11 = vpack.c.bf16 %v4679_v55, %v4678_v61  ;;  %v4618_v53 = vadd.f32 %v12380_v52, %v4488_v34  ;;  %v8687_v58 = vpop.f32.mrb[46].mxu0 }
 0x43a   :  { %v4652_v24 = vmul.f32 0.2, %v4620_v19  ;;  %v4621_v48 = vadd.f32 %v8687_v58, %v12380_v52  ;;  %v4491_v38 = vpop.f32.mrb[47].mxu0 }
 0x43b   :  { %v4650_v57 = vmul.f32 0.2, %v4618_v53  ;;  %v4619_v35 = vadd.f32 %v12380_v52, %v4491_v38 }
 0x43c   :  { %v4653_v1 = vmul.f32 0.2, %v4621_v48  ;;  %v4684_v47 = vmax.f32 %v4620_v19, %v4652_v24 }
 0x43d   :  { %v4651_v16 = vmul.f32 0.2, %v4619_v35  ;;  %v4682_v46 = vmax.f32 %v4618_v53, %v4650_v57 }
 0x43e   :  { %v4685_v14 = vmax.f32 %v4621_v48, %v4653_v1 }
 0x43f   :  { %v4683_v32 = vmax.f32 %v4619_v35, %v4651_v16  ;;  %v8690_v15 = vpop.f32.mrb[48].mxu0 }
 0x440   :  { %v12410_v37 = vpack.c.bf16 %v4685_v14, %v4684_v47  ;;  %v4624_v21 = vadd.f32 %v8690_v15, %v12380_v52  ;;  %v4504_v4 = vpop.f32.mrb[49].mxu0 }
 0x441   :  { %v12413_v49 = vpack.c.bf16 %v4683_v32, %v4682_v46  ;;  %v4622_v50 = vadd.f32 %v12380_v52, %v4504_v4  ;;  %v8691_v3 = vpop.f32.mrb[50].mxu0 }
 0x442   :  { %v4656_v59 = vmul.f32 0.2, %v4624_v21  ;;  %v4625_v43 = vadd.f32 %v8691_v3, %v12380_v52  ;;  %v4507_v23 = vpop.f32.mrb[51].mxu0 }
 0x443   :  { %v4654_v40 = vmul.f32 0.2, %v4622_v50  ;;  %v4623_v27 = vadd.f32 %v12380_v52, %v4507_v23 }
 0x444   :  { %v4657_v39 = vmul.f32 0.2, %v4625_v43  ;;  %v4688_v20 = vmax.f32 %v4624_v21, %v4656_v59 }
 0x445   :  { %v4655_v29 = vmul.f32 0.2, %v4623_v27  ;;  %v4686_v2 = vmax.f32 %v4622_v50, %v4654_v40 }
 0x446   :  { %v4689_v51 = vmax.f32 %v4625_v43, %v4657_v39 }
 0x447   :  { %v4687_v22 = vmax.f32 %v4623_v27, %v4655_v29  ;;  %v8694_v41 = vpop.f32.mrb[52].mxu0 }
 0x448   :  { %v12418_v10 = vpack.c.bf16 %v4689_v51, %v4688_v20  ;;  %v4628_v60 = vadd.f32 %v8694_v41, %v12380_v52  ;;  %v4520_v25 = vpop.f32.mrb[53].mxu0 }
 0x449   :  { %v12421_v54 = vpack.c.bf16 %v4687_v22, %v4686_v2  ;;  %v4626_v0 = vadd.f32 %v12380_v52, %v4520_v25  ;;  %v8695_v63 = vpop.f32.mrb[54].mxu0  ;;  %v9400_v25 = vld [vmem:[#allocation2 + $0x10] ss:$8 sps:$4 sm:$0xff]  }
 0x44a   :  { %v4660_v17 = vmul.f32 0.2, %v4628_v60  ;;  %v4629_v31 = vadd.f32 %v8695_v63, %v12380_v52  ;;  %v4523_v8 = vpop.f32.mrb[55].mxu0  ;;  %v9403_v63 = vld [vmem:[#allocation2 + $0x20] ss:$8 sps:$4 sm:$0xff]  }
 0x44b   :  { %v4658_v33 = vmul.f32 0.2, %v4626_v0  ;;  %v4627_v44 = vadd.f32 %v12380_v52, %v4523_v8  ;;  %7746 = vmatprep.subr.bf16.mxu1 %v12421_v54  ;;  %v9409_v8 = vld [vmem:[#allocation2 + $0x44] ss:$8 sps:$4 sm:$0xff]  }
 0x44c   :  { %v4661_v5 = vmul.f32 0.2, %v4629_v31  ;;  %7747 = vmatpush3.bf16.msra.mxu1 %v12389_v45  ;;  %v4692_v9 = vmax.f32 %v4628_v60, %v4660_v17  ;;  %v9398_v60 = vld [vmem:[#allocation2 + $0x14] ss:$8 sps:$4 sm:$0xff]  }
 0x44d   :  { %v4659_v42 = vmul.f32 0.2, %v4627_v44  ;;  %7748 = vmatprep.subr.bf16.mxu1 %v12418_v10  ;;  %v4690_v7 = vmax.f32 %v4626_v0, %v4658_v33  ;;  %v9401_v0 = vld [vmem:[#allocation2 + $0x24] ss:$8 sps:$4 sm:$0xff]   ;;  %v9404_v17 = vld [vmem:[#allocation2 + $0x34] ss:$8 sps:$4 sm:$0xff]  }
 0x44e   :  { %v4693_v30 = vmax.f32 %v4629_v31, %v4661_v5  ;;  %v9406_v31 = vld [vmem:[#allocation2 + $0x30] ss:$8 sps:$4 sm:$0xff]   ;;  %v9407_v33 = vld [vmem:[#allocation2 + $0x40] ss:$8 sps:$4 sm:$0xff]  }
 0x44f   :  { %v4691_v6 = vmax.f32 %v4627_v44, %v4659_v42  ;;  %v8698_v12 = vpop.f32.mrb[56].mxu0  ;;  %v9410_v44 = vld [vmem:[#allocation2 + $0x54] ss:$8 sps:$4 sm:$0xff]   ;;  %v9412_v5 = vld [vmem:[#allocation2 + $0x50] ss:$8 sps:$4 sm:$0xff]  }
 0x450   :  { %v12429_v62 = vpack.c.bf16 %v4693_v30, %v4692_v9  ;;  %v4632_v26 = vadd.f32 %v8698_v12, %v12380_v52  ;;  %v4536_v61 = vpop.f32.mrb[57].mxu0  ;;  %7749 = vmatpush3.bf16.msra.mxu1 %v12386_v36  ;;  %v9413_v42 = vld [vmem:[#allocation2 + $0x64] ss:$8 sps:$4 sm:$0xff]   ;;  %v9415_v9 = vld [vmem:[#allocation2 + $0x60] ss:$8 sps:$4 sm:$0xff]  }
 0x451   :  { %v12433_v55 = vpack.c.bf16 %v4691_v6, %v4690_v7  ;;  %v4630_v13 = vadd.f32 %v12380_v52, %v4536_v61  ;;  %v8699_v19 = vpop.f32.mrb[58].mxu0  ;;  %v9416_v30 = vld [vmem:[#allocation2 + $0x74] ss:$8 sps:$4 sm:$0xff]   ;;  %v9418_v7 = vld [vmem:[#allocation2 + $0x70] ss:$8 sps:$4 sm:$0xff]  }
 0x452   :  { %v4664_v34 = vmul.f32 0.2, %v4632_v26  ;;  %v4633_v53 = vadd.f32 %v8699_v19, %v12380_v52  ;;  %v4539_v58 = vpop.f32.mrb[59].mxu0 }
 0x453   :  { %v4662_v24 = vmul.f32 0.2, %v4630_v13  ;;  %v4631_v48 = vadd.f32 %v12380_v52, %v4539_v58  ;;  %7750 = vmatprep.subr.bf16.mxu1 %v12433_v55  ;;  %v9419_v58 = vld [vmem:[#allocation4 + $0x40] sm:$0xff]  }
 0x454   :  { %v4665_v38 = vmul.f32 0.2, %v4633_v53  ;;  %7751 = vmatpush3.bf16.msra.mxu1 %v12397_v28  ;;  %v4696_v35 = vmax.f32 %v4632_v26, %v4664_v34 }
 0x455   :  { %v4663_v57 = vmul.f32 0.2, %v4631_v48  ;;  %7752 = vmatprep.subr.bf16.mxu1 %v12429_v62  ;;  %v4694_v16 = vmax.f32 %v4630_v13, %v4662_v24  ;;  %v9420_v24 = vld [vmem:[#allocation4 + $0x48] sm:$0xff]  }
 0x456   :  { %v4697_v1 = vmax.f32 %v4633_v53, %v4665_v38  ;;  %v9422_v38 = vld [vmem:[#allocation4 + $0x58] sm:$0xff]  }
 0x457   :  { %v4695_v47 = vmax.f32 %v4631_v48, %v4663_v57  ;;  %v8702_v14 = vpop.f32.mrb[60].mxu0  ;;  %v9421_v48 = vld [vmem:[#allocation4 + $0x50] sm:$0xff]   ;;  %v9423_v57 = vld [vmem:[#allocation4 + $0x60] sm:$0xff]  }
 0x458   :  { %v12441_v46 = vpack.c.bf16 %v4697_v1, %v4696_v35  ;;  %v4636_v32 = vadd.f32 %v8702_v14, %v12380_v52  ;;  %v4552_v15 = vpop.f32.mrb[61].mxu0  ;;  %7753 = vmatpush3.bf16.msra.mxu1 %v12394_v18  ;;  %v9424_v35 = vld [vmem:[#allocation4 + $0x68] sm:$0xff]   ;;  %v9425_v1 = vld [vmem:[#allocation4 + $0x70] sm:$0xff]  }
 0x459   :  { %v12445_v21 = vpack.c.bf16 %v4695_v47, %v4694_v16  ;;  %v4634_v4 = vadd.f32 %v12380_v52, %v4552_v15  ;;  %v8703_v50 = vpop.f32.mrb[62].mxu0  ;;  %v9426_v16 = vld [vmem:[#allocation4 + $0x78] sm:$0xff]   ;;  %v9427_v47 = vld [vmem:[#allocation4] sm:$0xff]  }
 0x45a   :  { %v4668_v3 = vmul.f32 0.2, %v4636_v32  ;;  %v4637_v59 = vadd.f32 %v8703_v50, %v12380_v52  ;;  %v4555_v43 = vpop.f32.mrb[63].mxu0 }
 0x45b   :  { %v4666_v23 = vmul.f32 0.2, %v4634_v4  ;;  %v4635_v40 = vadd.f32 %v12380_v52, %v4555_v43  ;;  %7754 = vmatprep.subr.bf16.mxu1 %v12445_v21  ;;  %v9395_v52 = vld [vmem:[#allocation2] ss:$8 sps:$4 sm:$0xff]  }
 0x45c   :  { %v4669_v27 = vmul.f32 0.2, %v4637_v59  ;;  %7755 = vmatpush3.bf16.msra.mxu1 %v12405_v11  ;;  %v4700_v29 = vmax.f32 %v4636_v32, %v4668_v3 }
 0x45d   :  { %v4667_v39 = vmul.f32 0.2, %v4635_v40  ;;  %7756 = vmatprep.subr.bf16.mxu1 %v12441_v46  ;;  %v4698_v51 = vmax.f32 %v4634_v4, %v4666_v23 }
 0x45e   :  { %v4701_v20 = vmax.f32 %v4637_v59, %v4669_v27 }
 0x45f   :  { %v4699_v2 = vmax.f32 %v4635_v40, %v4667_v39 }
 0x460   :  { %v12453_v22 = vpack.c.bf16 %v4701_v20, %v4700_v29  ;;  %7757 = vmatpush3.bf16.msra.mxu1 %v12402_v56 }
 0x461   :  { %v12456_v41 = vpack.c.bf16 %v4699_v2, %v4698_v51 }
 0x463   :  { %7758 = vmatprep.subr.bf16.mxu1 %v12456_v41 }
 0x464   :  { %7759 = vmatpush3.bf16.msra.mxu1 %v12413_v49 }
 0x465   :  { %7760 = vmatprep.subr.bf16.mxu1 %v12453_v22 }
 0x468   :  { %7761 = vmatpush3.bf16.msra.mxu1 %v12410_v37 }
 0x469   :  { %7786 = vmatprep.subr.bf16.mxu1 %v12421_v54 }
 0x46b   :  { %4799 = vmatmul.mubr.bf16.vlgmr.msra.gmra.mrb[24].mxu1 %v9395_v52 }
 0x46c   :  { %7787 = vmatpush3.bf16.msra.mxu1 %v12389_v45  ;;  %4806 = vmatprep.mubr.bf16.mxu1 %v9398_v60 }
 0x46d   :  { %7788 = vmatprep.subr.bf16.mxu1 %v12418_v10 }
 0x470   :  { %7789 = vmatpush3.bf16.msra.mxu1 %v12386_v36 }
 0x471   :  { %7790 = vmatprep.subr.bf16.mxu1 %v12433_v55 }
 0x473   :  { %4807 = vmatmul.mubr.bf16.gmra.mrb[28].mxu1 %v9400_v25 }
 0x474   :  { %7791 = vmatpush3.bf16.msra.mxu1 %v12397_v28  ;;  %4814 = vmatprep.mubr.bf16.mxu1 %v9401_v0 }
 0x475   :  { %7792 = vmatprep.subr.bf16.mxu1 %v12429_v62 }
 0x478   :  { %7793 = vmatpush3.bf16.msra.mxu1 %v12394_v18 }
 0x479   :  { %7794 = vmatprep.subr.bf16.mxu1 %v12445_v21 }
 0x47b   :  { %4815 = vmatmul.mubr.bf16.gmra.mrb[32].mxu1 %v9403_v63 }
 0x47c   :  { %7795 = vmatpush3.bf16.msra.mxu1 %v12405_v11  ;;  %4822 = vmatprep.mubr.bf16.mxu1 %v9404_v17 }
 0x47d   :  { %7796 = vmatprep.subr.bf16.mxu1 %v12441_v46 }
 0x480   :  { %7797 = vmatpush3.bf16.msra.mxu1 %v12402_v56 }
 0x481   :  { %7798 = vmatprep.subr.bf16.mxu1 %v12456_v41 }
 0x483   :  { %4823 = vmatmul.mubr.bf16.gmra.mrb[36].mxu1 %v9406_v31 }
 0x484   :  { %7799 = vmatpush3.bf16.msra.mxu1 %v12413_v49  ;;  %4932 = vmatprep.mubr.bf16.mxu1 %v9409_v8 }
 0x485   :  { %7800 = vmatprep.subr.bf16.mxu1 %v12453_v22 }
 0x488   :  { %7801 = vmatpush3.bf16.msra.mxu1 %v12410_v37 }
 0x489   :  { %8704 = vmatprep.subr.bf16.mxu1 %v9419_v58 }
 0x48b   :  { %4933 = vmatmul.mubr.bf16.vlgmr.msra.gmra.mrb[40].mxu1 %v9407_v33 }
 0x48c   :  { %4940 = vmatprep.mubr.bf16.mxu1 %v9410_v44  ;;  %8705 = vmatpush3.bf16.msra.mxu1 %v9419_v58 }
 0x48d   :  { %v8266_v6 = vpop.f32.mrb[16].mxu1  ;;  %8706 = vmatprep.subr.bf16.mxu1 %v9420_v24 }
 0x48e   :  { %749 = vst [vmem:[%s12712_s11 + $0x10] sm:$0xff] %v8266_v6  ;;  %v716_v12 = vpop.f32.mrb[17].mxu1 }
 0x48f   :  { %747 = vst [vmem:[%s12712_s11] sm:$0xff] %v716_v12  ;;  %v8267_v26 = vpop.f32.mrb[18].mxu1 }
 0x490   :  { %750 = vst [vmem:[%s12712_s11 + $0x18] sm:$0xff] %v8267_v26  ;;  %v719_v61 = vpop.f32.mrb[19].mxu1  ;;  %8707 = vmatpush3.bf16.msra.mxu1 %v9420_v24 }
 0x491   :  { %748 = vst [vmem:[%s12712_s11 + $0x8] sm:$0xff] %v719_v61  ;;  %8708 = vmatprep.subr.bf16.mxu1 %v9421_v48 }
 0x493   :  { %4941 = vmatmul.mubr.bf16.gmra.mrb[44].mxu1 %v9412_v5 }
 0x494   :  { %4948 = vmatprep.mubr.bf16.mxu1 %v9413_v42  ;;  %8709 = vmatpush3.bf16.msra.mxu1 %v9421_v48 }
 0x495   :  { %8710 = vmatprep.subr.bf16.mxu1 %v9422_v38 }
 0x498   :  { %8711 = vmatpush3.bf16.msra.mxu1 %v9422_v38  ;;  %v9428_v38 = vld [vmem:[#allocation4 + $0x8] sm:$0xff]  }
 0x499   :  { %8712 = vmatprep.subr.bf16.mxu1 %v9423_v57 }
 0x49b   :  { %4949 = vmatmul.mubr.bf16.gmra.mrb[48].mxu1 %v9415_v9 }
 0x49c   :  { %4956 = vmatprep.mubr.bf16.mxu1 %v9416_v30  ;;  %8713 = vmatpush3.bf16.msra.mxu1 %v9423_v57 }
 0x49d   :  { %v8270_v13 = vpop.f32.mrb[20].mxu1  ;;  %8714 = vmatprep.subr.bf16.mxu1 %v9424_v35 }
 0x49e   :  { %753 = vst [vmem:[%s12712_s11 + $0x30] sm:$0xff] %v8270_v13  ;;  %v732_v19 = vpop.f32.mrb[21].mxu1 }
 0x49f   :  { %751 = vst [vmem:[%s12712_s11 + $0x20] sm:$0xff] %v732_v19  ;;  %v8271_v34 = vpop.f32.mrb[22].mxu1 }
 0x4a0   :  { %754 = vst [vmem:[%s12712_s11 + $0x38] sm:$0xff] %v8271_v34  ;;  %v735_v53 = vpop.f32.mrb[23].mxu1  ;;  %8715 = vmatpush3.bf16.msra.mxu1 %v9424_v35 }
 0x4a1   :  { %752 = vst [vmem:[%s12712_s11 + $0x28] sm:$0xff] %v735_v53  ;;  %8716 = vmatprep.subr.bf16.mxu1 %v9425_v1 }
 0x4a3   :  { %4957 = vmatmul.mubr.bf16.gmra.mrb[52].mxu1 %v9418_v7 }
 0x4a4   :  { %8717 = vmatpush3.bf16.msra.mxu1 %v9425_v1 }
 0x4a5   :  { %8718 = vmatprep.subr.bf16.mxu1 %v9426_v16 }
 0x4a8   :  { %8719 = vmatpush3.bf16.msra.mxu1 %v9426_v16 }
 0x4a9   :  { %8728 = vmatprep.subr.bf16.mxu1 %v9427_v47 }
 0x53e   :  { %v7762_v14 = vpop.f32.mrb[24].mxu1 }
 0x53f   :  { %v7763_v32 = vpop.f32.mrb[25].mxu1 }
 0x540   :  { %v12502_v15 = vadd.f32 %v7763_v32, %v7762_v14  ;;  %v7765_v4 = vpop.f32.mrb[26].mxu1  ;;  %v9429_v14 = vld [vmem:[#allocation4 + $0x10] sm:$0xff]  }
 0x541   :  { %v7766_v50 = vpop.f32.mrb[27].mxu1 }
 0x542   :  { %v12504_v3 = vadd.f32 %v7766_v50, %v7765_v4 }
 0x544   :  { %v4831_v59 = vpack.c.bf16 %v12504_v3, %v12502_v15  ;;  %v9437_v15 = vld [vmem:[#allocation2 + $0x84] ss:$8 sps:$4 sm:$0xff]  }
 0x545   :  { %v9438_v3 = vld [vmem:[#allocation4 + $0x80] sm:$0xff]  }
 0x546   :  { %v7768_v43 = vpop.f32.mrb[28].mxu1 }
 0x547   :  { %v7769_v23 = vpop.f32.mrb[29].mxu1 }
 0x548   :  { %v12508_v40 = vadd.f32 %v7769_v23, %v7768_v43  ;;  %v7771_v27 = vpop.f32.mrb[30].mxu1  ;;  %v9430_v43 = vld [vmem:[#allocation4 + $0x18] sm:$0xff]  }
 0x549   :  { %v7772_v39 = vpop.f32.mrb[31].mxu1 }
 0x54a   :  { %v12510_v29 = vadd.f32 %v7772_v39, %v7771_v27 }
 0x54c   :  { %v4832_v20 = vpack.c.bf16 %v12510_v29, %v12508_v40  ;;  %v9440_v40 = vld [vmem:[#allocation2 + $0x94] ss:$8 sps:$4 sm:$0xff]   ;;  %v9439_v29 = vld [vmem:[#allocation4 + $0x88] sm:$0xff]  }
 0x54e   :  { %v7774_v51 = vpop.f32.mrb[32].mxu1 }
 0x54f   :  { %v7775_v2 = vpop.f32.mrb[33].mxu1 }
 0x550   :  { %v12514_v52 = vadd.f32 %v7775_v2, %v7774_v51  ;;  %v7777_v60 = vpop.f32.mrb[34].mxu1  ;;  %v9431_v2 = vld [vmem:[#allocation4 + $0x20] sm:$0xff]  }
 0x551   :  { %v7778_v25 = vpop.f32.mrb[35].mxu1 }
 0x552   :  { %v12516_v0 = vadd.f32 %v7778_v25, %v7777_v60 }
 0x554   :  { %v4833_v63 = vpack.c.bf16 %v12516_v0, %v12514_v52  ;;  %v9442_v52 = vld [vmem:[#allocation2 + $0x90] ss:$8 sps:$4 sm:$0xff]   ;;  %v9446_v0 = vld [vmem:[#allocation2 + $0xa4] ss:$8 sps:$4 sm:$0xff]  }
 0x556   :  { %v7780_v17 = vpop.f32.mrb[36].mxu1 }
 0x557   :  { %v7781_v31 = vpop.f32.mrb[37].mxu1 }
 0x558   :  { %v12520_v8 = vadd.f32 %v7781_v31, %v7780_v17  ;;  %v7783_v33 = vpop.f32.mrb[38].mxu1  ;;  %v9432_v17 = vld [vmem:[#allocation4 + $0x28] sm:$0xff]   ;;  %v9433_v31 = vld [vmem:[#allocation4 + $0x30] sm:$0xff]  }
 0x559   :  { %v7784_v44 = vpop.f32.mrb[39].mxu1 }
 0x55a   :  { %v12522_v5 = vadd.f32 %v7784_v44, %v7783_v33  ;;  %v9434_v33 = vld [vmem:[#allocation4 + $0x38] sm:$0xff]   ;;  %v9449_v44 = vld [vmem:[#allocation2 + $0xa0] ss:$8 sps:$4 sm:$0xff]  }
 0x55c   :  { %v4834_v42 = vpack.c.bf16 %v12522_v5, %v12520_v8  ;;  %v9445_v8 = vld [vmem:[#allocation4 + $0xa0] sm:$0xff]   ;;  %v9451_v5 = vld [vmem:[#allocation2 + $0xb4] ss:$8 sps:$4 sm:$0xff]  }
 0x55e   :  { %v7802_v9 = vpop.f32.mrb[40].mxu1 }
 0x55f   :  { %v7803_v30 = vpop.f32.mrb[41].mxu1 }
 0x560   :  { %v7804_v7 = vadd.f32 %v7803_v30, %v7802_v9  ;;  %v7805_v6 = vpop.f32.mrb[42].mxu1  ;;  %v9450_v9 = vld [vmem:[#allocation4 + $0xb0] sm:$0xff]  }
 0x561   :  { %v7806_v12 = vpop.f32.mrb[43].mxu1  ;;  %v9454_v30 = vld [vmem:[#allocation2 + $0xb0] ss:$8 sps:$4 sm:$0xff]  }
 0x562   :  { %v7807_v26 = vadd.f32 %v7806_v12, %v7805_v6 }
 0x564   :  { %v4965_v61 = vpack.c.bf16 %v7807_v26, %v7804_v7  ;;  %v9453_v7 = vld [vmem:[#allocation4 + $0xb8] sm:$0xff]  }
 0x566   :  { %v7808_v13 = vpop.f32.mrb[44].mxu1  ;;  %8720 = vmatprep.mubr.bf16.mxu1 %v4965_v61 }
 0x567   :  { %v7809_v19 = vpop.f32.mrb[45].mxu1 }
 0x568   :  { %v7810_v34 = vadd.f32 %v7809_v19, %v7808_v13  ;;  %v7811_v53 = vpop.f32.mrb[46].mxu1 }
 0x569   :  { %v7812_v58 = vpop.f32.mrb[47].mxu1 }
 0x56a   :  { %v7813_v24 = vadd.f32 %v7812_v58, %v7811_v53 }
 0x56c   :  { %v4966_v48 = vpack.c.bf16 %v7813_v24, %v7810_v34 }
 0x56e   :  { %8721 = vmatmul.mubr.bf16.vlgmr.msra.gmra.mrb[56].mxu1 %v4966_v48  ;;  %v7814_v57 = vpop.f32.mrb[48].mxu1 }
 0x56f   :  { %8729 = vmatpush3.bf16.msra.mxu1 %v9427_v47  ;;  %v7815_v35 = vpop.f32.mrb[49].mxu1 }
 0x570   :  { %8730 = vmatprep.subr.bf16.mxu1 %v9428_v38  ;;  %v7816_v1 = vadd.f32 %v7815_v35, %v7814_v57  ;;  %v7817_v16 = vpop.f32.mrb[50].mxu1 }
 0x571   :  { %v7818_v32 = vpop.f32.mrb[51].mxu1 }
 0x572   :  { %v7819_v4 = vadd.f32 %v7818_v32, %v7817_v16 }
 0x573   :  { %8731 = vmatpush3.bf16.msra.mxu1 %v9428_v38 }
 0x574   :  { %v4967_v50 = vpack.c.bf16 %v7819_v4, %v7816_v1  ;;  %8732 = vmatprep.subr.bf16.mxu1 %v9429_v14 }
 0x576   :  { %v7820_v23 = vpop.f32.mrb[52].mxu1  ;;  %8724 = vmatprep.mubr.bf16.mxu1 %v4967_v50 }
 0x577   :  { %8733 = vmatpush3.bf16.msra.mxu1 %v9429_v14  ;;  %v7821_v27 = vpop.f32.mrb[53].mxu1 }
 0x578   :  { %v7822_v39 = vadd.f32 %v7821_v27, %v7820_v23  ;;  %v7823_v51 = vpop.f32.mrb[54].mxu1  ;;  %8734 = vmatprep.subr.bf16.mxu1 %v9430_v43 }
 0x579   :  { %v7824_v47 = vpop.f32.mrb[55].mxu1 }
 0x57a   :  { %v7825_v60 = vadd.f32 %v7824_v47, %v7823_v51 }
 0x57b   :  { %8735 = vmatpush3.bf16.msra.mxu1 %v9430_v43 }
 0x57c   :  { %v4968_v25 = vpack.c.bf16 %v7825_v60, %v7822_v39  ;;  %8736 = vmatprep.subr.bf16.mxu1 %v9431_v2  ;;  %v9457_v60 = vld [vmem:[#allocation2 + $0xc4] ss:$8 sps:$4 sm:$0xff]  }
 0x57e   :  { %8725 = vmatmul.mubr.bf16.gmra.mrb[60].mxu1 %v4968_v25 }
 0x57f   :  { %8737 = vmatpush3.bf16.msra.mxu1 %v9431_v2  ;;  %8744 = vmatprep.mubr.bf16.mxu1 %v4831_v59  ;;  %v9435_v59 = vld [vmem:[#allocation2 + $0x80] ss:$8 sps:$4 sm:$0xff]  }
 0x580   :  { %8738 = vmatprep.subr.bf16.mxu1 %v9432_v17 }
 0x583   :  { %8739 = vmatpush3.bf16.msra.mxu1 %v9432_v17  ;;  %v9458_v17 = vld [vmem:[#allocation4 + $0xc0] sm:$0xff]  }
 0x584   :  { %8740 = vmatprep.subr.bf16.mxu1 %v9433_v31 }
 0x587   :  { %8741 = vmatpush3.bf16.msra.mxu1 %v9433_v31  ;;  %v9455_v31 = vld [vmem:[#allocation2 + $0xc0] ss:$8 sps:$4 sm:$0xff]  }
 0x588   :  { %8742 = vmatprep.subr.bf16.mxu1 %v9434_v33 }
 0x58b   :  { %8743 = vmatpush3.bf16.msra.mxu1 %v9434_v33  ;;  %v9460_v33 = vld [vmem:[#allocation2 + $0xd4] ss:$8 sps:$4 sm:$0xff]  }
 0x58c   :  { %7850 = vmatprep.subr.bf16.mxu1 %v12421_v54 }
 0x58e   :  { %8745 = vmatmul.mubr.bf16.vlgmr.msra.gmra.mrb[56].mxu1 %v4832_v20  ;;  %v9443_v20 = vld [vmem:[#allocation4 + $0x90] sm:$0xff]  }
 0x58f   :  { %8748 = vmatprep.mubr.bf16.mxu1 %v4833_v63  ;;  %7851 = vmatpush3.bf16.msra.mxu1 %v12389_v45  ;;  %v9444_v63 = vld [vmem:[#allocation4 + $0x98] sm:$0xff]  }
 0x590   :  { %7852 = vmatprep.subr.bf16.mxu1 %v12418_v10 }
 0x593   :  { %7853 = vmatpush3.bf16.msra.mxu1 %v12386_v36 }
 0x594   :  { %7854 = vmatprep.subr.bf16.mxu1 %v12433_v55 }
 0x596   :  { %8749 = vmatmul.mubr.bf16.gmra.mrb[60].mxu1 %v4834_v42  ;;  %v9448_v42 = vld [vmem:[#allocation4 + $0xa8] sm:$0xff]  }
 0x597   :  { %7855 = vmatpush3.bf16.msra.mxu1 %v12397_v28  ;;  %5293 = vmatprep.mubr.bf16.mxu1 %v9437_v15  ;;  %v9459_v15 = vld [vmem:[#allocation4 + $0xc8] sm:$0xff]  }
 0x598   :  { %7856 = vmatprep.subr.bf16.mxu1 %v12429_v62 }
 0x59b   :  { %7857 = vmatpush3.bf16.msra.mxu1 %v12394_v18 }
 0x59c   :  { %7858 = vmatprep.subr.bf16.mxu1 %v12445_v21 }
 0x59f   :  { %7859 = vmatpush3.bf16.msra.mxu1 %v12405_v11 }
 0x5a0   :  { %7860 = vmatprep.subr.bf16.mxu1 %v12441_v46 }
 0x5a3   :  { %7861 = vmatpush3.bf16.msra.mxu1 %v12402_v56 }
 0x5a4   :  { %7862 = vmatprep.subr.bf16.mxu1 %v12456_v41 }
 0x5a7   :  { %7863 = vmatpush3.bf16.msra.mxu1 %v12413_v49 }
 0x5a8   :  { %7864 = vmatprep.subr.bf16.mxu1 %v12453_v22 }
 0x5ab   :  { %7865 = vmatpush3.bf16.msra.mxu1 %v12410_v37 }
 0x5ac   :  { %8752 = vmatprep.subr.bf16.mxu1 %v9438_v3 }
 0x5ae   :  { %5294 = vmatmul.mubr.bf16.vlgmr.msra.gmra.mrb[64].mxu1 %v9435_v59  ;;  %v9462_v59 = vld [vmem:[#allocation2 + $0xd0] ss:$8 sps:$4 sm:$0xff]  }
 0x5af   :  { %8753 = vmatpush3.bf16.msra.mxu1 %v9438_v3  ;;  %5301 = vmatprep.mubr.bf16.mxu1 %v9440_v40  ;;  %v9463_v3 = vld [vmem:[#allocation4 + $0xd0] sm:$0xff]   ;;  %v9466_v40 = vld [vmem:[#allocation2 + $0xe4] ss:$8 sps:$4 sm:$0xff]  }
 0x5b0   :  { %8754 = vmatprep.subr.bf16.mxu1 %v9439_v29 }
 0x5b3   :  { %8755 = vmatpush3.bf16.msra.mxu1 %v9439_v29  ;;  %v9464_v29 = vld [vmem:[#allocation4 + $0xd8] sm:$0xff]  }
 0x5b4   :  { %8756 = vmatprep.subr.bf16.mxu1 %v9443_v20 }
 0x5b6   :  { %5302 = vmatmul.mubr.bf16.gmra.mrb[68].mxu1 %v9442_v52  ;;  %v9469_v52 = vld [vmem:[#allocation2 + $0xe0] ss:$8 sps:$4 sm:$0xff]  }
 0x5b7   :  { %8757 = vmatpush3.bf16.msra.mxu1 %v9443_v20  ;;  %5309 = vmatprep.mubr.bf16.mxu1 %v9446_v0  ;;  %v9465_v20 = vld [vmem:[#allocation4 + $0xe0] sm:$0xff]   ;;  %v9471_v0 = vld [vmem:[#allocation2 + $0xf4] ss:$8 sps:$4 sm:$0xff]  }
 0x5b8   :  { %8758 = vmatprep.subr.bf16.mxu1 %v9444_v63 }
 0x5bb   :  { %8759 = vmatpush3.bf16.msra.mxu1 %v9444_v63  ;;  %v9468_v63 = vld [vmem:[#allocation4 + $0xe8] sm:$0xff]  }
 0x5bc   :  { %8760 = vmatprep.subr.bf16.mxu1 %v9445_v8 }
 0x5be   :  { %5310 = vmatmul.mubr.bf16.gmra.mrb[72].mxu1 %v9449_v44  ;;  %v9474_v44 = vld [vmem:[#allocation2 + $0xf0] ss:$8 sps:$4 sm:$0xff]  }
 0x5bf   :  { %8761 = vmatpush3.bf16.msra.mxu1 %v9445_v8  ;;  %5317 = vmatprep.mubr.bf16.mxu1 %v9451_v5  ;;  %v9470_v8 = vld [vmem:[#allocation4 + $0xf0] sm:$0xff]   ;;  %v9473_v5 = vld [vmem:[#allocation4 + $0xf8] sm:$0xff]  }
 0x5c0   :  { %8762 = vmatprep.subr.bf16.mxu1 %v9448_v42 }
 0x5c3   :  { %8763 = vmatpush3.bf16.msra.mxu1 %v9448_v42 }
 0x5c4   :  { %8764 = vmatprep.subr.bf16.mxu1 %v9450_v9 }
 0x5c6   :  { %5318 = vmatmul.mubr.bf16.gmra.mrb[76].mxu1 %v9454_v30 }
 0x5c7   :  { %8765 = vmatpush3.bf16.msra.mxu1 %v9450_v9 }
 0x5c8   :  { %8766 = vmatprep.subr.bf16.mxu1 %v9453_v7 }
 0x5cb   :  { %8767 = vmatpush3.bf16.msra.mxu1 %v9453_v7 }
 0x5cc   :  { %7902 = vmatprep.subr.bf16.mxu1 %v12421_v54 }
 0x681   :  { %v7866_v6 = vpop.f32.mrb[64].mxu1 }
 0x682   :  { %v7867_v12 = vpop.f32.mrb[65].mxu1 }
 0x683   :  { %v7868_v26 = vadd.f32 %v7867_v12, %v7866_v6  ;;  %v7869_v61 = vpop.f32.mrb[66].mxu1 }
 0x684   :  { %v7870_v13 = vpop.f32.mrb[67].mxu1 }
 0x685   :  { %v7871_v19 = vadd.f32 %v7870_v13, %v7869_v61 }
 0x687   :  { %v5326_v34 = vpack.c.bf16 %v7871_v19, %v7868_v26 }
 0x689   :  { %v7872_v53 = vpop.f32.mrb[68].mxu1  ;;  %8768 = vmatprep.mubr.bf16.mxu1 %v5326_v34 }
 0x68a   :  { %v7873_v58 = vpop.f32.mrb[69].mxu1 }
 0x68b   :  { %v7874_v24 = vadd.f32 %v7873_v58, %v7872_v53  ;;  %v7875_v48 = vpop.f32.mrb[70].mxu1 }
 0x68c   :  { %v7876_v38 = vpop.f32.mrb[71].mxu1 }
 0x68d   :  { %v7877_v57 = vadd.f32 %v7876_v38, %v7875_v48 }
 0x68f   :  { %v5327_v35 = vpack.c.bf16 %v7877_v57, %v7874_v24 }
 0x691   :  { %8769 = vmatmul.mubr.bf16.vlgmr.msra.gmra.mrb[56].mxu1 %v5327_v35  ;;  %v7878_v1 = vpop.f32.mrb[72].mxu1 }
 0x692   :  { %7903 = vmatpush3.bf16.msra.mxu1 %v12389_v45  ;;  %v7879_v16 = vpop.f32.mrb[73].mxu1 }
 0x693   :  { %7904 = vmatprep.subr.bf16.mxu1 %v12418_v10  ;;  %v7880_v14 = vadd.f32 %v7879_v16, %v7878_v1  ;;  %v7881_v32 = vpop.f32.mrb[74].mxu1 }
 0x694   :  { %v7882_v4 = vpop.f32.mrb[75].mxu1 }
 0x695   :  { %v7883_v50 = vadd.f32 %v7882_v4, %v7881_v32 }
 0x696   :  { %7905 = vmatpush3.bf16.msra.mxu1 %v12386_v36 }
 0x697   :  { %7906 = vmatprep.subr.bf16.mxu1 %v12433_v55  ;;  %v5328_v43 = vpack.c.bf16 %v7883_v50, %v7880_v14 }
 0x699   :  { %v7884_v23 = vpop.f32.mrb[76].mxu1  ;;  %8772 = vmatprep.mubr.bf16.mxu1 %v5328_v43 }
 0x69a   :  { %7907 = vmatpush3.bf16.msra.mxu1 %v12397_v28  ;;  %v7885_v27 = vpop.f32.mrb[77].mxu1 }
 0x69b   :  { %7908 = vmatprep.subr.bf16.mxu1 %v12429_v62  ;;  %v7886_v39 = vadd.f32 %v7885_v27, %v7884_v23  ;;  %v7887_v51 = vpop.f32.mrb[78].mxu1 }
 0x69c   :  { %v7888_v2 = vpop.f32.mrb[79].mxu1 }
 0x69d   :  { %v7889_v47 = vadd.f32 %v7888_v2, %v7887_v51  ;;  %v9478_v2 = vld [vmem:[#allocation4 + $0x100] sm:$0xff]  }
 0x69e   :  { %7909 = vmatpush3.bf16.msra.mxu1 %v12394_v18 }
 0x69f   :  { %7910 = vmatprep.subr.bf16.mxu1 %v12445_v21  ;;  %v5329_v25 = vpack.c.bf16 %v7889_v47, %v7886_v39  ;;  %v9477_v39 = vld [vmem:[#allocation2 + $0x104] ss:$8 sps:$4 sm:$0xff]   ;;  %v9475_v47 = vld [vmem:[#allocation2 + $0x100] ss:$8 sps:$4 sm:$0xff]  }
 0x6a1   :  { %8773 = vmatmul.mubr.bf16.gmra.mrb[60].mxu1 %v5329_v25  ;;  %v9479_v25 = vld [vmem:[#allocation4 + $0x108] sm:$0xff]  }
 0x6a2   :  { %7911 = vmatpush3.bf16.msra.mxu1 %v12405_v11  ;;  %5549 = vmatprep.mubr.bf16.mxu1 %v9457_v60  ;;  %v9480_v60 = vld [vmem:[#allocation2 + $0x114] ss:$8 sps:$4 sm:$0xff]  }
 0x6a3   :  { %7912 = vmatprep.subr.bf16.mxu1 %v12441_v46 }
 0x6a6   :  { %7913 = vmatpush3.bf16.msra.mxu1 %v12402_v56 }
 0x6a7   :  { %7914 = vmatprep.subr.bf16.mxu1 %v12456_v41 }
 0x6aa   :  { %7915 = vmatpush3.bf16.msra.mxu1 %v12413_v49 }
 0x6ab   :  { %7916 = vmatprep.subr.bf16.mxu1 %v12453_v22 }
 0x6ae   :  { %7917 = vmatpush3.bf16.msra.mxu1 %v12410_v37 }
 0x6af   :  { %8776 = vmatprep.subr.bf16.mxu1 %v9458_v17 }
 0x6b1   :  { %5550 = vmatmul.mubr.bf16.vlgmr.msra.gmra.mrb[80].mxu1 %v9455_v31  ;;  %v9482_v31 = vld [vmem:[#allocation2 + $0x110] ss:$8 sps:$4 sm:$0xff]  }
 0x6b2   :  { %8777 = vmatpush3.bf16.msra.mxu1 %v9458_v17  ;;  %5557 = vmatprep.mubr.bf16.mxu1 %v9460_v33  ;;  %v9483_v17 = vld [vmem:[#allocation4 + $0x110] sm:$0xff]   ;;  %v9486_v33 = vld [vmem:[#allocation2 + $0x124] ss:$8 sps:$4 sm:$0xff]  }
 0x6b3   :  { %8778 = vmatprep.subr.bf16.mxu1 %v9459_v15 }
 0x6b6   :  { %8779 = vmatpush3.bf16.msra.mxu1 %v9459_v15  ;;  %v9484_v15 = vld [vmem:[#allocation4 + $0x118] sm:$0xff]  }
 0x6b7   :  { %8780 = vmatprep.subr.bf16.mxu1 %v9463_v3 }
 0x6b9   :  { %5558 = vmatmul.mubr.bf16.gmra.mrb[84].mxu1 %v9462_v59  ;;  %v9489_v59 = vld [vmem:[#allocation2 + $0x120] ss:$8 sps:$4 sm:$0xff]  }
 0x6ba   :  { %8781 = vmatpush3.bf16.msra.mxu1 %v9463_v3  ;;  %5565 = vmatprep.mubr.bf16.mxu1 %v9466_v40  ;;  %v9485_v3 = vld [vmem:[#allocation4 + $0x120] sm:$0xff]   ;;  %v9491_v40 = vld [vmem:[#allocation2 + $0x134] ss:$8 sps:$4 sm:$0xff]  }
 0x6bb   :  { %8782 = vmatprep.subr.bf16.mxu1 %v9464_v29 }
 0x6be   :  { %8783 = vmatpush3.bf16.msra.mxu1 %v9464_v29  ;;  %v9488_v29 = vld [vmem:[#allocation4 + $0x128] sm:$0xff]  }
 0x6bf   :  { %8784 = vmatprep.subr.bf16.mxu1 %v9465_v20 }
 0x6c1   :  { %5566 = vmatmul.mubr.bf16.gmra.mrb[88].mxu1 %v9469_v52  ;;  %v9494_v52 = vld [vmem:[#allocation2 + $0x130] ss:$8 sps:$4 sm:$0xff]  }
 0x6c2   :  { %8785 = vmatpush3.bf16.msra.mxu1 %v9465_v20  ;;  %5573 = vmatprep.mubr.bf16.mxu1 %v9471_v0  ;;  %v9490_v20 = vld [vmem:[#allocation4 + $0x130] sm:$0xff]   ;;  %v9493_v0 = vld [vmem:[#allocation4 + $0x138] sm:$0xff]  }
 0x6c3   :  { %8786 = vmatprep.subr.bf16.mxu1 %v9468_v63 }
 0x6c6   :  { %8787 = vmatpush3.bf16.msra.mxu1 %v9468_v63 }
 0x6c7   :  { %8788 = vmatprep.subr.bf16.mxu1 %v9470_v8 }
 0x6c9   :  { %5574 = vmatmul.mubr.bf16.gmra.mrb[92].mxu1 %v9474_v44 }
 0x6ca   :  { %8789 = vmatpush3.bf16.msra.mxu1 %v9470_v8 }
 0x6cb   :  { %8790 = vmatprep.subr.bf16.mxu1 %v9473_v5 }
 0x6ce   :  { %8791 = vmatpush3.bf16.msra.mxu1 %v9473_v5 }
 0x6cf   :  { %7954 = vmatprep.subr.bf16.mxu1 %v12421_v54 }
 0x784   :  { %v7918_v42 = vpop.f32.mrb[80].mxu1 }
 0x785   :  { %v7919_v9 = vpop.f32.mrb[81].mxu1 }
 0x786   :  { %v7920_v30 = vadd.f32 %v7919_v9, %v7918_v42  ;;  %v7921_v7 = vpop.f32.mrb[82].mxu1 }
 0x787   :  { %v7922_v6 = vpop.f32.mrb[83].mxu1 }
 0x788   :  { %v7923_v12 = vadd.f32 %v7922_v6, %v7921_v7 }
 0x78a   :  { %v5582_v26 = vpack.c.bf16 %v7923_v12, %v7920_v30 }
 0x78c   :  { %v7924_v61 = vpop.f32.mrb[84].mxu1  ;;  %8792 = vmatprep.mubr.bf16.mxu1 %v5582_v26 }
 0x78d   :  { %v7925_v13 = vpop.f32.mrb[85].mxu1 }
 0x78e   :  { %v7926_v19 = vadd.f32 %v7925_v13, %v7924_v61  ;;  %v7927_v34 = vpop.f32.mrb[86].mxu1 }
 0x78f   :  { %v7928_v53 = vpop.f32.mrb[87].mxu1 }
 0x790   :  { %v7929_v58 = vadd.f32 %v7928_v53, %v7927_v34 }
 0x792   :  { %v5583_v24 = vpack.c.bf16 %v7929_v58, %v7926_v19 }
 0x794   :  { %8793 = vmatmul.mubr.bf16.vlgmr.msra.gmra.mrb[56].mxu1 %v5583_v24  ;;  %v7930_v48 = vpop.f32.mrb[88].mxu1 }
 0x795   :  { %7955 = vmatpush3.bf16.msra.mxu1 %v12389_v45  ;;  %v7931_v38 = vpop.f32.mrb[89].mxu1 }
 0x796   :  { %7956 = vmatprep.subr.bf16.mxu1 %v12418_v10  ;;  %v7932_v57 = vadd.f32 %v7931_v38, %v7930_v48  ;;  %v7933_v35 = vpop.f32.mrb[90].mxu1 }
 0x797   :  { %v7934_v1 = vpop.f32.mrb[91].mxu1 }
 0x798   :  { %v7935_v16 = vadd.f32 %v7934_v1, %v7933_v35 }
 0x799   :  { %7957 = vmatpush3.bf16.msra.mxu1 %v12386_v36 }
 0x79a   :  { %7958 = vmatprep.subr.bf16.mxu1 %v12433_v55  ;;  %v5584_v14 = vpack.c.bf16 %v7935_v16, %v7932_v57 }
 0x79c   :  { %v7936_v32 = vpop.f32.mrb[92].mxu1  ;;  %8796 = vmatprep.mubr.bf16.mxu1 %v5584_v14 }
 0x79d   :  { %7959 = vmatpush3.bf16.msra.mxu1 %v12397_v28  ;;  %v7937_v4 = vpop.f32.mrb[93].mxu1 }
 0x79e   :  { %7960 = vmatprep.subr.bf16.mxu1 %v12429_v62  ;;  %v7938_v50 = vadd.f32 %v7937_v4, %v7936_v32  ;;  %v7939_v43 = vpop.f32.mrb[94].mxu1 }
 0x79f   :  { %v7940_v23 = vpop.f32.mrb[95].mxu1 }
 0x7a0   :  { %v7941_v27 = vadd.f32 %v7940_v23, %v7939_v43  ;;  %v9498_v23 = vld [vmem:[#allocation4 + $0x140] sm:$0xff]  }
 0x7a1   :  { %7961 = vmatpush3.bf16.msra.mxu1 %v12394_v18 }
 0x7a2   :  { %7962 = vmatprep.subr.bf16.mxu1 %v12445_v21  ;;  %v5585_v51 = vpack.c.bf16 %v7941_v27, %v7938_v50  ;;  %v9497_v50 = vld [vmem:[#allocation2 + $0x144] ss:$8 sps:$4 sm:$0xff]   ;;  %v9495_v27 = vld [vmem:[#allocation2 + $0x140] ss:$8 sps:$4 sm:$0xff]  }
 0x7a4   :  { %8797 = vmatmul.mubr.bf16.gmra.mrb[60].mxu1 %v5585_v51  ;;  %v9499_v51 = vld [vmem:[#allocation4 + $0x148] sm:$0xff]  }
 0x7a5   :  { %7963 = vmatpush3.bf16.msra.mxu1 %v12405_v11  ;;  %5805 = vmatprep.mubr.bf16.mxu1 %v9477_v39  ;;  %v9500_v39 = vld [vmem:[#allocation2 + $0x154] ss:$8 sps:$4 sm:$0xff]  }
 0x7a6   :  { %7964 = vmatprep.subr.bf16.mxu1 %v12441_v46 }
 0x7a9   :  { %7965 = vmatpush3.bf16.msra.mxu1 %v12402_v56 }
 0x7aa   :  { %7966 = vmatprep.subr.bf16.mxu1 %v12456_v41 }
 0x7ad   :  { %7967 = vmatpush3.bf16.msra.mxu1 %v12413_v49 }
 0x7ae   :  { %7968 = vmatprep.subr.bf16.mxu1 %v12453_v22 }
 0x7b1   :  { %7969 = vmatpush3.bf16.msra.mxu1 %v12410_v37 }
 0x7b2   :  { %8800 = vmatprep.subr.bf16.mxu1 %v9478_v2 }
 0x7b4   :  { %5806 = vmatmul.mubr.bf16.vlgmr.msra.gmra.mrb[96].mxu1 %v9475_v47  ;;  %v9502_v47 = vld [vmem:[#allocation2 + $0x150] ss:$8 sps:$4 sm:$0xff]  }
 0x7b5   :  { %8801 = vmatpush3.bf16.msra.mxu1 %v9478_v2  ;;  %5813 = vmatprep.mubr.bf16.mxu1 %v9480_v60  ;;  %v9503_v2 = vld [vmem:[#allocation4 + $0x150] sm:$0xff]   ;;  %v9506_v60 = vld [vmem:[#allocation2 + $0x164] ss:$8 sps:$4 sm:$0xff]  }
 0x7b6   :  { %8802 = vmatprep.subr.bf16.mxu1 %v9479_v25 }
 0x7b9   :  { %8803 = vmatpush3.bf16.msra.mxu1 %v9479_v25  ;;  %v9504_v25 = vld [vmem:[#allocation4 + $0x158] sm:$0xff]  }
 0x7ba   :  { %8804 = vmatprep.subr.bf16.mxu1 %v9483_v17 }
 0x7bc   :  { %5814 = vmatmul.mubr.bf16.gmra.mrb[100].mxu1 %v9482_v31  ;;  %v9509_v31 = vld [vmem:[#allocation2 + $0x160] ss:$8 sps:$4 sm:$0xff]  }
 0x7bd   :  { %8805 = vmatpush3.bf16.msra.mxu1 %v9483_v17  ;;  %5821 = vmatprep.mubr.bf16.mxu1 %v9486_v33  ;;  %v9505_v17 = vld [vmem:[#allocation4 + $0x160] sm:$0xff]   ;;  %v9511_v33 = vld [vmem:[#allocation2 + $0x174] ss:$8 sps:$4 sm:$0xff]  }
 0x7be   :  { %8806 = vmatprep.subr.bf16.mxu1 %v9484_v15 }
 0x7c1   :  { %8807 = vmatpush3.bf16.msra.mxu1 %v9484_v15  ;;  %v9508_v15 = vld [vmem:[#allocation4 + $0x168] sm:$0xff]  }
 0x7c2   :  { %8808 = vmatprep.subr.bf16.mxu1 %v9485_v3 }
 0x7c4   :  { %5822 = vmatmul.mubr.bf16.gmra.mrb[104].mxu1 %v9489_v59  ;;  %v9514_v59 = vld [vmem:[#allocation2 + $0x170] ss:$8 sps:$4 sm:$0xff]  }
 0x7c5   :  { %8809 = vmatpush3.bf16.msra.mxu1 %v9485_v3  ;;  %5829 = vmatprep.mubr.bf16.mxu1 %v9491_v40  ;;  %v9510_v3 = vld [vmem:[#allocation4 + $0x170] sm:$0xff]   ;;  %v9513_v40 = vld [vmem:[#allocation4 + $0x178] sm:$0xff]  }
 0x7c6   :  { %8810 = vmatprep.subr.bf16.mxu1 %v9488_v29 }
 0x7c9   :  { %8811 = vmatpush3.bf16.msra.mxu1 %v9488_v29 }
 0x7ca   :  { %8812 = vmatprep.subr.bf16.mxu1 %v9490_v20 }
 0x7cc   :  { %5830 = vmatmul.mubr.bf16.gmra.mrb[108].mxu1 %v9494_v52 }
 0x7cd   :  { %8813 = vmatpush3.bf16.msra.mxu1 %v9490_v20 }
 0x7ce   :  { %8814 = vmatprep.subr.bf16.mxu1 %v9493_v0 }
 0x7d1   :  { %8815 = vmatpush3.bf16.msra.mxu1 %v9493_v0 }
 0x7d2   :  { %8006 = vmatprep.subr.bf16.mxu1 %v12421_v54 }
 0x887   :  { %v7970_v63 = vpop.f32.mrb[96].mxu1 }
 0x888   :  { %v7971_v8 = vpop.f32.mrb[97].mxu1 }
 0x889   :  { %v7972_v44 = vadd.f32 %v7971_v8, %v7970_v63  ;;  %v7973_v5 = vpop.f32.mrb[98].mxu1 }
 0x88a   :  { %v7974_v42 = vpop.f32.mrb[99].mxu1 }
 0x88b   :  { %v7975_v9 = vadd.f32 %v7974_v42, %v7973_v5 }
 0x88d   :  { %v5838_v30 = vpack.c.bf16 %v7975_v9, %v7972_v44 }
 0x88f   :  { %v7976_v7 = vpop.f32.mrb[100].mxu1  ;;  %8816 = vmatprep.mubr.bf16.mxu1 %v5838_v30 }
 0x890   :  { %v7977_v6 = vpop.f32.mrb[101].mxu1 }
 0x891   :  { %v7978_v12 = vadd.f32 %v7977_v6, %v7976_v7  ;;  %v7979_v26 = vpop.f32.mrb[102].mxu1 }
 0x892   :  { %v7980_v61 = vpop.f32.mrb[103].mxu1 }
 0x893   :  { %v7981_v13 = vadd.f32 %v7980_v61, %v7979_v26 }
 0x895   :  { %v5839_v19 = vpack.c.bf16 %v7981_v13, %v7978_v12 }
 0x897   :  { %8817 = vmatmul.mubr.bf16.vlgmr.msra.gmra.mrb[56].mxu1 %v5839_v19  ;;  %v7982_v34 = vpop.f32.mrb[104].mxu1 }
 0x898   :  { %8007 = vmatpush3.bf16.msra.mxu1 %v12389_v45  ;;  %v7983_v53 = vpop.f32.mrb[105].mxu1 }
 0x899   :  { %8008 = vmatprep.subr.bf16.mxu1 %v12418_v10  ;;  %v7984_v58 = vadd.f32 %v7983_v53, %v7982_v34  ;;  %v7985_v24 = vpop.f32.mrb[106].mxu1 }
 0x89a   :  { %v7986_v48 = vpop.f32.mrb[107].mxu1 }
 0x89b   :  { %v7987_v38 = vadd.f32 %v7986_v48, %v7985_v24 }
 0x89c   :  { %8009 = vmatpush3.bf16.msra.mxu1 %v12386_v36 }
 0x89d   :  { %8010 = vmatprep.subr.bf16.mxu1 %v12433_v55  ;;  %v5840_v57 = vpack.c.bf16 %v7987_v38, %v7984_v58 }
 0x89f   :  { %v7988_v35 = vpop.f32.mrb[108].mxu1  ;;  %8820 = vmatprep.mubr.bf16.mxu1 %v5840_v57 }
 0x8a0   :  { %8011 = vmatpush3.bf16.msra.mxu1 %v12397_v28  ;;  %v7989_v1 = vpop.f32.mrb[109].mxu1 }
 0x8a1   :  { %8012 = vmatprep.subr.bf16.mxu1 %v12429_v62  ;;  %v7990_v16 = vadd.f32 %v7989_v1, %v7988_v35  ;;  %v7991_v14 = vpop.f32.mrb[110].mxu1 }
 0x8a2   :  { %v7992_v32 = vpop.f32.mrb[111].mxu1 }
 0x8a3   :  { %v7993_v4 = vadd.f32 %v7992_v32, %v7991_v14  ;;  %v9518_v32 = vld [vmem:[#allocation4 + $0x180] sm:$0xff]  }
 0x8a4   :  { %8013 = vmatpush3.bf16.msra.mxu1 %v12394_v18 }
 0x8a5   :  { %8014 = vmatprep.subr.bf16.mxu1 %v12445_v21  ;;  %v5841_v43 = vpack.c.bf16 %v7993_v4, %v7990_v16  ;;  %v9517_v16 = vld [vmem:[#allocation2 + $0x184] ss:$8 sps:$4 sm:$0xff]   ;;  %v9515_v4 = vld [vmem:[#allocation2 + $0x180] ss:$8 sps:$4 sm:$0xff]  }
 0x8a7   :  { %8821 = vmatmul.mubr.bf16.gmra.mrb[60].mxu1 %v5841_v43  ;;  %v9519_v43 = vld [vmem:[#allocation4 + $0x188] sm:$0xff]  }
 0x8a8   :  { %8015 = vmatpush3.bf16.msra.mxu1 %v12405_v11  ;;  %6061 = vmatprep.mubr.bf16.mxu1 %v9497_v50  ;;  %v9520_v50 = vld [vmem:[#allocation2 + $0x194] ss:$8 sps:$4 sm:$0xff]  }
 0x8a9   :  { %8016 = vmatprep.subr.bf16.mxu1 %v12441_v46 }
 0x8ac   :  { %8017 = vmatpush3.bf16.msra.mxu1 %v12402_v56 }
 0x8ad   :  { %8018 = vmatprep.subr.bf16.mxu1 %v12456_v41 }
 0x8b0   :  { %8019 = vmatpush3.bf16.msra.mxu1 %v12413_v49 }
 0x8b1   :  { %8020 = vmatprep.subr.bf16.mxu1 %v12453_v22 }
 0x8b4   :  { %8021 = vmatpush3.bf16.msra.mxu1 %v12410_v37 }
 0x8b5   :  { %8824 = vmatprep.subr.bf16.mxu1 %v9498_v23 }
 0x8b7   :  { %6062 = vmatmul.mubr.bf16.vlgmr.msra.gmra.mrb[112].mxu1 %v9495_v27  ;;  %v9522_v27 = vld [vmem:[#allocation2 + $0x190] ss:$8 sps:$4 sm:$0xff]  }
 0x8b8   :  { %8825 = vmatpush3.bf16.msra.mxu1 %v9498_v23  ;;  %6069 = vmatprep.mubr.bf16.mxu1 %v9500_v39  ;;  %v9523_v23 = vld [vmem:[#allocation4 + $0x190] sm:$0xff]   ;;  %v9526_v39 = vld [vmem:[#allocation2 + $0x1a4] ss:$8 sps:$4 sm:$0xff]  }
 0x8b9   :  { %8826 = vmatprep.subr.bf16.mxu1 %v9499_v51 }
 0x8bc   :  { %8827 = vmatpush3.bf16.msra.mxu1 %v9499_v51  ;;  %v9524_v51 = vld [vmem:[#allocation4 + $0x198] sm:$0xff]  }
 0x8bd   :  { %8828 = vmatprep.subr.bf16.mxu1 %v9503_v2 }
 0x8bf   :  { %6070 = vmatmul.mubr.bf16.gmra.mrb[116].mxu1 %v9502_v47  ;;  %v9529_v47 = vld [vmem:[#allocation2 + $0x1a0] ss:$8 sps:$4 sm:$0xff]  }
 0x8c0   :  { %8829 = vmatpush3.bf16.msra.mxu1 %v9503_v2  ;;  %6077 = vmatprep.mubr.bf16.mxu1 %v9506_v60  ;;  %v9525_v2 = vld [vmem:[#allocation4 + $0x1a0] sm:$0xff]   ;;  %v9531_v60 = vld [vmem:[#allocation2 + $0x1b4] ss:$8 sps:$4 sm:$0xff]  }
 0x8c1   :  { %8830 = vmatprep.subr.bf16.mxu1 %v9504_v25 }
 0x8c4   :  { %8831 = vmatpush3.bf16.msra.mxu1 %v9504_v25  ;;  %v9528_v25 = vld [vmem:[#allocation4 + $0x1a8] sm:$0xff]  }
 0x8c5   :  { %8832 = vmatprep.subr.bf16.mxu1 %v9505_v17 }
 0x8c7   :  { %6078 = vmatmul.mubr.bf16.gmra.mrb[120].mxu1 %v9509_v31  ;;  %v9534_v31 = vld [vmem:[#allocation2 + $0x1b0] ss:$8 sps:$4 sm:$0xff]  }
 0x8c8   :  { %8833 = vmatpush3.bf16.msra.mxu1 %v9505_v17  ;;  %6085 = vmatprep.mubr.bf16.mxu1 %v9511_v33  ;;  %v9530_v17 = vld [vmem:[#allocation4 + $0x1b0] sm:$0xff]   ;;  %v9533_v33 = vld [vmem:[#allocation4 + $0x1b8] sm:$0xff]  }
 0x8c9   :  { %8834 = vmatprep.subr.bf16.mxu1 %v9508_v15 }
 0x8cc   :  { %8835 = vmatpush3.bf16.msra.mxu1 %v9508_v15 }
 0x8cd   :  { %8836 = vmatprep.subr.bf16.mxu1 %v9510_v3 }
 0x8cf   :  { %6086 = vmatmul.mubr.bf16.gmra.mrb[124].mxu1 %v9514_v59 }
 0x8d0   :  { %8837 = vmatpush3.bf16.msra.mxu1 %v9510_v3 }
 0x8d1   :  { %8838 = vmatprep.subr.bf16.mxu1 %v9513_v40 }
 0x8d4   :  { %8839 = vmatpush3.bf16.msra.mxu1 %v9513_v40 }
 0x8d5   :  { %8058 = vmatprep.subr.bf16.mxu1 %v12421_v54 }
 0x98a   :  { %v8022_v29 = vpop.f32.mrb[112].mxu1 }
 0x98b   :  { %v8023_v20 = vpop.f32.mrb[113].mxu1 }
 0x98c   :  { %v8024_v52 = vadd.f32 %v8023_v20, %v8022_v29  ;;  %v8025_v0 = vpop.f32.mrb[114].mxu1 }
 0x98d   :  { %v8026_v63 = vpop.f32.mrb[115].mxu1 }
 0x98e   :  { %v8027_v8 = vadd.f32 %v8026_v63, %v8025_v0 }
 0x990   :  { %v6094_v44 = vpack.c.bf16 %v8027_v8, %v8024_v52 }
 0x992   :  { %v8028_v5 = vpop.f32.mrb[116].mxu1  ;;  %8840 = vmatprep.mubr.bf16.mxu1 %v6094_v44 }
 0x993   :  { %v8029_v42 = vpop.f32.mrb[117].mxu1 }
 0x994   :  { %v8030_v9 = vadd.f32 %v8029_v42, %v8028_v5  ;;  %v8031_v30 = vpop.f32.mrb[118].mxu1 }
 0x995   :  { %v8032_v7 = vpop.f32.mrb[119].mxu1 }
 0x996   :  { %v8033_v6 = vadd.f32 %v8032_v7, %v8031_v30 }
 0x998   :  { %v6095_v12 = vpack.c.bf16 %v8033_v6, %v8030_v9 }
 0x99a   :  { %8841 = vmatmul.mubr.bf16.vlgmr.msra.gmra.mrb[56].mxu1 %v6095_v12  ;;  %v8034_v26 = vpop.f32.mrb[120].mxu1 }
 0x99b   :  { %8059 = vmatpush3.bf16.msra.mxu1 %v12389_v45  ;;  %v8035_v61 = vpop.f32.mrb[121].mxu1 }
 0x99c   :  { %8060 = vmatprep.subr.bf16.mxu1 %v12418_v10  ;;  %v8036_v13 = vadd.f32 %v8035_v61, %v8034_v26  ;;  %v8037_v19 = vpop.f32.mrb[122].mxu1 }
 0x99d   :  { %v8038_v34 = vpop.f32.mrb[123].mxu1 }
 0x99e   :  { %v8039_v53 = vadd.f32 %v8038_v34, %v8037_v19 }
 0x99f   :  { %8061 = vmatpush3.bf16.msra.mxu1 %v12386_v36 }
 0x9a0   :  { %8062 = vmatprep.subr.bf16.mxu1 %v12433_v55  ;;  %v6096_v58 = vpack.c.bf16 %v8039_v53, %v8036_v13 }
 0x9a2   :  { %v8040_v24 = vpop.f32.mrb[124].mxu1  ;;  %8844 = vmatprep.mubr.bf16.mxu1 %v6096_v58 }
 0x9a3   :  { %8063 = vmatpush3.bf16.msra.mxu1 %v12397_v28  ;;  %v8041_v48 = vpop.f32.mrb[125].mxu1 }
 0x9a4   :  { %8064 = vmatprep.subr.bf16.mxu1 %v12429_v62  ;;  %v8042_v38 = vadd.f32 %v8041_v48, %v8040_v24  ;;  %v8043_v57 = vpop.f32.mrb[126].mxu1 }
 0x9a5   :  { %v8044_v35 = vpop.f32.mrb[127].mxu1 }
 0x9a6   :  { %v8045_v1 = vadd.f32 %v8044_v35, %v8043_v57  ;;  %v9538_v35 = vld [vmem:[#allocation4 + $0x1c0] sm:$0xff]  }
 0x9a7   :  { %8065 = vmatpush3.bf16.msra.mxu1 %v12394_v18 }
 0x9a8   :  { %8066 = vmatprep.subr.bf16.mxu1 %v12445_v21  ;;  %v6097_v14 = vpack.c.bf16 %v8045_v1, %v8042_v38  ;;  %v9537_v38 = vld [vmem:[#allocation2 + $0x1c4] ss:$8 sps:$4 sm:$0xff]   ;;  %v9535_v1 = vld [vmem:[#allocation2 + $0x1c0] ss:$8 sps:$4 sm:$0xff]  }
 0x9aa   :  { %8845 = vmatmul.mubr.bf16.gmra.mrb[60].mxu1 %v6097_v14  ;;  %v9539_v14 = vld [vmem:[#allocation4 + $0x1c8] sm:$0xff]  }
 0x9ab   :  { %8067 = vmatpush3.bf16.msra.mxu1 %v12405_v11  ;;  %6317 = vmatprep.mubr.bf16.mxu1 %v9517_v16  ;;  %v9540_v16 = vld [vmem:[#allocation2 + $0x1d4] ss:$8 sps:$4 sm:$0xff]  }
 0x9ac   :  { %8068 = vmatprep.subr.bf16.mxu1 %v12441_v46 }
 0x9af   :  { %8069 = vmatpush3.bf16.msra.mxu1 %v12402_v56 }
 0x9b0   :  { %8070 = vmatprep.subr.bf16.mxu1 %v12456_v41 }
 0x9b3   :  { %8071 = vmatpush3.bf16.msra.mxu1 %v12413_v49 }
 0x9b4   :  { %8072 = vmatprep.subr.bf16.mxu1 %v12453_v22 }
 0x9b7   :  { %8073 = vmatpush3.bf16.msra.mxu1 %v12410_v37 }
 0x9b8   :  { %8848 = vmatprep.subr.bf16.mxu1 %v9518_v32 }
 0x9ba   :  { %6318 = vmatmul.mubr.bf16.vlgmr.msra.gmra.mrb[128].mxu1 %v9515_v4  ;;  %v9542_v4 = vld [vmem:[#allocation2 + $0x1d0] ss:$8 sps:$4 sm:$0xff]  }
 0x9bb   :  { %8849 = vmatpush3.bf16.msra.mxu1 %v9518_v32  ;;  %6325 = vmatprep.mubr.bf16.mxu1 %v9520_v50  ;;  %v9543_v32 = vld [vmem:[#allocation4 + $0x1d0] sm:$0xff]   ;;  %v9546_v50 = vld [vmem:[#allocation2 + $0x1e4] ss:$8 sps:$4 sm:$0xff]  }
 0x9bc   :  { %8850 = vmatprep.subr.bf16.mxu1 %v9519_v43 }
 0x9bf   :  { %8851 = vmatpush3.bf16.msra.mxu1 %v9519_v43  ;;  %v9544_v43 = vld [vmem:[#allocation4 + $0x1d8] sm:$0xff]  }
 0x9c0   :  { %8852 = vmatprep.subr.bf16.mxu1 %v9523_v23 }
 0x9c2   :  { %6326 = vmatmul.mubr.bf16.gmra.mrb[132].mxu1 %v9522_v27  ;;  %v9549_v27 = vld [vmem:[#allocation2 + $0x1e0] ss:$8 sps:$4 sm:$0xff]  }
 0x9c3   :  { %8853 = vmatpush3.bf16.msra.mxu1 %v9523_v23  ;;  %6333 = vmatprep.mubr.bf16.mxu1 %v9526_v39  ;;  %v9545_v23 = vld [vmem:[#allocation4 + $0x1e0] sm:$0xff]   ;;  %v9551_v39 = vld [vmem:[#allocation2 + $0x1f4] ss:$8 sps:$4 sm:$0xff]  }
 0x9c4   :  { %8854 = vmatprep.subr.bf16.mxu1 %v9524_v51 }
 0x9c7   :  { %8855 = vmatpush3.bf16.msra.mxu1 %v9524_v51  ;;  %v9548_v51 = vld [vmem:[#allocation4 + $0x1e8] sm:$0xff]  }
 0x9c8   :  { %8856 = vmatprep.subr.bf16.mxu1 %v9525_v2 }
 0x9ca   :  { %6334 = vmatmul.mubr.bf16.gmra.mrb[136].mxu1 %v9529_v47  ;;  %v9554_v47 = vld [vmem:[#allocation2 + $0x1f0] ss:$8 sps:$4 sm:$0xff]  }
 0x9cb   :  { %8857 = vmatpush3.bf16.msra.mxu1 %v9525_v2  ;;  %6341 = vmatprep.mubr.bf16.mxu1 %v9531_v60  ;;  %v9550_v2 = vld [vmem:[#allocation4 + $0x1f0] sm:$0xff]   ;;  %v9553_v60 = vld [vmem:[#allocation4 + $0x1f8] sm:$0xff]  }
 0x9cc   :  { %8858 = vmatprep.subr.bf16.mxu1 %v9528_v25 }
 0x9cf   :  { %8859 = vmatpush3.bf16.msra.mxu1 %v9528_v25  ;;  %v9567_v25 = vld [vmem:[#allocation4 + $0x200] sm:$0xff]  }
 0x9d0   :  { %8860 = vmatprep.subr.bf16.mxu1 %v9530_v17  ;;  %8896 = vmatprep.subr.bf16.mxu0 %v9567_v25 }
 0x9d1   :  { %8897 = vmatpush3.bf16.msra.mxu0 %v9567_v25 }
 0x9d2   :  { %6342 = vmatmul.mubr.bf16.gmra.mrb[140].mxu1 %v9534_v31 }
 0x9d3   :  { %8861 = vmatpush3.bf16.msra.mxu1 %v9530_v17 }
 0x9d4   :  { %8862 = vmatprep.subr.bf16.mxu1 %v9533_v33 }
 0x9d7   :  { %8863 = vmatpush3.bf16.msra.mxu1 %v9533_v33 }
 0x9d8   :  { %8110 = vmatprep.subr.bf16.mxu1 %v12421_v54 }
 0xa8d   :  { %v8074_v15 = vpop.f32.mrb[128].mxu1 }
 0xa8e   :  { %v8075_v3 = vpop.f32.mrb[129].mxu1 }
 0xa8f   :  { %v8076_v59 = vadd.f32 %v8075_v3, %v8074_v15  ;;  %v8077_v40 = vpop.f32.mrb[130].mxu1 }
 0xa90   :  { %v8078_v29 = vpop.f32.mrb[131].mxu1 }
 0xa91   :  { %v8079_v20 = vadd.f32 %v8078_v29, %v8077_v40 }
 0xa93   :  { %v6350_v52 = vpack.c.bf16 %v8079_v20, %v8076_v59 }
 0xa95   :  { %v8080_v0 = vpop.f32.mrb[132].mxu1  ;;  %8864 = vmatprep.mubr.bf16.mxu1 %v6350_v52 }
 0xa96   :  { %v8081_v63 = vpop.f32.mrb[133].mxu1 }
 0xa97   :  { %v8082_v8 = vadd.f32 %v8081_v63, %v8080_v0  ;;  %v8083_v44 = vpop.f32.mrb[134].mxu1 }
 0xa98   :  { %v8084_v5 = vpop.f32.mrb[135].mxu1 }
 0xa99   :  { %v8085_v42 = vadd.f32 %v8084_v5, %v8083_v44 }
 0xa9b   :  { %v6351_v9 = vpack.c.bf16 %v8085_v42, %v8082_v8 }
 0xa9d   :  { %8865 = vmatmul.mubr.bf16.vlgmr.msra.gmra.mrb[56].mxu1 %v6351_v9  ;;  %v8086_v30 = vpop.f32.mrb[136].mxu1 }
 0xa9e   :  { %8111 = vmatpush3.bf16.msra.mxu1 %v12389_v45  ;;  %v8087_v7 = vpop.f32.mrb[137].mxu1 }
 0xa9f   :  { %8112 = vmatprep.subr.bf16.mxu1 %v12418_v10  ;;  %v8088_v6 = vadd.f32 %v8087_v7, %v8086_v30  ;;  %v8089_v12 = vpop.f32.mrb[138].mxu1 }
 0xaa0   :  { %v8090_v26 = vpop.f32.mrb[139].mxu1 }
 0xaa1   :  { %v8091_v61 = vadd.f32 %v8090_v26, %v8089_v12 }
 0xaa2   :  { %8113 = vmatpush3.bf16.msra.mxu1 %v12386_v36 }
 0xaa3   :  { %8114 = vmatprep.subr.bf16.mxu1 %v12433_v55  ;;  %v6352_v13 = vpack.c.bf16 %v8091_v61, %v8088_v6 }
 0xaa5   :  { %v8092_v19 = vpop.f32.mrb[140].mxu1  ;;  %8868 = vmatprep.mubr.bf16.mxu1 %v6352_v13 }
 0xaa6   :  { %8115 = vmatpush3.bf16.msra.mxu1 %v12397_v28  ;;  %v8093_v34 = vpop.f32.mrb[141].mxu1 }
 0xaa7   :  { %8116 = vmatprep.subr.bf16.mxu1 %v12429_v62  ;;  %v8094_v53 = vadd.f32 %v8093_v34, %v8092_v19  ;;  %v8095_v58 = vpop.f32.mrb[142].mxu1  ;;  %v9557_v19 = vld [vmem:[#allocation2 + $0x204] ss:$8 sps:$4 sm:$0xff]   ;;  %v9573_v34 = vld [vmem:[#allocation4 + $0x230] sm:$0xff]  }
 0xaa8   :  { %v8096_v24 = vpop.f32.mrb[143].mxu1 }
 0xaa9   :  { %v8097_v48 = vadd.f32 %v8096_v24, %v8095_v58 }
 0xaaa   :  { %8117 = vmatpush3.bf16.msra.mxu1 %v12394_v18 }
 0xaab   :  { %8118 = vmatprep.subr.bf16.mxu1 %v12445_v21  ;;  %v6353_v57 = vpack.c.bf16 %v8097_v48, %v8094_v53  ;;  %v9574_v53 = vld [vmem:[#allocation4 + $0x238] sm:$0xff]  }
 0xaad   :  { %8869 = vmatmul.mubr.bf16.gmra.mrb[60].mxu1 %v6353_v57 }
 0xaae   :  { %8119 = vmatpush3.bf16.msra.mxu1 %v12405_v11  ;;  %6573 = vmatprep.mubr.bf16.mxu1 %v9537_v38 }
 0xaaf   :  { %8120 = vmatprep.subr.bf16.mxu1 %v12441_v46 }
 0xab2   :  { %8121 = vmatpush3.bf16.msra.mxu1 %v12402_v56 }
 0xab3   :  { %8122 = vmatprep.subr.bf16.mxu1 %v12456_v41 }
 0xab6   :  { %8123 = vmatpush3.bf16.msra.mxu1 %v12413_v49 }
 0xab7   :  { %8124 = vmatprep.subr.bf16.mxu1 %v12453_v22 }
 0xaba   :  { %8125 = vmatpush3.bf16.msra.mxu1 %v12410_v37 }
 0xabb   :  { %8872 = vmatprep.subr.bf16.mxu1 %v9538_v35 }
 0xabd   :  { %6574 = vmatmul.mubr.bf16.vlgmr.msra.gmra.mrb[144].mxu1 %v9535_v1 }
 0xabe   :  { %8873 = vmatpush3.bf16.msra.mxu1 %v9538_v35  ;;  %6581 = vmatprep.mubr.bf16.mxu1 %v9540_v16 }
 0xabf   :  { %8874 = vmatprep.subr.bf16.mxu1 %v9539_v14 }
 0xac2   :  { %8875 = vmatpush3.bf16.msra.mxu1 %v9539_v14 }
 0xac3   :  { %8876 = vmatprep.subr.bf16.mxu1 %v9543_v32 }
 0xac5   :  { %6582 = vmatmul.mubr.bf16.gmra.mrb[148].mxu1 %v9542_v4 }
 0xac6   :  { %8877 = vmatpush3.bf16.msra.mxu1 %v9543_v32  ;;  %6589 = vmatprep.mubr.bf16.mxu1 %v9546_v50 }
 0xac7   :  { %8878 = vmatprep.subr.bf16.mxu1 %v9544_v43 }
 0xaca   :  { %8879 = vmatpush3.bf16.msra.mxu1 %v9544_v43 }
 0xacb   :  { %8880 = vmatprep.subr.bf16.mxu1 %v9545_v23 }
 0xacd   :  { %6590 = vmatmul.mubr.bf16.gmra.mrb[152].mxu1 %v9549_v27 }
 0xace   :  { %8881 = vmatpush3.bf16.msra.mxu1 %v9545_v23  ;;  %6597 = vmatprep.mubr.bf16.mxu1 %v9551_v39 }
 0xacf   :  { %8882 = vmatprep.subr.bf16.mxu1 %v9548_v51 }
 0xad2   :  { %8883 = vmatpush3.bf16.msra.mxu1 %v9548_v51 }
 0xad3   :  { %8884 = vmatprep.subr.bf16.mxu1 %v9550_v2 }
 0xad5   :  { %6598 = vmatmul.mubr.bf16.gmra.mrb[156].mxu1 %v9554_v47 }
 0xad6   :  { %8885 = vmatpush3.bf16.msra.mxu1 %v9550_v2 }
 0xad7   :  { %8886 = vmatprep.subr.bf16.mxu1 %v9553_v60 }
 0xada   :  { %8887 = vmatpush3.bf16.msra.mxu1 %v9553_v60 }
 0xadb   :  { %8162 = vmatprep.subr.bf16.mxu1 %v12421_v54 }
 0xb90   :  { %v8126_v17 = vpop.f32.mrb[144].mxu1 }
 0xb91   :  { %v8127_v31 = vpop.f32.mrb[145].mxu1 }
 0xb92   :  { %v8128_v33 = vadd.f32 %v8127_v31, %v8126_v17  ;;  %v8129_v15 = vpop.f32.mrb[146].mxu1 }
 0xb93   :  { %v8130_v3 = vpop.f32.mrb[147].mxu1 }
 0xb94   :  { %v8131_v59 = vadd.f32 %v8130_v3, %v8129_v15 }
 0xb96   :  { %v6606_v40 = vpack.c.bf16 %v8131_v59, %v8128_v33 }
 0xb98   :  { %v8132_v29 = vpop.f32.mrb[148].mxu1  ;;  %8888 = vmatprep.mubr.bf16.mxu1 %v6606_v40 }
 0xb99   :  { %v8133_v20 = vpop.f32.mrb[149].mxu1 }
 0xb9a   :  { %v8134_v52 = vadd.f32 %v8133_v20, %v8132_v29  ;;  %v8135_v0 = vpop.f32.mrb[150].mxu1 }
 0xb9b   :  { %v8136_v63 = vpop.f32.mrb[151].mxu1 }
 0xb9c   :  { %v8137_v8 = vadd.f32 %v8136_v63, %v8135_v0 }
 0xb9e   :  { %v6607_v44 = vpack.c.bf16 %v8137_v8, %v8134_v52  ;;  %v7460_v8 = vld [vmem:[%s12711_s10] ss:$0 sm:$0xff] }
 0xba0   :  { %8889 = vmatmul.mubr.bf16.vlgmr.msra.gmra.mrb[56].mxu1 %v6607_v44  ;;  %v8138_v54 = vpop.f32.mrb[152].mxu1 }
 0xba1   :  { %8163 = vmatpush3.bf16.msra.mxu1 %v12389_v45  ;;  %v8139_v5 = vpop.f32.mrb[153].mxu1 }
 0xba2   :  { %8164 = vmatprep.subr.bf16.mxu1 %v12418_v10  ;;  %v8140_v42 = vadd.f32 %v8139_v5, %v8138_v54  ;;  %v8141_v9 = vpop.f32.mrb[154].mxu1 }
 0xba3   :  { %v8142_v30 = vpop.f32.mrb[155].mxu1 }
 0xba4   :  { %v8143_v7 = vadd.f32 %v8142_v30, %v8141_v9 }
 0xba5   :  { %8165 = vmatpush3.bf16.msra.mxu1 %v12386_v36 }
 0xba6   :  { %8166 = vmatprep.subr.bf16.mxu1 %v12433_v55  ;;  %v6608_v6 = vpack.c.bf16 %v8143_v7, %v8140_v42  ;;  %v9563_v55 = vld [vmem:[#allocation2 + $0x220] ss:$8 sps:$4 sm:$0xff]  }
 0xba8   :  { %v8144_v12 = vpop.f32.mrb[156].mxu1  ;;  %8892 = vmatprep.mubr.bf16.mxu1 %v6608_v6 }
 0xba9   :  { %8167 = vmatpush3.bf16.msra.mxu1 %v12397_v28  ;;  %v8145_v26 = vpop.f32.mrb[157].mxu1  ;;  %v9555_v28 = vld [vmem:[#allocation2 + $0x200] ss:$8 sps:$4 sm:$0xff]  }
 0xbaa   :  { %8168 = vmatprep.subr.bf16.mxu1 %v12429_v62  ;;  %v8146_v45 = vadd.f32 %v8145_v26, %v8144_v12  ;;  %v8147_v61 = vpop.f32.mrb[158].mxu1  ;;  %v9561_v62 = vld [vmem:[#allocation2 + $0x224] ss:$8 sps:$4 sm:$0xff]  }
 0xbab   :  { %v8148_v13 = vpop.f32.mrb[159].mxu1 }
 0xbac   :  { %v8149_v10 = vadd.f32 %v8148_v13, %v8147_v61 }
 0xbad   :  { %8169 = vmatpush3.bf16.msra.mxu1 %v12394_v18  ;;  %v9558_v18 = vld [vmem:[#allocation2 + $0x214] ss:$8 sps:$4 sm:$0xff]  }
 0xbae   :  { %8170 = vmatprep.subr.bf16.mxu1 %v12445_v21  ;;  %v6609_v36 = vpack.c.bf16 %v8149_v10, %v8146_v45  ;;  %v9569_v21 = vld [vmem:[#allocation4 + $0x210] sm:$0xff]  }
 0xbb0   :  { %8893 = vmatmul.mubr.bf16.gmra.mrb[60].mxu1 %v6609_v36  ;;  %v7037_v36 = vld [vmem:[%s12712_s11 + $0x10] sm:$0xff] }
 0xbb1   :  { %8171 = vmatpush3.bf16.msra.mxu1 %v12405_v11  ;;  %6829 = vmatprep.mubr.bf16.mxu1 %v9557_v19  ;;  %v9560_v11 = vld [vmem:[#allocation2 + $0x210] ss:$8 sps:$4 sm:$0xff]  }
 0xbb2   :  { %8172 = vmatprep.subr.bf16.mxu1 %v12441_v46  ;;  %v9566_v46 = vld [vmem:[#allocation2 + $0x230] ss:$8 sps:$4 sm:$0xff]  }
 0xbb5   :  { %8173 = vmatpush3.bf16.msra.mxu1 %v12402_v56  ;;  %v9564_v56 = vld [vmem:[#allocation2 + $0x234] ss:$8 sps:$4 sm:$0xff]  }
 0xbb6   :  { %8174 = vmatprep.subr.bf16.mxu1 %v12456_v41  ;;  %v9572_v41 = vld [vmem:[#allocation4 + $0x228] sm:$0xff]  }
 0xbb9   :  { %8175 = vmatpush3.bf16.msra.mxu1 %v12413_v49  ;;  %v9568_v49 = vld [vmem:[#allocation4 + $0x208] sm:$0xff]  }
 0xbba   :  { %8176 = vmatprep.subr.bf16.mxu1 %v12453_v22  ;;  %8898 = vmatprep.subr.bf16.mxu0 %v9568_v49  ;;  %v9571_v22 = vld [vmem:[#allocation4 + $0x220] sm:$0xff]  }
 0xbbb   :  { %8899 = vmatpush3.bf16.msra.mxu0 %v9568_v49 }
 0xbbc   :  { %8900 = vmatprep.subr.bf16.mxu0 %v9569_v21 }
 0xbbd   :  { %8177 = vmatpush3.bf16.msra.mxu1 %v12410_v37  ;;  %v9570_v37 = vld [vmem:[#allocation4 + $0x218] sm:$0xff]  }
 0xbbe   :  { %8920 = vmatprep.subr.bf16.mxu1 %v9567_v25 }
 0xbbf   :  { %8901 = vmatpush3.bf16.msra.mxu0 %v9569_v21 }
 0xbc0   :  { %6830 = vmatmul.mubr.bf16.vlgmr.msra.gmra.mrb[160].mxu1 %v9555_v28  ;;  %8902 = vmatprep.subr.bf16.mxu0 %v9570_v37 }
 0xbc1   :  { %6837 = vmatprep.mubr.bf16.mxu1 %v9558_v18  ;;  %8928 = vmatpush3.bf16.msra.mxu1 %v9567_v25 }
 0xbc2   :  { %8921 = vmatprep.subr.bf16.mxu1 %v9568_v49 }
 0xbc3   :  { %8903 = vmatpush3.bf16.msra.mxu0 %v9570_v37 }
 0xbc4   :  { %8904 = vmatprep.subr.bf16.mxu0 %v9571_v22 }
 0xbc5   :  { %8929 = vmatpush3.bf16.msra.mxu1 %v9568_v49 }
 0xbc6   :  { %8922 = vmatprep.subr.bf16.mxu1 %v9569_v21 }
 0xbc7   :  { %8905 = vmatpush3.bf16.msra.mxu0 %v9571_v22 }
 0xbc8   :  { %6838 = vmatmul.mubr.bf16.gmra.mrb[164].mxu1 %v9560_v11  ;;  %8906 = vmatprep.subr.bf16.mxu0 %v9572_v41 }
 0xbc9   :  { %6845 = vmatprep.mubr.bf16.mxu1 %v9561_v62  ;;  %8930 = vmatpush3.bf16.msra.mxu1 %v9569_v21  ;;  %v7035_v62 = vld [vmem:[%s12712_s11] sm:$0xff] }
 0xbca   :  { %8923 = vmatprep.subr.bf16.mxu1 %v9570_v37 }
 0xbcb   :  { %8907 = vmatpush3.bf16.msra.mxu0 %v9572_v41 }
 0xbcc   :  { %8908 = vmatprep.subr.bf16.mxu0 %v9573_v34 }
 0xbcd   :  { %8931 = vmatpush3.bf16.msra.mxu1 %v9570_v37  ;;  %v7036_v37 = vld [vmem:[%s12712_s11 + $0x8] sm:$0xff] }
 0xbce   :  { %8924 = vmatprep.subr.bf16.mxu1 %v9571_v22 }
 0xbcf   :  { %8909 = vmatpush3.bf16.msra.mxu0 %v9573_v34 }
 0xbd0   :  { %6846 = vmatmul.mubr.bf16.gmra.mrb[168].mxu1 %v9563_v55  ;;  %8910 = vmatprep.subr.bf16.mxu0 %v9574_v53 }
 0xbd1   :  { %6853 = vmatprep.mubr.bf16.mxu1 %v9564_v56  ;;  %8932 = vmatpush3.bf16.msra.mxu1 %v9571_v22 }
 0xbd2   :  { %8925 = vmatprep.subr.bf16.mxu1 %v9572_v41 }
 0xbd3   :  { %8911 = vmatpush3.bf16.msra.mxu0 %v9574_v53 }
 0xbd5   :  { %8933 = vmatpush3.bf16.msra.mxu1 %v9572_v41 }
 0xbd6   :  { %8926 = vmatprep.subr.bf16.mxu1 %v9573_v34 }
 0xbd8   :  { %6854 = vmatmul.mubr.bf16.gmra.mrb[172].mxu1 %v9566_v46  ;;  %v7038_v46 = vld [vmem:[%s12712_s11 + $0x18] sm:$0xff] }
 0xbd9   :  { %8934 = vmatpush3.bf16.msra.mxu1 %v9573_v34 }
 0xbda   :  { %8927 = vmatprep.subr.bf16.mxu1 %v9574_v53 }
 0xbdd   :  { %8935 = vmatpush3.bf16.msra.mxu1 %v9574_v53 }
 0xc73   :  { %v8890_v58 = vpop.f32.mrb[56].mxu1 }
 0xc74   :  { %v6709_v24 = vpop.f32.mrb[57].mxu1 }
 0xc75   :  { %v8891_v48 = vpop.f32.mrb[58].mxu1 }
 0xc76   :  { %v6712_v38 = vpop.f32.mrb[59].mxu1 }
 0xc93   :  { %v8178_v57 = vpop.f32.mrb[160].mxu1 }
 0xc94   :  { %v8179_v35 = vpop.f32.mrb[161].mxu1 }
 0xc95   :  { %v8180_v1 = vadd.f32 %v8179_v35, %v8178_v57  ;;  %v8181_v16 = vpop.f32.mrb[162].mxu1 }
 0xc96   :  { %v8182_v14 = vpop.f32.mrb[163].mxu1 }
 0xc97   :  { %v8183_v32 = vadd.f32 %v8182_v14, %v8181_v16 }
 0xc99   :  { %v6862_v4 = vpack.c.bf16 %v8183_v32, %v8180_v1  ;;  %v7041_v32 = vld [vmem:[%s12712_s11 + $0x30] sm:$0xff] }
 0xc9b   :  { %v8184_v50 = vpop.f32.mrb[164].mxu1  ;;  %8912 = vmatprep.mubr.bf16.mxu0 %v6862_v4 }
 0xc9c   :  { %v8185_v43 = vpop.f32.mrb[165].mxu1 }
 0xc9d   :  { %v8186_v23 = vadd.f32 %v8185_v43, %v8184_v50  ;;  %v8187_v27 = vpop.f32.mrb[166].mxu1 }
 0xc9e   :  { %v8188_v39 = vpop.f32.mrb[167].mxu1 }
 0xc9f   :  { %v8189_v51 = vadd.f32 %v8188_v39, %v8187_v27 }
 0xca1   :  { %v6863_v2 = vpack.c.bf16 %v8189_v51, %v8186_v23  ;;  %v7039_v23 = vld [vmem:[%s12712_s11 + $0x20] sm:$0xff]  ;;  %v7042_v51 = vld [vmem:[%s12712_s11 + $0x38] sm:$0xff] }
 0xca3   :  { %v8190_v47 = vpop.f32.mrb[168].mxu1  ;;  %8913 = vmatmul.mubr.bf16.vlgmr.msra.gmra.mrb[64].mxu0 %v6863_v2 }
 0xca4   :  { %v8191_v60 = vpop.f32.mrb[169].mxu1 }
 0xca5   :  { %v8192_v25 = vadd.f32 %v8191_v60, %v8190_v47  ;;  %v8193_v17 = vpop.f32.mrb[170].mxu1  ;;  %v7040_v60 = vld [vmem:[%s12712_s11 + $0x28] sm:$0xff] }
 0xca6   :  { %v8194_v31 = vpop.f32.mrb[171].mxu1 }
 0xca7   :  { %v8195_v33 = vadd.f32 %v8194_v31, %v8193_v17 }
 0xca9   :  { %v6864_v15 = vpack.c.bf16 %v8195_v33, %v8192_v25 }
 0xcab   :  { %v8196_v3 = vpop.f32.mrb[172].mxu1  ;;  %8916 = vmatprep.mubr.bf16.mxu1 %v6864_v15 }
 0xcac   :  { %v8197_v59 = vpop.f32.mrb[173].mxu1 }
 0xcad   :  { %v8198_v40 = vadd.f32 %v8197_v59, %v8196_v3  ;;  %v8199_v29 = vpop.f32.mrb[174].mxu1 }
 0xcae   :  { %v8200_v20 = vpop.f32.mrb[175].mxu1 }
 0xcaf   :  { %v8201_v52 = vadd.f32 %v8200_v20, %v8199_v29 }
 0xcb1   :  { %v6865_v0 = vpack.c.bf16 %v8201_v52, %v8198_v40 }
 0xcb3   :  { %8917 = vmatmul.mubr.bf16.vlgmr.msra.gmra.mrb[60].mxu1 %v6865_v0 }
 0xd76   :  { %v8914_v63 = vpop.f32.mrb[64].mxu0 }
 0xd77   :  { %v8936_v44 = vadd.f32 %v8914_v63, %v8890_v58  ;;  %v6965_v54 = vpop.f32.mrb[65].mxu0 }
 0xd78   :  { %v8937_v5 = vadd.f32 %v6965_v54, %v6709_v24  ;;  %v8915_v42 = vpop.f32.mrb[66].mxu0 }
 0xd79   :  { %v7013_v9 = vadd.f32 %v8936_v44, %v7460_v8  ;;  %v8938_v30 = vadd.f32 %v8915_v42, %v8891_v48  ;;  %v6968_v7 = vpop.f32.mrb[67].mxu0 }
 0xd7a   :  { %v7011_v6 = vadd.f32 %v8937_v5, %v7460_v8  ;;  %v8939_v12 = vadd.f32 %v6968_v7, %v6712_v38 }
 0xd7b   :  { %v7021_v26 = vmul.f32 0.2, %v7013_v9  ;;  %v7014_v45 = vadd.f32 %v8938_v30, %v7460_v8 }
 0xd7c   :  { %v7019_v61 = vmul.f32 0.2, %v7011_v6  ;;  %v7012_v13 = vadd.f32 %v8939_v12, %v7460_v8 }
 0xd7d   :  { %v7029_v10 = vmax.f32 %v7013_v9, %v7021_v26  ;;  %v7022_v19 = vmul.f32 0.2, %v7014_v45 }
 0xd7e   :  { %v7027_v28 = vmax.f32 %v7011_v6, %v7019_v61  ;;  %v7020_v18 = vmul.f32 0.2, %v7012_v13 }
 0xd7f   :  { %v7045_v11 = vadd.f32 %v7037_v36, %v7029_v10  ;;  %v7030_v55 = vmax.f32 %v7014_v45, %v7022_v19 }
 0xd80   :  { %v7043_v56 = vadd.f32 %v7035_v62, %v7027_v28  ;;  %v7028_v49 = vmax.f32 %v7012_v13, %v7020_v18 }
 0xd81   :  { %7053 = vst [vmem:[%s12712_s11 + $0x10] sm:$0xff] %v7045_v11  ;;  %v7046_v21 = vadd.f32 %v7038_v46, %v7030_v55 }
 0xd82   :  { %7051 = vst [vmem:[%s12712_s11] sm:$0xff] %v7043_v56  ;;  %v7044_v22 = vadd.f32 %v7036_v37, %v7028_v49 }
 0xd83   :  { %7054 = vst [vmem:[%s12712_s11 + $0x18] sm:$0xff] %v7046_v21 }
 0xd84   :  { %7052 = vst [vmem:[%s12712_s11 + $0x8] sm:$0xff] %v7044_v22 }
 0xd86   :  { %v8918_v41 = vpop.f32.mrb[60].mxu1 }
 0xd87   :  { %v7017_v34 = vadd.f32 %v8918_v41, %v7460_v8  ;;  %v6981_v53 = vpop.f32.mrb[61].mxu1 }
 0xd88   :  { %v7015_v58 = vadd.f32 %v7460_v8, %v6981_v53  ;;  %v8919_v24 = vpop.f32.mrb[62].mxu1 }
 0xd89   :  { %v7025_v48 = vmul.f32 0.2, %v7017_v34  ;;  %v7018_v38 = vadd.f32 %v8919_v24, %v7460_v8  ;;  %v6984_v57 = vpop.f32.mrb[63].mxu1 }
 0xd8a   :  { %v7023_v35 = vmul.f32 0.2, %v7015_v58  ;;  %v7016_v1 = vadd.f32 %v7460_v8, %v6984_v57 }
 0xd8b   :  { %v7033_v16 = vmax.f32 %v7017_v34, %v7025_v48  ;;  %v7026_v14 = vmul.f32 0.2, %v7018_v38 }
 0xd8c   :  { %v7031_v4 = vmax.f32 %v7015_v58, %v7023_v35  ;;  %v7024_v50 = vmul.f32 0.2, %v7016_v1 }
 0xd8d   :  { %v7049_v43 = vadd.f32 %v7041_v32, %v7033_v16  ;;  %v7034_v27 = vmax.f32 %v7018_v38, %v7026_v14 }
 0xd8e   :  { %v7047_v39 = vadd.f32 %v7039_v23, %v7031_v4  ;;  %v7032_v2 = vmax.f32 %v7016_v1, %v7024_v50 }
 0xd8f   :  { %7057 = vst [vmem:[%s12712_s11 + $0x30] sm:$0xff] %v7049_v43  ;;  %v7050_v47 = vadd.f32 %v7042_v51, %v7034_v27 }
 0xd90   :  { %7055 = vst [vmem:[%s12712_s11 + $0x20] sm:$0xff] %v7047_v39  ;;  %v7048_v25 = vadd.f32 %v7040_v60, %v7032_v2 }
 0xd91   :  { %7058 = vst [vmem:[%s12712_s11 + $0x38] sm:$0xff] %v7050_v47 }
 0xd92   :  { %7056 = vst [vmem:[%s12712_s11 + $0x28] sm:$0xff] %v7048_v25 }
 0xd93   :  { %7063 = vsyncpa [#allocation3], 1 }
 0xd94   :  { %7064 = vsyncpa [#allocation5], 1 }

</bundles_post_ra>
